<compile_context>
chip_gen: v5e
topology: v5e:2x2
jax: 0.10.0
libtpu: 0.0.40
codegen_flags: <defaults>
</compile_context>

<pallas_src>
import numpy as np
import jax
import jax.numpy as jnp
from jax import lax
from jax.experimental import pallas as pl
from jax.experimental.pallas import tpu as pltpu

# ---- model hyper-parameters (the "options" object) ------------------------------------
H = 32              # options.lstm_hid_dims
HC = 32             # options.chain_hid_dims (chain_direction=1 -> single_pass_dims = HC)
R = 16              # options.rel_emb_dims
MAX_T = 8           # max chain length (head word + children)
MAX_CHILD = MAX_T - 1
GG = 8 * HC         # interleaved gate lanes for both chains: [iL iR fL fR gL gR oL oR]


# ---- the fused whole-tree kernel --------------------------------------------------------
def tree_lstm_kernel(order_ref, lens_ref, lids_ref, rids_ref,          # SMEM prefetch
                     ctx0_ref, rel_ref,                                # VMEM inputs
                     w_ih_ref, w_hh_ref, b_ref, enc_w_ref, enc_b_ref,  # VMEM weights
                     enc_ref,                                          # VMEM output (resident)
                     x_sc, pre_sc, h_sc, c_sc):                        # VMEM scratch
    p = pl.program_id(0)

    @pl.when(p == 0)
    def _init():
        enc_ref[...] = jnp.zeros_like(enc_ref)
        x_sc[...] = jnp.zeros_like(x_sc)
        h_sc[...] = jnp.zeros_like(h_sc)        # carried [h_left | h_right]
        c_sc[...] = jnp.zeros_like(c_sc)        # carried [c_left | c_right]

    node = order_ref[p]
    t_l = lens_ref[p, 0]                        # left chain length  (1 + #left children)
    t_r = lens_ref[p, 1]                        # right chain length (1 + #right children)
    t_max = jnp.maximum(t_l, t_r)

    # ---- gather chain inputs: row t = [left-chain input t | right-chain input t] --------
    head = ctx0_ref[pl.ds(node, 1), :]          # vi(t): the (not yet encoded) head word
    x_sc[0:1, 0:H] = head
    x_sc[0:1, H:2 * H] = head
    for j in range(MAX_CHILD):
        @pl.when(j + 1 < t_l)
        def _gl(j=j):
            lc = lids_ref[p, j]
            x_sc[j + 1:j + 2, 0:H] = enc_ref[pl.ds(lc, 1), :]

        @pl.when(j + 1 < t_r)
        def _gr(j=j):
            rc = rids_ref[p, j]
            x_sc[j + 1:j + 2, H:2 * H] = enc_ref[pl.ds(rc, 1), :]

    # ---- input projections for all timesteps of BOTH chains: one MXU matmul -------------
    pre_sc[...] = (
        jnp.dot(x_sc[...], w_ih_ref[...], preferred_element_type=jnp.float32)
        + b_ref[...]
    )

    # per-lane step limit: lanes [0, HC) = left chain, [HC, 2*HC) = right chain
    lane = lax.broadcasted_iota(jnp.int32, (1, 2 * HC), 1)
    limit = jnp.where(lane < HC, t_l, t_r)

    # ---- joint recurrence over both chains (unrolled; skip fully padded steps) ----------
    for t in range(MAX_T):
        @pl.when(t < t_max)
        def _step(t=t):
            hh = jnp.dot(h_sc[...], w_hh_ref[...], preferred_element_type=jnp.float32)
            gates = pre_sc[t:t + 1, :] + hh                       # (1, 8*HC)
            i = jax.nn.sigmoid(gates[:, 0 * 2 * HC:1 * 2 * HC])   # [iL | iR]
            f = jax.nn.sigmoid(gates[:, 1 * 2 * HC:2 * 2 * HC])   # [fL | fR]
            g = jnp.tanh(gates[:, 2 * 2 * HC:3 * 2 * HC])         # [gL | gR]
            o = jax.nn.sigmoid(gates[:, 3 * 2 * HC:4 * 2 * HC])   # [oL | oR]
            c_new = f * c_sc[...] + i * g
            h_new = o * jnp.tanh(c_new)
            active = t < limit                                    # (1, 2*HC) bool
            h_sc[...] = jnp.where(active, h_new, h_sc[...])
            c_sc[...] = jnp.where(active, c_new, c_sc[...])

    # ---- combine: enc(t) = tanh(W [el(t) ; er(t) ; v(rel)] + b) --------------------------
    rel_row = rel_ref[pl.ds(node, 1), :]
    out_row = jnp.tanh(
        jnp.dot(h_sc[...], enc_w_ref[0:2 * HC, :], preferred_element_type=jnp.float32)
        + jnp.dot(rel_row, enc_w_ref[2 * HC:2 * HC + R, :],
                  preferred_element_type=jnp.float32)
        + enc_b_ref[...]
    )
    enc_ref[pl.ds(node, 1), :] = out_row


def make_tree_forward(n_nodes, n_pad):
    grid_spec = pltpu.PrefetchScalarGridSpec(
        num_scalar_prefetch=4,                   # order, lens, left_ids, right_ids
        grid=(n_nodes,),
        in_specs=[
            pl.BlockSpec((n_pad, H), lambda p, *_: (0, 0)),         # ctx0 (word vectors)
            pl.BlockSpec((n_pad, R), lambda p, *_: (0, 0)),         # incoming rel vectors
            pl.BlockSpec((2 * H, GG), lambda p, *_: (0, 0)),        # packed W_ih (l|r)
            pl.BlockSpec((2 * HC, GG), lambda p, *_: (0, 0)),       # packed W_hh (l|r)
            pl.BlockSpec((1, GG), lambda p, *_: (0, 0)),            # packed bias
            pl.BlockSpec((2 * HC + R, H), lambda p, *_: (0, 0)),    # enc_linear W^T
            pl.BlockSpec((1, H), lambda p, *_: (0, 0)),             # enc_linear b
        ],
        out_specs=pl.BlockSpec((n_pad, H), lambda p, *_: (0, 0)),   # encoded contexts
        scratch_shapes=[
            pltpu.VMEM((MAX_T, 2 * H), jnp.float32),    # gathered chain inputs [xl | xr]
            pltpu.VMEM((MAX_T, GG), jnp.float32),       # precomputed input projections
            pltpu.VMEM((1, 2 * HC), jnp.float32),       # carried h  [h_l | h_r]
            pltpu.VMEM((1, 2 * HC), jnp.float32),       # carried c  [c_l | c_r]
        ],
    )
    return pl.pallas_call(
        tree_lstm_kernel,
        out_shape=jax.ShapeDtypeStruct((n_pad, H), jnp.float32),
        grid_spec=grid_spec,
        compiler_params=pltpu.CompilerParams(dimension_semantics=("arbitrary",)),
    )


# ---- parameters (PyTorch layout) + host-side packing ------------------------------------
def init_params(key):
    ks = jax.random.split(key, 8)
    s = 0.1
    rnd = lambda k, shape: (jax.random.normal(k, shape) * s).astype(jnp.float32)
    return {
        "l_w_ih": rnd(ks[0], (4 * HC, H)),   # PyTorch nn.LSTM layout, gate order (i,f,g,o)
        "l_w_hh": rnd(ks[1], (4 * HC, HC)),
        "l_b":    rnd(ks[2], (1, 4 * HC)),   # b_ih + b_hh pre-combined
        "r_w_ih": rnd(ks[3], (4 * HC, H)),
        "r_w_hh": rnd(ks[4], (4 * HC, HC)),
        "r_b":    rnd(ks[5], (1, 4 * HC)),
        "enc_w":  rnd(ks[6], (H, 2 * HC + R)),
        "enc_b":  rnd(ks[7], (1, H)),
    }


def pack_params(raw):
    """Pre-transpose + pack l/r LSTM weights block-diagonally with interleaved gate bands."""
    def pack_lr_mat(l_t, r_t):                 # l_t, r_t: (K, 4*HC), columns (i,f,g,o)
        K = l_t.shape[0]
        out = jnp.zeros((2 * K, GG), jnp.float32)
        for k in range(4):
            out = out.at[:K, 2 * k * HC:(2 * k + 1) * HC].set(l_t[:, k * HC:(k + 1) * HC])
            out = out.at[K:, (2 * k + 1) * HC:(2 * k + 2) * HC].set(r_t[:, k * HC:(k + 1) * HC])
        return out

    def pack_lr_bias(l_b, r_b):
        out = jnp.zeros((1, GG), jnp.float32)
        for k in range(4):
            out = out.at[:, 2 * k * HC:(2 * k + 1) * HC].set(l_b[:, k * HC:(k + 1) * HC])
            out = out.at[:, (2 * k + 1) * HC:(2 * k + 2) * HC].set(r_b[:, k * HC:(k + 1) * HC])
        return out

    return {
        "w_ih_bd": pack_lr_mat(raw["l_w_ih"].T, raw["r_w_ih"].T),   # (2*H,  8*HC)
        "w_hh_bd": pack_lr_mat(raw["l_w_hh"].T, raw["r_w_hh"].T),   # (2*HC, 8*HC)
        "b_cat":   pack_lr_bias(raw["l_b"], raw["r_b"]),            # (1, 8*HC)
        "enc_w_t": raw["enc_w"].T,                                  # (2*HC+R, H)
        "enc_b":   raw["enc_b"],                                    # (1, H)
    }


# ---- pure-JAX reference (mirrors the PyTorch module exactly) -----------------------------
def reference_forward(ctx0, rel, raw, topology, order):
    hp = jax.lax.Precision.HIGHEST

    def lstm_step(x, h, c, w_ih, w_hh, b):
        gates = jnp.dot(x, w_ih.T, precision=hp) + jnp.dot(h, w_hh.T, precision=hp) + b
        i = jax.nn.sigmoid(gates[:, 0 * HC:1 * HC])
        f = jax.nn.sigmoid(gates[:, 1 * HC:2 * HC])
        g = jnp.tanh(gates[:, 2 * HC:3 * HC])
        o = jax.nn.sigmoid(gates[:, 3 * HC:4 * HC])
        c = f * c + i * g
        h = o * jnp.tanh(c)
        return h, c

    enc = {}
    hl = cl = hr = cr = jnp.zeros((1, HC), jnp.float32)
    for node in order:
        left, right = topology[node]
        for x in [ctx0[node:node + 1]] + [enc[ch] for ch in left]:
            hl, cl = lstm_step(x, hl, cl, raw["l_w_ih"], raw["l_w_hh"], raw["l_b"])
        for x in [ctx0[node:node + 1]] + [enc[ch] for ch in right]:
            hr, cr = lstm_step(x, hr, cr, raw["r_w_ih"], raw["r_w_hh"], raw["r_b"])
        con = jnp.concatenate([hl, hr, rel[node:node + 1]], axis=-1)
        enc[node] = jnp.tanh(jnp.dot(con, raw["enc_w"].T, precision=hp) + raw["enc_b"])
    return enc


# ---- driver ------------------------------------------------------------------------------
if __name__ == "__main__":
    key = jax.random.PRNGKey(0)
    k_params, k_ctx, k_rel = jax.random.split(key, 3)
    raw = init_params(k_params)
    packed = pack_params(raw)

    n_nodes = 7
    n_pad = ((n_nodes + 7) // 8) * 8

    # small dependency tree:
    #   node0(root): left [1,2], right [3]
    #   node1: left [4];  node3: right [5,6];  2,4,5,6 are leaves
    topology = {0: ([1, 2], [3]), 1: ([4], []), 2: ([], []), 3: ([], [5, 6]),
                4: ([], []), 5: ([], []), 6: ([], [])}

    ctx0 = jnp.zeros((n_pad, H), jnp.float32).at[:n_nodes].set(
        (jax.random.normal(k_ctx, (n_nodes, H)) * 0.5).astype(jnp.float32))
    rel = jnp.zeros((n_pad, R), jnp.float32).at[:n_nodes].set(
        (jax.random.normal(k_rel, (n_nodes, R)) * 0.5).astype(jnp.float32))

    # post-order DFS (children before head) -- mirrors the stack-based bottom_up traversal
    order = []
    def visit(i):
        for c in topology[i][0] + topology[i][1]:
            visit(c)
        order.append(i)
    visit(0)

    order_arr = np.zeros((n_pad,), np.int32)
    order_arr[:n_nodes] = order
    lens_arr = np.ones((n_pad, 2), np.int32)
    lids = np.zeros((n_pad, MAX_CHILD), np.int32)
    rids = np.zeros((n_pad, MAX_CHILD), np.int32)
    for p, node in enumerate(order):
        l, r = topology[node]
        lens_arr[p] = (1 + len(l), 1 + len(r))
        lids[p, :len(l)] = l
        rids[p, :len(r)] = r

    tree_forward = make_tree_forward(n_nodes, n_pad)
    enc_all = tree_forward(
        jnp.asarray(order_arr), jnp.asarray(lens_arr), jnp.asarray(lids), jnp.asarray(rids),
        ctx0, rel,
        packed["w_ih_bd"], packed["w_hh_bd"], packed["b_cat"],
        packed["enc_w_t"], packed["enc_b"])
    enc_all = jax.block_until_ready(enc_all)

    root_enc = enc_all[0:1, :]
    assert root_enc.shape == (1, H)
    assert bool(jnp.all(jnp.isfinite(root_enc)))

    # verify against the pure-JAX reference of the same module
    ref_enc = reference_forward(ctx0, rel, raw, topology, order)
    for node in range(n_nodes):
        np.testing.assert_allclose(np.asarray(enc_all[node:node + 1, :]),
                                   np.asarray(ref_enc[node]),
                                   rtol=5e-3, atol=5e-3)

    print("KERNEL_OK")
</pallas_src>

<mosaic_0001>
module attributes {stable_mosaic.version = 11 : i64} {
  func.func @tree_lstm_kernel(%arg0: i32, %arg1: memref<8xi32, #tpu.memory_space<smem>>, %arg2: memref<8x2xi32, #tpu.memory_space<smem>>, %arg3: memref<8x7xi32, #tpu.memory_space<smem>>, %arg4: memref<8x7xi32, #tpu.memory_space<smem>>, %arg5: memref<8x32xf32, #tpu.memory_space<vmem>>, %arg6: memref<8x16xf32, #tpu.memory_space<vmem>>, %arg7: memref<64x256xf32, #tpu.memory_space<vmem>>, %arg8: memref<64x256xf32, #tpu.memory_space<vmem>>, %arg9: memref<1x256xf32, #tpu.memory_space<vmem>>, %arg10: memref<80x32xf32, #tpu.memory_space<vmem>>, %arg11: memref<1x32xf32, #tpu.memory_space<vmem>>, %arg12: memref<8x32xf32, #tpu.memory_space<vmem>>, %arg13: memref<8x64xf32, #tpu.memory_space<vmem>>, %arg14: memref<8x256xf32, #tpu.memory_space<vmem>>, %arg15: memref<1x64xf32, #tpu.memory_space<vmem>>, %arg16: memref<1x64xf32, #tpu.memory_space<vmem>>) attributes {dimension_semantics = [#tpu.dimension_semantics<arbitrary>], iteration_bounds = array<i64: 7>, scalar_prefetch = 4 : i64, scratch_operands = 4 : i64, tpu.core_type = #tpu.core_type<tc>, window_params = [{pipeline_mode = #tpu.pipeline_mode<synchronous>, transform_indices = @transform_0, window_bounds = array<i64: 8, 32>}, {pipeline_mode = #tpu.pipeline_mode<synchronous>, transform_indices = @transform_1, window_bounds = array<i64: 8, 16>}, {pipeline_mode = #tpu.pipeline_mode<synchronous>, transform_indices = @transform_2, window_bounds = array<i64: 64, 256>}, {pipeline_mode = #tpu.pipeline_mode<synchronous>, transform_indices = @transform_3, window_bounds = array<i64: 64, 256>}, {pipeline_mode = #tpu.pipeline_mode<synchronous>, transform_indices = @transform_4, window_bounds = array<i64: 1, 256>}, {pipeline_mode = #tpu.pipeline_mode<synchronous>, transform_indices = @transform_5, window_bounds = array<i64: 80, 32>}, {pipeline_mode = #tpu.pipeline_mode<synchronous>, transform_indices = @transform_6, window_bounds = array<i64: 1, 32>}, {pipeline_mode = #tpu.pipeline_mode<synchronous>, transform_indices = @transform_7, window_bounds = array<i64: 8, 32>}]} {
    %c0_i32 = arith.constant 0 : i32
    %0 = arith.cmpi eq, %arg0, %c0_i32 : i32
    %1 = arith.extui %0 : i1 to i32
    %c0_i32_0 = arith.constant 0 : i32
    %2 = arith.cmpi ne, %1, %c0_i32_0 : i32
    scf.if %2 {
      %cst_61 = arith.constant 0.000000e+00 : f32
      %106 = vector.broadcast %cst_61 : f32 to vector<8x32xf32>
      %c0_62 = arith.constant 0 : index
      %c0_63 = arith.constant 0 : index
      %107 = vector.load %arg12[%c0_62, %c0_63] : memref<8x32xf32, #tpu.memory_space<vmem>>, vector<8x32xf32>
      tpu.vector_store %arg12[%c0_62, %c0_63], %106 {strides = array<i32>} : memref<8x32xf32, #tpu.memory_space<vmem>>, vector<8x32xf32>,
      %cst_64 = arith.constant 0.000000e+00 : f32
      %108 = vector.broadcast %cst_64 : f32 to vector<8x64xf32>
      %c0_65 = arith.constant 0 : index
      %c0_66 = arith.constant 0 : index
      %109 = vector.load %arg13[%c0_65, %c0_66] : memref<8x64xf32, #tpu.memory_space<vmem>>, vector<8x64xf32>
      tpu.vector_store %arg13[%c0_65, %c0_66], %108 {strides = array<i32>} : memref<8x64xf32, #tpu.memory_space<vmem>>, vector<8x64xf32>,
      %cst_67 = arith.constant 0.000000e+00 : f32
      %110 = vector.broadcast %cst_67 : f32 to vector<1x64xf32>
      %c0_68 = arith.constant 0 : index
      %c0_69 = arith.constant 0 : index
      %111 = vector.load %arg15[%c0_68, %c0_69] : memref<1x64xf32, #tpu.memory_space<vmem>>, vector<1x64xf32>
      tpu.vector_store %arg15[%c0_68, %c0_69], %110 {strides = array<i32>} : memref<1x64xf32, #tpu.memory_space<vmem>>, vector<1x64xf32>,
      %cst_70 = arith.constant 0.000000e+00 : f32
      %112 = vector.broadcast %cst_70 : f32 to vector<1x64xf32>
      %c0_71 = arith.constant 0 : index
      %c0_72 = arith.constant 0 : index
      %113 = vector.load %arg16[%c0_71, %c0_72] : memref<1x64xf32, #tpu.memory_space<vmem>>, vector<1x64xf32>
      tpu.vector_store %arg16[%c0_71, %c0_72], %112 {strides = array<i32>} : memref<1x64xf32, #tpu.memory_space<vmem>>, vector<1x64xf32>,
    } else {
    }
    %3 = arith.index_cast %arg0 : i32 to index
    %4 = memref.load %arg1[%3] : memref<8xi32, #tpu.memory_space<smem>>
    %5 = arith.index_cast %arg0 : i32 to index
    %c0 = arith.constant 0 : index
    %6 = memref.load %arg2[%5, %c0] : memref<8x2xi32, #tpu.memory_space<smem>>
    %7 = arith.index_cast %arg0 : i32 to index
    %c1 = arith.constant 1 : index
    %8 = memref.load %arg2[%7, %c1] : memref<8x2xi32, #tpu.memory_space<smem>>
    %9 = arith.maxsi %6, %8 : i32
    %10 = arith.index_cast %4 : i32 to index
    %c0_1 = arith.constant 0 : index
    %11 = vector.load %arg5[%10, %c0_1] : memref<8x32xf32, #tpu.memory_space<vmem>>, vector<1x32xf32>
    %c0_2 = arith.constant 0 : index
    %c0_3 = arith.constant 0 : index
    %12 = vector.load %arg13[%c0_2, %c0_3] : memref<8x64xf32, #tpu.memory_space<vmem>>, vector<1x32xf32>
    tpu.vector_store %arg13[%c0_2, %c0_3], %11 {strides = array<i32>} : memref<8x64xf32, #tpu.memory_space<vmem>>, vector<1x32xf32>,
    %c0_4 = arith.constant 0 : index
    %c32 = arith.constant 32 : index
    %13 = vector.load %arg13[%c0_4, %c32] : memref<8x64xf32, #tpu.memory_space<vmem>>, vector<1x32xf32>
    tpu.vector_store %arg13[%c0_4, %c32], %11 {strides = array<i32>} : memref<8x64xf32, #tpu.memory_space<vmem>>, vector<1x32xf32>,
    %c1_i32 = arith.constant 1 : i32
    %14 = arith.cmpi sgt, %6, %c1_i32 : i32
    %15 = arith.extui %14 : i1 to i32
    %c0_i32_5 = arith.constant 0 : i32
    %16 = arith.cmpi ne, %15, %c0_i32_5 : i32
    scf.if %16 {
      %106 = arith.index_cast %arg0 : i32 to index
      %c0_61 = arith.constant 0 : index
      %107 = memref.load %arg3[%106, %c0_61] : memref<8x7xi32, #tpu.memory_space<smem>>
      %108 = arith.index_cast %107 : i32 to index
      %c0_62 = arith.constant 0 : index
      %109 = vector.load %arg12[%108, %c0_62] : memref<8x32xf32, #tpu.memory_space<vmem>>, vector<1x32xf32>
      %c1_63 = arith.constant 1 : index
      %c0_64 = arith.constant 0 : index
      %110 = vector.load %arg13[%c1_63, %c0_64] : memref<8x64xf32, #tpu.memory_space<vmem>>, vector<1x32xf32>
      tpu.vector_store %arg13[%c1_63, %c0_64], %109 {strides = array<i32>} : memref<8x64xf32, #tpu.memory_space<vmem>>, vector<1x32xf32>,
    } else {
    }
    %c1_i32_6 = arith.constant 1 : i32
    %17 = arith.cmpi sgt, %8, %c1_i32_6 : i32
    %18 = arith.extui %17 : i1 to i32
    %c0_i32_7 = arith.constant 0 : i32
    %19 = arith.cmpi ne, %18, %c0_i32_7 : i32
    scf.if %19 {
      %106 = arith.index_cast %arg0 : i32 to index
      %c0_61 = arith.constant 0 : index
      %107 = memref.load %arg4[%106, %c0_61] : memref<8x7xi32, #tpu.memory_space<smem>>
      %108 = arith.index_cast %107 : i32 to index
      %c0_62 = arith.constant 0 : index
      %109 = vector.load %arg12[%108, %c0_62] : memref<8x32xf32, #tpu.memory_space<vmem>>, vector<1x32xf32>
      %c1_63 = arith.constant 1 : index
      %c32_64 = arith.constant 32 : index
      %110 = vector.load %arg13[%c1_63, %c32_64] : memref<8x64xf32, #tpu.memory_space<vmem>>, vector<1x32xf32>
      tpu.vector_store %arg13[%c1_63, %c32_64], %109 {strides = array<i32>} : memref<8x64xf32, #tpu.memory_space<vmem>>, vector<1x32xf32>,
    } else {
    }
    %c2_i32 = arith.constant 2 : i32
    %20 = arith.cmpi sgt, %6, %c2_i32 : i32
    %21 = arith.extui %20 : i1 to i32
    %c0_i32_8 = arith.constant 0 : i32
    %22 = arith.cmpi ne, %21, %c0_i32_8 : i32
    scf.if %22 {
      %106 = arith.index_cast %arg0 : i32 to index
      %c1_61 = arith.constant 1 : index
      %107 = memref.load %arg3[%106, %c1_61] : memref<8x7xi32, #tpu.memory_space<smem>>
      %108 = arith.index_cast %107 : i32 to index
      %c0_62 = arith.constant 0 : index
      %109 = vector.load %arg12[%108, %c0_62] : memref<8x32xf32, #tpu.memory_space<vmem>>, vector<1x32xf32>
      %c2 = arith.constant 2 : index
      %c0_63 = arith.constant 0 : index
      %110 = vector.load %arg13[%c2, %c0_63] : memref<8x64xf32, #tpu.memory_space<vmem>>, vector<1x32xf32>
      tpu.vector_store %arg13[%c2, %c0_63], %109 {strides = array<i32>} : memref<8x64xf32, #tpu.memory_space<vmem>>, vector<1x32xf32>,
    } else {
    }
    %c2_i32_9 = arith.constant 2 : i32
    %23 = arith.cmpi sgt, %8, %c2_i32_9 : i32
    %24 = arith.extui %23 : i1 to i32
    %c0_i32_10 = arith.constant 0 : i32
    %25 = arith.cmpi ne, %24, %c0_i32_10 : i32
    scf.if %25 {
      %106 = arith.index_cast %arg0 : i32 to index
      %c1_61 = arith.constant 1 : index
      %107 = memref.load %arg4[%106, %c1_61] : memref<8x7xi32, #tpu.memory_space<smem>>
      %108 = arith.index_cast %107 : i32 to index
      %c0_62 = arith.constant 0 : index
      %109 = vector.load %arg12[%108, %c0_62] : memref<8x32xf32, #tpu.memory_space<vmem>>, vector<1x32xf32>
      %c2 = arith.constant 2 : index
      %c32_63 = arith.constant 32 : index
      %110 = vector.load %arg13[%c2, %c32_63] : memref<8x64xf32, #tpu.memory_space<vmem>>, vector<1x32xf32>
      tpu.vector_store %arg13[%c2, %c32_63], %109 {strides = array<i32>} : memref<8x64xf32, #tpu.memory_space<vmem>>, vector<1x32xf32>,
    } else {
    }
    %c3_i32 = arith.constant 3 : i32
    %26 = arith.cmpi sgt, %6, %c3_i32 : i32
    %27 = arith.extui %26 : i1 to i32
    %c0_i32_11 = arith.constant 0 : i32
    %28 = arith.cmpi ne, %27, %c0_i32_11 : i32
    scf.if %28 {
      %106 = arith.index_cast %arg0 : i32 to index
      %c2 = arith.constant 2 : index
      %107 = memref.load %arg3[%106, %c2] : memref<8x7xi32, #tpu.memory_space<smem>>
      %108 = arith.index_cast %107 : i32 to index
      %c0_61 = arith.constant 0 : index
      %109 = vector.load %arg12[%108, %c0_61] : memref<8x32xf32, #tpu.memory_space<vmem>>, vector<1x32xf32>
      %c3 = arith.constant 3 : index
      %c0_62 = arith.constant 0 : index
      %110 = vector.load %arg13[%c3, %c0_62] : memref<8x64xf32, #tpu.memory_space<vmem>>, vector<1x32xf32>
      tpu.vector_store %arg13[%c3, %c0_62], %109 {strides = array<i32>} : memref<8x64xf32, #tpu.memory_space<vmem>>, vector<1x32xf32>,
    } else {
    }
    %c3_i32_12 = arith.constant 3 : i32
    %29 = arith.cmpi sgt, %8, %c3_i32_12 : i32
    %30 = arith.extui %29 : i1 to i32
    %c0_i32_13 = arith.constant 0 : i32
    %31 = arith.cmpi ne, %30, %c0_i32_13 : i32
    scf.if %31 {
      %106 = arith.index_cast %arg0 : i32 to index
      %c2 = arith.constant 2 : index
      %107 = memref.load %arg4[%106, %c2] : memref<8x7xi32, #tpu.memory_space<smem>>
      %108 = arith.index_cast %107 : i32 to index
      %c0_61 = arith.constant 0 : index
      %109 = vector.load %arg12[%108, %c0_61] : memref<8x32xf32, #tpu.memory_space<vmem>>, vector<1x32xf32>
      %c3 = arith.constant 3 : index
      %c32_62 = arith.constant 32 : index
      %110 = vector.load %arg13[%c3, %c32_62] : memref<8x64xf32, #tpu.memory_space<vmem>>, vector<1x32xf32>
      tpu.vector_store %arg13[%c3, %c32_62], %109 {strides = array<i32>} : memref<8x64xf32, #tpu.memory_space<vmem>>, vector<1x32xf32>,
    } else {
    }
    %c4_i32 = arith.constant 4 : i32
    %32 = arith.cmpi sgt, %6, %c4_i32 : i32
    %33 = arith.extui %32 : i1 to i32
    %c0_i32_14 = arith.constant 0 : i32
    %34 = arith.cmpi ne, %33, %c0_i32_14 : i32
    scf.if %34 {
      %106 = arith.index_cast %arg0 : i32 to index
      %c3 = arith.constant 3 : index
      %107 = memref.load %arg3[%106, %c3] : memref<8x7xi32, #tpu.memory_space<smem>>
      %108 = arith.index_cast %107 : i32 to index
      %c0_61 = arith.constant 0 : index
      %109 = vector.load %arg12[%108, %c0_61] : memref<8x32xf32, #tpu.memory_space<vmem>>, vector<1x32xf32>
      %c4 = arith.constant 4 : index
      %c0_62 = arith.constant 0 : index
      %110 = vector.load %arg13[%c4, %c0_62] : memref<8x64xf32, #tpu.memory_space<vmem>>, vector<1x32xf32>
      tpu.vector_store %arg13[%c4, %c0_62], %109 {strides = array<i32>} : memref<8x64xf32, #tpu.memory_space<vmem>>, vector<1x32xf32>,
    } else {
    }
    %c4_i32_15 = arith.constant 4 : i32
    %35 = arith.cmpi sgt, %8, %c4_i32_15 : i32
    %36 = arith.extui %35 : i1 to i32
    %c0_i32_16 = arith.constant 0 : i32
    %37 = arith.cmpi ne, %36, %c0_i32_16 : i32
    scf.if %37 {
      %106 = arith.index_cast %arg0 : i32 to index
      %c3 = arith.constant 3 : index
      %107 = memref.load %arg4[%106, %c3] : memref<8x7xi32, #tpu.memory_space<smem>>
      %108 = arith.index_cast %107 : i32 to index
      %c0_61 = arith.constant 0 : index
      %109 = vector.load %arg12[%108, %c0_61] : memref<8x32xf32, #tpu.memory_space<vmem>>, vector<1x32xf32>
      %c4 = arith.constant 4 : index
      %c32_62 = arith.constant 32 : index
      %110 = vector.load %arg13[%c4, %c32_62] : memref<8x64xf32, #tpu.memory_space<vmem>>, vector<1x32xf32>
      tpu.vector_store %arg13[%c4, %c32_62], %109 {strides = array<i32>} : memref<8x64xf32, #tpu.memory_space<vmem>>, vector<1x32xf32>,
    } else {
    }
    %c5_i32 = arith.constant 5 : i32
    %38 = arith.cmpi sgt, %6, %c5_i32 : i32
    %39 = arith.extui %38 : i1 to i32
    %c0_i32_17 = arith.constant 0 : i32
    %40 = arith.cmpi ne, %39, %c0_i32_17 : i32
    scf.if %40 {
      %106 = arith.index_cast %arg0 : i32 to index
      %c4 = arith.constant 4 : index
      %107 = memref.load %arg3[%106, %c4] : memref<8x7xi32, #tpu.memory_space<smem>>
      %108 = arith.index_cast %107 : i32 to index
      %c0_61 = arith.constant 0 : index
      %109 = vector.load %arg12[%108, %c0_61] : memref<8x32xf32, #tpu.memory_space<vmem>>, vector<1x32xf32>
      %c5 = arith.constant 5 : index
      %c0_62 = arith.constant 0 : index
      %110 = vector.load %arg13[%c5, %c0_62] : memref<8x64xf32, #tpu.memory_space<vmem>>, vector<1x32xf32>
      tpu.vector_store %arg13[%c5, %c0_62], %109 {strides = array<i32>} : memref<8x64xf32, #tpu.memory_space<vmem>>, vector<1x32xf32>,
    } else {
    }
    %c5_i32_18 = arith.constant 5 : i32
    %41 = arith.cmpi sgt, %8, %c5_i32_18 : i32
    %42 = arith.extui %41 : i1 to i32
    %c0_i32_19 = arith.constant 0 : i32
    %43 = arith.cmpi ne, %42, %c0_i32_19 : i32
    scf.if %43 {
      %106 = arith.index_cast %arg0 : i32 to index
      %c4 = arith.constant 4 : index
      %107 = memref.load %arg4[%106, %c4] : memref<8x7xi32, #tpu.memory_space<smem>>
      %108 = arith.index_cast %107 : i32 to index
      %c0_61 = arith.constant 0 : index
      %109 = vector.load %arg12[%108, %c0_61] : memref<8x32xf32, #tpu.memory_space<vmem>>, vector<1x32xf32>
      %c5 = arith.constant 5 : index
      %c32_62 = arith.constant 32 : index
      %110 = vector.load %arg13[%c5, %c32_62] : memref<8x64xf32, #tpu.memory_space<vmem>>, vector<1x32xf32>
      tpu.vector_store %arg13[%c5, %c32_62], %109 {strides = array<i32>} : memref<8x64xf32, #tpu.memory_space<vmem>>, vector<1x32xf32>,
    } else {
    }
    %c6_i32 = arith.constant 6 : i32
    %44 = arith.cmpi sgt, %6, %c6_i32 : i32
    %45 = arith.extui %44 : i1 to i32
    %c0_i32_20 = arith.constant 0 : i32
    %46 = arith.cmpi ne, %45, %c0_i32_20 : i32
    scf.if %46 {
      %106 = arith.index_cast %arg0 : i32 to index
      %c5 = arith.constant 5 : index
      %107 = memref.load %arg3[%106, %c5] : memref<8x7xi32, #tpu.memory_space<smem>>
      %108 = arith.index_cast %107 : i32 to index
      %c0_61 = arith.constant 0 : index
      %109 = vector.load %arg12[%108, %c0_61] : memref<8x32xf32, #tpu.memory_space<vmem>>, vector<1x32xf32>
      %c6 = arith.constant 6 : index
      %c0_62 = arith.constant 0 : index
      %110 = vector.load %arg13[%c6, %c0_62] : memref<8x64xf32, #tpu.memory_space<vmem>>, vector<1x32xf32>
      tpu.vector_store %arg13[%c6, %c0_62], %109 {strides = array<i32>} : memref<8x64xf32, #tpu.memory_space<vmem>>, vector<1x32xf32>,
    } else {
    }
    %c6_i32_21 = arith.constant 6 : i32
    %47 = arith.cmpi sgt, %8, %c6_i32_21 : i32
    %48 = arith.extui %47 : i1 to i32
    %c0_i32_22 = arith.constant 0 : i32
    %49 = arith.cmpi ne, %48, %c0_i32_22 : i32
    scf.if %49 {
      %106 = arith.index_cast %arg0 : i32 to index
      %c5 = arith.constant 5 : index
      %107 = memref.load %arg4[%106, %c5] : memref<8x7xi32, #tpu.memory_space<smem>>
      %108 = arith.index_cast %107 : i32 to index
      %c0_61 = arith.constant 0 : index
      %109 = vector.load %arg12[%108, %c0_61] : memref<8x32xf32, #tpu.memory_space<vmem>>, vector<1x32xf32>
      %c6 = arith.constant 6 : index
      %c32_62 = arith.constant 32 : index
      %110 = vector.load %arg13[%c6, %c32_62] : memref<8x64xf32, #tpu.memory_space<vmem>>, vector<1x32xf32>
      tpu.vector_store %arg13[%c6, %c32_62], %109 {strides = array<i32>} : memref<8x64xf32, #tpu.memory_space<vmem>>, vector<1x32xf32>,
    } else {
    }
    %c7_i32 = arith.constant 7 : i32
    %50 = arith.cmpi sgt, %6, %c7_i32 : i32
    %51 = arith.extui %50 : i1 to i32
    %c0_i32_23 = arith.constant 0 : i32
    %52 = arith.cmpi ne, %51, %c0_i32_23 : i32
    scf.if %52 {
      %106 = arith.index_cast %arg0 : i32 to index
      %c6 = arith.constant 6 : index
      %107 = memref.load %arg3[%106, %c6] : memref<8x7xi32, #tpu.memory_space<smem>>
      %108 = arith.index_cast %107 : i32 to index
      %c0_61 = arith.constant 0 : index
      %109 = vector.load %arg12[%108, %c0_61] : memref<8x32xf32, #tpu.memory_space<vmem>>, vector<1x32xf32>
      %c7 = arith.constant 7 : index
      %c0_62 = arith.constant 0 : index
      %110 = vector.load %arg13[%c7, %c0_62] : memref<8x64xf32, #tpu.memory_space<vmem>>, vector<1x32xf32>
      tpu.vector_store %arg13[%c7, %c0_62], %109 {strides = array<i32>} : memref<8x64xf32, #tpu.memory_space<vmem>>, vector<1x32xf32>,
    } else {
    }
    %c7_i32_24 = arith.constant 7 : i32
    %53 = arith.cmpi sgt, %8, %c7_i32_24 : i32
    %54 = arith.extui %53 : i1 to i32
    %c0_i32_25 = arith.constant 0 : i32
    %55 = arith.cmpi ne, %54, %c0_i32_25 : i32
    scf.if %55 {
      %106 = arith.index_cast %arg0 : i32 to index
      %c6 = arith.constant 6 : index
      %107 = memref.load %arg4[%106, %c6] : memref<8x7xi32, #tpu.memory_space<smem>>
      %108 = arith.index_cast %107 : i32 to index
      %c0_61 = arith.constant 0 : index
      %109 = vector.load %arg12[%108, %c0_61] : memref<8x32xf32, #tpu.memory_space<vmem>>, vector<1x32xf32>
      %c7 = arith.constant 7 : index
      %c32_62 = arith.constant 32 : index
      %110 = vector.load %arg13[%c7, %c32_62] : memref<8x64xf32, #tpu.memory_space<vmem>>, vector<1x32xf32>
      tpu.vector_store %arg13[%c7, %c32_62], %109 {strides = array<i32>} : memref<8x64xf32, #tpu.memory_space<vmem>>, vector<1x32xf32>,
    } else {
    }
    %c0_26 = arith.constant 0 : index
    %c0_27 = arith.constant 0 : index
    %56 = vector.load %arg13[%c0_26, %c0_27] : memref<8x64xf32, #tpu.memory_space<vmem>>, vector<8x64xf32>
    %c0_28 = arith.constant 0 : index
    %c0_29 = arith.constant 0 : index
    %57 = vector.load %arg7[%c0_28, %c0_29] : memref<64x256xf32, #tpu.memory_space<vmem>>, vector<64x256xf32>
    %cst = arith.constant dense<0.000000e+00> : vector<8x256xf32>
    %58 = tpu.matmul %56, %57, %cst {dimension_numbers = #tpu.dot_dimension_numbers<[1], [0], [0], [1], [0, 0, 1, 1], [], []>} : vector<8x64xf32>, vector<64x256xf32>, vector<8x256xf32> -> vector<8x256xf32>
    %c0_30 = arith.constant 0 : index
    %c0_31 = arith.constant 0 : index
    %59 = vector.load %arg9[%c0_30, %c0_31] : memref<1x256xf32, #tpu.memory_space<vmem>>, vector<1x256xf32>
    %60 = vector.broadcast %59 : vector<1x256xf32> to vector<8x256xf32>
    %61 = arith.addf %58, %60 : vector<8x256xf32>
    %c0_32 = arith.constant 0 : index
    %c0_33 = arith.constant 0 : index
    %62 = vector.load %arg14[%c0_32, %c0_33] : memref<8x256xf32, #tpu.memory_space<vmem>>, vector<8x256xf32>
    tpu.vector_store %arg14[%c0_32, %c0_33], %61 {strides = array<i32>} : memref<8x256xf32, #tpu.memory_space<vmem>>, vector<8x256xf32>,
    %63 = tpu.iota {dimensions = array<i32: 1>} : vector<1x64xi32>
    %c32_i32 = arith.constant 32 : i32
    %64 = vector.broadcast %c32_i32 : i32 to vector<1x64xi32>
    %65 = arith.cmpi slt, %63, %64 : vector<1x64xi32>
    %66 = vector.broadcast %6 : i32 to vector<1x64xi32>
    %67 = vector.broadcast %8 : i32 to vector<1x64xi32>
    %68 = arith.select %65, %66, %67 : vector<1x64xi1>, vector<1x64xi32>
    %c0_i32_34 = arith.constant 0 : i32
    %69 = arith.cmpi sgt, %9, %c0_i32_34 : i32
    %70 = arith.extui %69 : i1 to i32
    %c0_i32_35 = arith.constant 0 : i32
    %71 = arith.cmpi ne, %70, %c0_i32_35 : i32
    scf.if %71 {
      %c0_61 = arith.constant 0 : index
      %c0_62 = arith.constant 0 : index
      %106 = vector.load %arg15[%c0_61, %c0_62] : memref<1x64xf32, #tpu.memory_space<vmem>>, vector<1x64xf32>
      %c0_63 = arith.constant 0 : index
      %c0_64 = arith.constant 0 : index
      %107 = vector.load %arg8[%c0_63, %c0_64] : memref<64x256xf32, #tpu.memory_space<vmem>>, vector<64x256xf32>
      %cst_65 = arith.constant dense<0.000000e+00> : vector<1x256xf32>
      %108 = tpu.matmul %106, %107, %cst_65 {dimension_numbers = #tpu.dot_dimension_numbers<[1], [0], [0], [1], [0, 0, 1, 1], [], []>} : vector<1x64xf32>, vector<64x256xf32>, vector<1x256xf32> -> vector<1x256xf32>
      %c0_66 = arith.constant 0 : index
      %c0_67 = arith.constant 0 : index
      %109 = vector.load %arg14[%c0_66, %c0_67] : memref<8x256xf32, #tpu.memory_space<vmem>>, vector<1x256xf32>
      %110 = arith.addf %109, %108 : vector<1x256xf32>
      %111 = vector.extract_strided_slice %110 {offsets = [0, 0], sizes = [1, 64], strides = [1, 1]} : vector<1x256xf32> to vector<1x64xf32>
      %112 = arith.negf %111 : vector<1x64xf32>
      %113 = math.exp %112 : vector<1x64xf32>
      %cst_68 = arith.constant 1.000000e+00 : f32
      %114 = vector.broadcast %cst_68 : f32 to vector<1x64xf32>
      %115 = arith.addf %114, %113 : vector<1x64xf32>
      %116 = arith.divf %114, %115 : vector<1x64xf32>
      %117 = vector.extract_strided_slice %110 {offsets = [0, 64], sizes = [1, 64], strides = [1, 1]} : vector<1x256xf32> to vector<1x64xf32>
      %118 = arith.negf %117 : vector<1x64xf32>
      %119 = math.exp %118 : vector<1x64xf32>
      %cst_69 = arith.constant 1.000000e+00 : f32
      %120 = vector.broadcast %cst_69 : f32 to vector<1x64xf32>
      %121 = arith.addf %120, %119 : vector<1x64xf32>
      %122 = arith.divf %120, %121 : vector<1x64xf32>
      %123 = vector.extract_strided_slice %110 {offsets = [0, 128], sizes = [1, 64], strides = [1, 1]} : vector<1x256xf32> to vector<1x64xf32>
      %124 = math.tanh %123 : vector<1x64xf32>
      %125 = vector.extract_strided_slice %110 {offsets = [0, 192], sizes = [1, 64], strides = [1, 1]} : vector<1x256xf32> to vector<1x64xf32>
      %126 = arith.negf %125 : vector<1x64xf32>
      %127 = math.exp %126 : vector<1x64xf32>
      %cst_70 = arith.constant 1.000000e+00 : f32
      %128 = vector.broadcast %cst_70 : f32 to vector<1x64xf32>
      %129 = arith.addf %128, %127 : vector<1x64xf32>
      %130 = arith.divf %128, %129 : vector<1x64xf32>
      %c0_71 = arith.constant 0 : index
      %c0_72 = arith.constant 0 : index
      %131 = vector.load %arg16[%c0_71, %c0_72] : memref<1x64xf32, #tpu.memory_space<vmem>>, vector<1x64xf32>
      %132 = arith.mulf %122, %131 : vector<1x64xf32>
      %133 = arith.mulf %116, %124 : vector<1x64xf32>
      %134 = arith.addf %132, %133 : vector<1x64xf32>
      %135 = math.tanh %134 : vector<1x64xf32>
      %136 = arith.mulf %130, %135 : vector<1x64xf32>
      %c0_i32_73 = arith.constant 0 : i32
      %137 = vector.broadcast %c0_i32_73 : i32 to vector<1x64xi32>
      %138 = arith.cmpi sgt, %68, %137 : vector<1x64xi32>
      %c0_74 = arith.constant 0 : index
      %c0_75 = arith.constant 0 : index
      %139 = vector.load %arg15[%c0_74, %c0_75] : memref<1x64xf32, #tpu.memory_space<vmem>>, vector<1x64xf32>
      %140 = arith.select %138, %136, %139 : vector<1x64xi1>, vector<1x64xf32>
      %c0_76 = arith.constant 0 : index
      %c0_77 = arith.constant 0 : index
      %141 = vector.load %arg15[%c0_76, %c0_77] : memref<1x64xf32, #tpu.memory_space<vmem>>, vector<1x64xf32>
      tpu.vector_store %arg15[%c0_76, %c0_77], %140 {strides = array<i32>} : memref<1x64xf32, #tpu.memory_space<vmem>>, vector<1x64xf32>,
      %c0_78 = arith.constant 0 : index
      %c0_79 = arith.constant 0 : index
      %142 = vector.load %arg16[%c0_78, %c0_79] : memref<1x64xf32, #tpu.memory_space<vmem>>, vector<1x64xf32>
      %143 = arith.select %138, %134, %142 : vector<1x64xi1>, vector<1x64xf32>
      %c0_80 = arith.constant 0 : index
      %c0_81 = arith.constant 0 : index
      %144 = vector.load %arg16[%c0_80, %c0_81] : memref<1x64xf32, #tpu.memory_space<vmem>>, vector<1x64xf32>
      tpu.vector_store %arg16[%c0_80, %c0_81], %143 {strides = array<i32>} : memref<1x64xf32, #tpu.memory_space<vmem>>, vector<1x64xf32>,
    } else {
    }
    %c1_i32_36 = arith.constant 1 : i32
    %72 = arith.cmpi sgt, %9, %c1_i32_36 : i32
    %73 = arith.extui %72 : i1 to i32
    %c0_i32_37 = arith.constant 0 : i32
    %74 = arith.cmpi ne, %73, %c0_i32_37 : i32
    scf.if %74 {
      %c0_61 = arith.constant 0 : index
      %c0_62 = arith.constant 0 : index
      %106 = vector.load %arg15[%c0_61, %c0_62] : memref<1x64xf32, #tpu.memory_space<vmem>>, vector<1x64xf32>
      %c0_63 = arith.constant 0 : index
      %c0_64 = arith.constant 0 : index
      %107 = vector.load %arg8[%c0_63, %c0_64] : memref<64x256xf32, #tpu.memory_space<vmem>>, vector<64x256xf32>
      %cst_65 = arith.constant dense<0.000000e+00> : vector<1x256xf32>
      %108 = tpu.matmul %106, %107, %cst_65 {dimension_numbers = #tpu.dot_dimension_numbers<[1], [0], [0], [1], [0, 0, 1, 1], [], []>} : vector<1x64xf32>, vector<64x256xf32>, vector<1x256xf32> -> vector<1x256xf32>
      %c1_66 = arith.constant 1 : index
      %c0_67 = arith.constant 0 : index
      %109 = vector.load %arg14[%c1_66, %c0_67] : memref<8x256xf32, #tpu.memory_space<vmem>>, vector<1x256xf32>
      %110 = arith.addf %109, %108 : vector<1x256xf32>
      %111 = vector.extract_strided_slice %110 {offsets = [0, 0], sizes = [1, 64], strides = [1, 1]} : vector<1x256xf32> to vector<1x64xf32>
      %112 = arith.negf %111 : vector<1x64xf32>
      %113 = math.exp %112 : vector<1x64xf32>
      %cst_68 = arith.constant 1.000000e+00 : f32
      %114 = vector.broadcast %cst_68 : f32 to vector<1x64xf32>
      %115 = arith.addf %114, %113 : vector<1x64xf32>
      %116 = arith.divf %114, %115 : vector<1x64xf32>
      %117 = vector.extract_strided_slice %110 {offsets = [0, 64], sizes = [1, 64], strides = [1, 1]} : vector<1x256xf32> to vector<1x64xf32>
      %118 = arith.negf %117 : vector<1x64xf32>
      %119 = math.exp %118 : vector<1x64xf32>
      %cst_69 = arith.constant 1.000000e+00 : f32
      %120 = vector.broadcast %cst_69 : f32 to vector<1x64xf32>
      %121 = arith.addf %120, %119 : vector<1x64xf32>
      %122 = arith.divf %120, %121 : vector<1x64xf32>
      %123 = vector.extract_strided_slice %110 {offsets = [0, 128], sizes = [1, 64], strides = [1, 1]} : vector<1x256xf32> to vector<1x64xf32>
      %124 = math.tanh %123 : vector<1x64xf32>
      %125 = vector.extract_strided_slice %110 {offsets = [0, 192], sizes = [1, 64], strides = [1, 1]} : vector<1x256xf32> to vector<1x64xf32>
      %126 = arith.negf %125 : vector<1x64xf32>
      %127 = math.exp %126 : vector<1x64xf32>
      %cst_70 = arith.constant 1.000000e+00 : f32
      %128 = vector.broadcast %cst_70 : f32 to vector<1x64xf32>
      %129 = arith.addf %128, %127 : vector<1x64xf32>
      %130 = arith.divf %128, %129 : vector<1x64xf32>
      %c0_71 = arith.constant 0 : index
      %c0_72 = arith.constant 0 : index
      %131 = vector.load %arg16[%c0_71, %c0_72] : memref<1x64xf32, #tpu.memory_space<vmem>>, vector<1x64xf32>
      %132 = arith.mulf %122, %131 : vector<1x64xf32>
      %133 = arith.mulf %116, %124 : vector<1x64xf32>
      %134 = arith.addf %132, %133 : vector<1x64xf32>
      %135 = math.tanh %134 : vector<1x64xf32>
      %136 = arith.mulf %130, %135 : vector<1x64xf32>
      %c1_i32_73 = arith.constant 1 : i32
      %137 = vector.broadcast %c1_i32_73 : i32 to vector<1x64xi32>
      %138 = arith.cmpi sgt, %68, %137 : vector<1x64xi32>
      %c0_74 = arith.constant 0 : index
      %c0_75 = arith.constant 0 : index
      %139 = vector.load %arg15[%c0_74, %c0_75] : memref<1x64xf32, #tpu.memory_space<vmem>>, vector<1x64xf32>
      %140 = arith.select %138, %136, %139 : vector<1x64xi1>, vector<1x64xf32>
      %c0_76 = arith.constant 0 : index
      %c0_77 = arith.constant 0 : index
      %141 = vector.load %arg15[%c0_76, %c0_77] : memref<1x64xf32, #tpu.memory_space<vmem>>, vector<1x64xf32>
      tpu.vector_store %arg15[%c0_76, %c0_77], %140 {strides = array<i32>} : memref<1x64xf32, #tpu.memory_space<vmem>>, vector<1x64xf32>,
      %c0_78 = arith.constant 0 : index
      %c0_79 = arith.constant 0 : index
      %142 = vector.load %arg16[%c0_78, %c0_79] : memref<1x64xf32, #tpu.memory_space<vmem>>, vector<1x64xf32>
      %143 = arith.select %138, %134, %142 : vector<1x64xi1>, vector<1x64xf32>
      %c0_80 = arith.constant 0 : index
      %c0_81 = arith.constant 0 : index
      %144 = vector.load %arg16[%c0_80, %c0_81] : memref<1x64xf32, #tpu.memory_space<vmem>>, vector<1x64xf32>
      tpu.vector_store %arg16[%c0_80, %c0_81], %143 {strides = array<i32>} : memref<1x64xf32, #tpu.memory_space<vmem>>, vector<1x64xf32>,
    } else {
    }
    %c2_i32_38 = arith.constant 2 : i32
    %75 = arith.cmpi sgt, %9, %c2_i32_38 : i32
    %76 = arith.extui %75 : i1 to i32
    %c0_i32_39 = arith.constant 0 : i32
    %77 = arith.cmpi ne, %76, %c0_i32_39 : i32
    scf.if %77 {
      %c0_61 = arith.constant 0 : index
      %c0_62 = arith.constant 0 : index
      %106 = vector.load %arg15[%c0_61, %c0_62] : memref<1x64xf32, #tpu.memory_space<vmem>>, vector<1x64xf32>
      %c0_63 = arith.constant 0 : index
      %c0_64 = arith.constant 0 : index
      %107 = vector.load %arg8[%c0_63, %c0_64] : memref<64x256xf32, #tpu.memory_space<vmem>>, vector<64x256xf32>
      %cst_65 = arith.constant dense<0.000000e+00> : vector<1x256xf32>
      %108 = tpu.matmul %106, %107, %cst_65 {dimension_numbers = #tpu.dot_dimension_numbers<[1], [0], [0], [1], [0, 0, 1, 1], [], []>} : vector<1x64xf32>, vector<64x256xf32>, vector<1x256xf32> -> vector<1x256xf32>
      %c2 = arith.constant 2 : index
      %c0_66 = arith.constant 0 : index
      %109 = vector.load %arg14[%c2, %c0_66] : memref<8x256xf32, #tpu.memory_space<vmem>>, vector<1x256xf32>
      %110 = arith.addf %109, %108 : vector<1x256xf32>
      %111 = vector.extract_strided_slice %110 {offsets = [0, 0], sizes = [1, 64], strides = [1, 1]} : vector<1x256xf32> to vector<1x64xf32>
      %112 = arith.negf %111 : vector<1x64xf32>
      %113 = math.exp %112 : vector<1x64xf32>
      %cst_67 = arith.constant 1.000000e+00 : f32
      %114 = vector.broadcast %cst_67 : f32 to vector<1x64xf32>
      %115 = arith.addf %114, %113 : vector<1x64xf32>
      %116 = arith.divf %114, %115 : vector<1x64xf32>
      %117 = vector.extract_strided_slice %110 {offsets = [0, 64], sizes = [1, 64], strides = [1, 1]} : vector<1x256xf32> to vector<1x64xf32>
      %118 = arith.negf %117 : vector<1x64xf32>
      %119 = math.exp %118 : vector<1x64xf32>
      %cst_68 = arith.constant 1.000000e+00 : f32
      %120 = vector.broadcast %cst_68 : f32 to vector<1x64xf32>
      %121 = arith.addf %120, %119 : vector<1x64xf32>
      %122 = arith.divf %120, %121 : vector<1x64xf32>
      %123 = vector.extract_strided_slice %110 {offsets = [0, 128], sizes = [1, 64], strides = [1, 1]} : vector<1x256xf32> to vector<1x64xf32>
      %124 = math.tanh %123 : vector<1x64xf32>
      %125 = vector.extract_strided_slice %110 {offsets = [0, 192], sizes = [1, 64], strides = [1, 1]} : vector<1x256xf32> to vector<1x64xf32>
      %126 = arith.negf %125 : vector<1x64xf32>
      %127 = math.exp %126 : vector<1x64xf32>
      %cst_69 = arith.constant 1.000000e+00 : f32
      %128 = vector.broadcast %cst_69 : f32 to vector<1x64xf32>
      %129 = arith.addf %128, %127 : vector<1x64xf32>
      %130 = arith.divf %128, %129 : vector<1x64xf32>
      %c0_70 = arith.constant 0 : index
      %c0_71 = arith.constant 0 : index
      %131 = vector.load %arg16[%c0_70, %c0_71] : memref<1x64xf32, #tpu.memory_space<vmem>>, vector<1x64xf32>
      %132 = arith.mulf %122, %131 : vector<1x64xf32>
      %133 = arith.mulf %116, %124 : vector<1x64xf32>
      %134 = arith.addf %132, %133 : vector<1x64xf32>
      %135 = math.tanh %134 : vector<1x64xf32>
      %136 = arith.mulf %130, %135 : vector<1x64xf32>
      %c2_i32_72 = arith.constant 2 : i32
      %137 = vector.broadcast %c2_i32_72 : i32 to vector<1x64xi32>
      %138 = arith.cmpi sgt, %68, %137 : vector<1x64xi32>
      %c0_73 = arith.constant 0 : index
      %c0_74 = arith.constant 0 : index
      %139 = vector.load %arg15[%c0_73, %c0_74] : memref<1x64xf32, #tpu.memory_space<vmem>>, vector<1x64xf32>
      %140 = arith.select %138, %136, %139 : vector<1x64xi1>, vector<1x64xf32>
      %c0_75 = arith.constant 0 : index
      %c0_76 = arith.constant 0 : index
      %141 = vector.load %arg15[%c0_75, %c0_76] : memref<1x64xf32, #tpu.memory_space<vmem>>, vector<1x64xf32>
      tpu.vector_store %arg15[%c0_75, %c0_76], %140 {strides = array<i32>} : memref<1x64xf32, #tpu.memory_space<vmem>>, vector<1x64xf32>,
      %c0_77 = arith.constant 0 : index
      %c0_78 = arith.constant 0 : index
      %142 = vector.load %arg16[%c0_77, %c0_78] : memref<1x64xf32, #tpu.memory_space<vmem>>, vector<1x64xf32>
      %143 = arith.select %138, %134, %142 : vector<1x64xi1>, vector<1x64xf32>
      %c0_79 = arith.constant 0 : index
      %c0_80 = arith.constant 0 : index
      %144 = vector.load %arg16[%c0_79, %c0_80] : memref<1x64xf32, #tpu.memory_space<vmem>>, vector<1x64xf32>
      tpu.vector_store %arg16[%c0_79, %c0_80], %143 {strides = array<i32>} : memref<1x64xf32, #tpu.memory_space<vmem>>, vector<1x64xf32>,
    } else {
    }
    %c3_i32_40 = arith.constant 3 : i32
    %78 = arith.cmpi sgt, %9, %c3_i32_40 : i32
    %79 = arith.extui %78 : i1 to i32
    %c0_i32_41 = arith.constant 0 : i32
    %80 = arith.cmpi ne, %79, %c0_i32_41 : i32
    scf.if %80 {
      %c0_61 = arith.constant 0 : index
      %c0_62 = arith.constant 0 : index
      %106 = vector.load %arg15[%c0_61, %c0_62] : memref<1x64xf32, #tpu.memory_space<vmem>>, vector<1x64xf32>
      %c0_63 = arith.constant 0 : index
      %c0_64 = arith.constant 0 : index
      %107 = vector.load %arg8[%c0_63, %c0_64] : memref<64x256xf32, #tpu.memory_space<vmem>>, vector<64x256xf32>
      %cst_65 = arith.constant dense<0.000000e+00> : vector<1x256xf32>
      %108 = tpu.matmul %106, %107, %cst_65 {dimension_numbers = #tpu.dot_dimension_numbers<[1], [0], [0], [1], [0, 0, 1, 1], [], []>} : vector<1x64xf32>, vector<64x256xf32>, vector<1x256xf32> -> vector<1x256xf32>
      %c3 = arith.constant 3 : index
      %c0_66 = arith.constant 0 : index
      %109 = vector.load %arg14[%c3, %c0_66] : memref<8x256xf32, #tpu.memory_space<vmem>>, vector<1x256xf32>
      %110 = arith.addf %109, %108 : vector<1x256xf32>
      %111 = vector.extract_strided_slice %110 {offsets = [0, 0], sizes = [1, 64], strides = [1, 1]} : vector<1x256xf32> to vector<1x64xf32>
      %112 = arith.negf %111 : vector<1x64xf32>
      %113 = math.exp %112 : vector<1x64xf32>
      %cst_67 = arith.constant 1.000000e+00 : f32
      %114 = vector.broadcast %cst_67 : f32 to vector<1x64xf32>
      %115 = arith.addf %114, %113 : vector<1x64xf32>
      %116 = arith.divf %114, %115 : vector<1x64xf32>
      %117 = vector.extract_strided_slice %110 {offsets = [0, 64], sizes = [1, 64], strides = [1, 1]} : vector<1x256xf32> to vector<1x64xf32>
      %118 = arith.negf %117 : vector<1x64xf32>
      %119 = math.exp %118 : vector<1x64xf32>
      %cst_68 = arith.constant 1.000000e+00 : f32
      %120 = vector.broadcast %cst_68 : f32 to vector<1x64xf32>
      %121 = arith.addf %120, %119 : vector<1x64xf32>
      %122 = arith.divf %120, %121 : vector<1x64xf32>
      %123 = vector.extract_strided_slice %110 {offsets = [0, 128], sizes = [1, 64], strides = [1, 1]} : vector<1x256xf32> to vector<1x64xf32>
      %124 = math.tanh %123 : vector<1x64xf32>
      %125 = vector.extract_strided_slice %110 {offsets = [0, 192], sizes = [1, 64], strides = [1, 1]} : vector<1x256xf32> to vector<1x64xf32>
      %126 = arith.negf %125 : vector<1x64xf32>
      %127 = math.exp %126 : vector<1x64xf32>
      %cst_69 = arith.constant 1.000000e+00 : f32
      %128 = vector.broadcast %cst_69 : f32 to vector<1x64xf32>
      %129 = arith.addf %128, %127 : vector<1x64xf32>
      %130 = arith.divf %128, %129 : vector<1x64xf32>
      %c0_70 = arith.constant 0 : index
      %c0_71 = arith.constant 0 : index
      %131 = vector.load %arg16[%c0_70, %c0_71] : memref<1x64xf32, #tpu.memory_space<vmem>>, vector<1x64xf32>
      %132 = arith.mulf %122, %131 : vector<1x64xf32>
      %133 = arith.mulf %116, %124 : vector<1x64xf32>
      %134 = arith.addf %132, %133 : vector<1x64xf32>
      %135 = math.tanh %134 : vector<1x64xf32>
      %136 = arith.mulf %130, %135 : vector<1x64xf32>
      %c3_i32_72 = arith.constant 3 : i32
      %137 = vector.broadcast %c3_i32_72 : i32 to vector<1x64xi32>
      %138 = arith.cmpi sgt, %68, %137 : vector<1x64xi32>
      %c0_73 = arith.constant 0 : index
      %c0_74 = arith.constant 0 : index
      %139 = vector.load %arg15[%c0_73, %c0_74] : memref<1x64xf32, #tpu.memory_space<vmem>>, vector<1x64xf32>
      %140 = arith.select %138, %136, %139 : vector<1x64xi1>, vector<1x64xf32>
      %c0_75 = arith.constant 0 : index
      %c0_76 = arith.constant 0 : index
      %141 = vector.load %arg15[%c0_75, %c0_76] : memref<1x64xf32, #tpu.memory_space<vmem>>, vector<1x64xf32>
      tpu.vector_store %arg15[%c0_75, %c0_76], %140 {strides = array<i32>} : memref<1x64xf32, #tpu.memory_space<vmem>>, vector<1x64xf32>,
      %c0_77 = arith.constant 0 : index
      %c0_78 = arith.constant 0 : index
      %142 = vector.load %arg16[%c0_77, %c0_78] : memref<1x64xf32, #tpu.memory_space<vmem>>, vector<1x64xf32>
      %143 = arith.select %138, %134, %142 : vector<1x64xi1>, vector<1x64xf32>
      %c0_79 = arith.constant 0 : index
      %c0_80 = arith.constant 0 : index
      %144 = vector.load %arg16[%c0_79, %c0_80] : memref<1x64xf32, #tpu.memory_space<vmem>>, vector<1x64xf32>
      tpu.vector_store %arg16[%c0_79, %c0_80], %143 {strides = array<i32>} : memref<1x64xf32, #tpu.memory_space<vmem>>, vector<1x64xf32>,
    } else {
    }
    %c4_i32_42 = arith.constant 4 : i32
    %81 = arith.cmpi sgt, %9, %c4_i32_42 : i32
    %82 = arith.extui %81 : i1 to i32
    %c0_i32_43 = arith.constant 0 : i32
    %83 = arith.cmpi ne, %82, %c0_i32_43 : i32
    scf.if %83 {
      %c0_61 = arith.constant 0 : index
      %c0_62 = arith.constant 0 : index
      %106 = vector.load %arg15[%c0_61, %c0_62] : memref<1x64xf32, #tpu.memory_space<vmem>>, vector<1x64xf32>
      %c0_63 = arith.constant 0 : index
      %c0_64 = arith.constant 0 : index
      %107 = vector.load %arg8[%c0_63, %c0_64] : memref<64x256xf32, #tpu.memory_space<vmem>>, vector<64x256xf32>
      %cst_65 = arith.constant dense<0.000000e+00> : vector<1x256xf32>
      %108 = tpu.matmul %106, %107, %cst_65 {dimension_numbers = #tpu.dot_dimension_numbers<[1], [0], [0], [1], [0, 0, 1, 1], [], []>} : vector<1x64xf32>, vector<64x256xf32>, vector<1x256xf32> -> vector<1x256xf32>
      %c4 = arith.constant 4 : index
      %c0_66 = arith.constant 0 : index
      %109 = vector.load %arg14[%c4, %c0_66] : memref<8x256xf32, #tpu.memory_space<vmem>>, vector<1x256xf32>
      %110 = arith.addf %109, %108 : vector<1x256xf32>
      %111 = vector.extract_strided_slice %110 {offsets = [0, 0], sizes = [1, 64], strides = [1, 1]} : vector<1x256xf32> to vector<1x64xf32>
      %112 = arith.negf %111 : vector<1x64xf32>
      %113 = math.exp %112 : vector<1x64xf32>
      %cst_67 = arith.constant 1.000000e+00 : f32
      %114 = vector.broadcast %cst_67 : f32 to vector<1x64xf32>
      %115 = arith.addf %114, %113 : vector<1x64xf32>
      %116 = arith.divf %114, %115 : vector<1x64xf32>
      %117 = vector.extract_strided_slice %110 {offsets = [0, 64], sizes = [1, 64], strides = [1, 1]} : vector<1x256xf32> to vector<1x64xf32>
      %118 = arith.negf %117 : vector<1x64xf32>
      %119 = math.exp %118 : vector<1x64xf32>
      %cst_68 = arith.constant 1.000000e+00 : f32
      %120 = vector.broadcast %cst_68 : f32 to vector<1x64xf32>
      %121 = arith.addf %120, %119 : vector<1x64xf32>
      %122 = arith.divf %120, %121 : vector<1x64xf32>
      %123 = vector.extract_strided_slice %110 {offsets = [0, 128], sizes = [1, 64], strides = [1, 1]} : vector<1x256xf32> to vector<1x64xf32>
      %124 = math.tanh %123 : vector<1x64xf32>
      %125 = vector.extract_strided_slice %110 {offsets = [0, 192], sizes = [1, 64], strides = [1, 1]} : vector<1x256xf32> to vector<1x64xf32>
      %126 = arith.negf %125 : vector<1x64xf32>
      %127 = math.exp %126 : vector<1x64xf32>
      %cst_69 = arith.constant 1.000000e+00 : f32
      %128 = vector.broadcast %cst_69 : f32 to vector<1x64xf32>
      %129 = arith.addf %128, %127 : vector<1x64xf32>
      %130 = arith.divf %128, %129 : vector<1x64xf32>
      %c0_70 = arith.constant 0 : index
      %c0_71 = arith.constant 0 : index
      %131 = vector.load %arg16[%c0_70, %c0_71] : memref<1x64xf32, #tpu.memory_space<vmem>>, vector<1x64xf32>
      %132 = arith.mulf %122, %131 : vector<1x64xf32>
      %133 = arith.mulf %116, %124 : vector<1x64xf32>
      %134 = arith.addf %132, %133 : vector<1x64xf32>
      %135 = math.tanh %134 : vector<1x64xf32>
      %136 = arith.mulf %130, %135 : vector<1x64xf32>
      %c4_i32_72 = arith.constant 4 : i32
      %137 = vector.broadcast %c4_i32_72 : i32 to vector<1x64xi32>
      %138 = arith.cmpi sgt, %68, %137 : vector<1x64xi32>
      %c0_73 = arith.constant 0 : index
      %c0_74 = arith.constant 0 : index
      %139 = vector.load %arg15[%c0_73, %c0_74] : memref<1x64xf32, #tpu.memory_space<vmem>>, vector<1x64xf32>
      %140 = arith.select %138, %136, %139 : vector<1x64xi1>, vector<1x64xf32>
      %c0_75 = arith.constant 0 : index
      %c0_76 = arith.constant 0 : index
      %141 = vector.load %arg15[%c0_75, %c0_76] : memref<1x64xf32, #tpu.memory_space<vmem>>, vector<1x64xf32>
      tpu.vector_store %arg15[%c0_75, %c0_76], %140 {strides = array<i32>} : memref<1x64xf32, #tpu.memory_space<vmem>>, vector<1x64xf32>,
      %c0_77 = arith.constant 0 : index
      %c0_78 = arith.constant 0 : index
      %142 = vector.load %arg16[%c0_77, %c0_78] : memref<1x64xf32, #tpu.memory_space<vmem>>, vector<1x64xf32>
      %143 = arith.select %138, %134, %142 : vector<1x64xi1>, vector<1x64xf32>
      %c0_79 = arith.constant 0 : index
      %c0_80 = arith.constant 0 : index
      %144 = vector.load %arg16[%c0_79, %c0_80] : memref<1x64xf32, #tpu.memory_space<vmem>>, vector<1x64xf32>
      tpu.vector_store %arg16[%c0_79, %c0_80], %143 {strides = array<i32>} : memref<1x64xf32, #tpu.memory_space<vmem>>, vector<1x64xf32>,
    } else {
    }
    %c5_i32_44 = arith.constant 5 : i32
    %84 = arith.cmpi sgt, %9, %c5_i32_44 : i32
    %85 = arith.extui %84 : i1 to i32
    %c0_i32_45 = arith.constant 0 : i32
    %86 = arith.cmpi ne, %85, %c0_i32_45 : i32
    scf.if %86 {
      %c0_61 = arith.constant 0 : index
      %c0_62 = arith.constant 0 : index
      %106 = vector.load %arg15[%c0_61, %c0_62] : memref<1x64xf32, #tpu.memory_space<vmem>>, vector<1x64xf32>
      %c0_63 = arith.constant 0 : index
      %c0_64 = arith.constant 0 : index
      %107 = vector.load %arg8[%c0_63, %c0_64] : memref<64x256xf32, #tpu.memory_space<vmem>>, vector<64x256xf32>
      %cst_65 = arith.constant dense<0.000000e+00> : vector<1x256xf32>
      %108 = tpu.matmul %106, %107, %cst_65 {dimension_numbers = #tpu.dot_dimension_numbers<[1], [0], [0], [1], [0, 0, 1, 1], [], []>} : vector<1x64xf32>, vector<64x256xf32>, vector<1x256xf32> -> vector<1x256xf32>
      %c5 = arith.constant 5 : index
      %c0_66 = arith.constant 0 : index
      %109 = vector.load %arg14[%c5, %c0_66] : memref<8x256xf32, #tpu.memory_space<vmem>>, vector<1x256xf32>
      %110 = arith.addf %109, %108 : vector<1x256xf32>
      %111 = vector.extract_strided_slice %110 {offsets = [0, 0], sizes = [1, 64], strides = [1, 1]} : vector<1x256xf32> to vector<1x64xf32>
      %112 = arith.negf %111 : vector<1x64xf32>
      %113 = math.exp %112 : vector<1x64xf32>
      %cst_67 = arith.constant 1.000000e+00 : f32
      %114 = vector.broadcast %cst_67 : f32 to vector<1x64xf32>
      %115 = arith.addf %114, %113 : vector<1x64xf32>
      %116 = arith.divf %114, %115 : vector<1x64xf32>
      %117 = vector.extract_strided_slice %110 {offsets = [0, 64], sizes = [1, 64], strides = [1, 1]} : vector<1x256xf32> to vector<1x64xf32>
      %118 = arith.negf %117 : vector<1x64xf32>
      %119 = math.exp %118 : vector<1x64xf32>
      %cst_68 = arith.constant 1.000000e+00 : f32
      %120 = vector.broadcast %cst_68 : f32 to vector<1x64xf32>
      %121 = arith.addf %120, %119 : vector<1x64xf32>
      %122 = arith.divf %120, %121 : vector<1x64xf32>
      %123 = vector.extract_strided_slice %110 {offsets = [0, 128], sizes = [1, 64], strides = [1, 1]} : vector<1x256xf32> to vector<1x64xf32>
      %124 = math.tanh %123 : vector<1x64xf32>
      %125 = vector.extract_strided_slice %110 {offsets = [0, 192], sizes = [1, 64], strides = [1, 1]} : vector<1x256xf32> to vector<1x64xf32>
      %126 = arith.negf %125 : vector<1x64xf32>
      %127 = math.exp %126 : vector<1x64xf32>
      %cst_69 = arith.constant 1.000000e+00 : f32
      %128 = vector.broadcast %cst_69 : f32 to vector<1x64xf32>
      %129 = arith.addf %128, %127 : vector<1x64xf32>
      %130 = arith.divf %128, %129 : vector<1x64xf32>
      %c0_70 = arith.constant 0 : index
      %c0_71 = arith.constant 0 : index
      %131 = vector.load %arg16[%c0_70, %c0_71] : memref<1x64xf32, #tpu.memory_space<vmem>>, vector<1x64xf32>
      %132 = arith.mulf %122, %131 : vector<1x64xf32>
      %133 = arith.mulf %116, %124 : vector<1x64xf32>
      %134 = arith.addf %132, %133 : vector<1x64xf32>
      %135 = math.tanh %134 : vector<1x64xf32>
      %136 = arith.mulf %130, %135 : vector<1x64xf32>
      %c5_i32_72 = arith.constant 5 : i32
      %137 = vector.broadcast %c5_i32_72 : i32 to vector<1x64xi32>
      %138 = arith.cmpi sgt, %68, %137 : vector<1x64xi32>
      %c0_73 = arith.constant 0 : index
      %c0_74 = arith.constant 0 : index
      %139 = vector.load %arg15[%c0_73, %c0_74] : memref<1x64xf32, #tpu.memory_space<vmem>>, vector<1x64xf32>
      %140 = arith.select %138, %136, %139 : vector<1x64xi1>, vector<1x64xf32>
      %c0_75 = arith.constant 0 : index
      %c0_76 = arith.constant 0 : index
      %141 = vector.load %arg15[%c0_75, %c0_76] : memref<1x64xf32, #tpu.memory_space<vmem>>, vector<1x64xf32>
      tpu.vector_store %arg15[%c0_75, %c0_76], %140 {strides = array<i32>} : memref<1x64xf32, #tpu.memory_space<vmem>>, vector<1x64xf32>,
      %c0_77 = arith.constant 0 : index
      %c0_78 = arith.constant 0 : index
      %142 = vector.load %arg16[%c0_77, %c0_78] : memref<1x64xf32, #tpu.memory_space<vmem>>, vector<1x64xf32>
      %143 = arith.select %138, %134, %142 : vector<1x64xi1>, vector<1x64xf32>
      %c0_79 = arith.constant 0 : index
      %c0_80 = arith.constant 0 : index
      %144 = vector.load %arg16[%c0_79, %c0_80] : memref<1x64xf32, #tpu.memory_space<vmem>>, vector<1x64xf32>
      tpu.vector_store %arg16[%c0_79, %c0_80], %143 {strides = array<i32>} : memref<1x64xf32, #tpu.memory_space<vmem>>, vector<1x64xf32>,
    } else {
    }
    %c6_i32_46 = arith.constant 6 : i32
    %87 = arith.cmpi sgt, %9, %c6_i32_46 : i32
    %88 = arith.extui %87 : i1 to i32
    %c0_i32_47 = arith.constant 0 : i32
    %89 = arith.cmpi ne, %88, %c0_i32_47 : i32
    scf.if %89 {
      %c0_61 = arith.constant 0 : index
      %c0_62 = arith.constant 0 : index
      %106 = vector.load %arg15[%c0_61, %c0_62] : memref<1x64xf32, #tpu.memory_space<vmem>>, vector<1x64xf32>
      %c0_63 = arith.constant 0 : index
      %c0_64 = arith.constant 0 : index
      %107 = vector.load %arg8[%c0_63, %c0_64] : memref<64x256xf32, #tpu.memory_space<vmem>>, vector<64x256xf32>
      %cst_65 = arith.constant dense<0.000000e+00> : vector<1x256xf32>
      %108 = tpu.matmul %106, %107, %cst_65 {dimension_numbers = #tpu.dot_dimension_numbers<[1], [0], [0], [1], [0, 0, 1, 1], [], []>} : vector<1x64xf32>, vector<64x256xf32>, vector<1x256xf32> -> vector<1x256xf32>
      %c6 = arith.constant 6 : index
      %c0_66 = arith.constant 0 : index
      %109 = vector.load %arg14[%c6, %c0_66] : memref<8x256xf32, #tpu.memory_space<vmem>>, vector<1x256xf32>
      %110 = arith.addf %109, %108 : vector<1x256xf32>
      %111 = vector.extract_strided_slice %110 {offsets = [0, 0], sizes = [1, 64], strides = [1, 1]} : vector<1x256xf32> to vector<1x64xf32>
      %112 = arith.negf %111 : vector<1x64xf32>
      %113 = math.exp %112 : vector<1x64xf32>
      %cst_67 = arith.constant 1.000000e+00 : f32
      %114 = vector.broadcast %cst_67 : f32 to vector<1x64xf32>
      %115 = arith.addf %114, %113 : vector<1x64xf32>
      %116 = arith.divf %114, %115 : vector<1x64xf32>
      %117 = vector.extract_strided_slice %110 {offsets = [0, 64], sizes = [1, 64], strides = [1, 1]} : vector<1x256xf32> to vector<1x64xf32>
      %118 = arith.negf %117 : vector<1x64xf32>
      %119 = math.exp %118 : vector<1x64xf32>
      %cst_68 = arith.constant 1.000000e+00 : f32
      %120 = vector.broadcast %cst_68 : f32 to vector<1x64xf32>
      %121 = arith.addf %120, %119 : vector<1x64xf32>
      %122 = arith.divf %120, %121 : vector<1x64xf32>
      %123 = vector.extract_strided_slice %110 {offsets = [0, 128], sizes = [1, 64], strides = [1, 1]} : vector<1x256xf32> to vector<1x64xf32>
      %124 = math.tanh %123 : vector<1x64xf32>
      %125 = vector.extract_strided_slice %110 {offsets = [0, 192], sizes = [1, 64], strides = [1, 1]} : vector<1x256xf32> to vector<1x64xf32>
      %126 = arith.negf %125 : vector<1x64xf32>
      %127 = math.exp %126 : vector<1x64xf32>
      %cst_69 = arith.constant 1.000000e+00 : f32
      %128 = vector.broadcast %cst_69 : f32 to vector<1x64xf32>
      %129 = arith.addf %128, %127 : vector<1x64xf32>
      %130 = arith.divf %128, %129 : vector<1x64xf32>
      %c0_70 = arith.constant 0 : index
      %c0_71 = arith.constant 0 : index
      %131 = vector.load %arg16[%c0_70, %c0_71] : memref<1x64xf32, #tpu.memory_space<vmem>>, vector<1x64xf32>
      %132 = arith.mulf %122, %131 : vector<1x64xf32>
      %133 = arith.mulf %116, %124 : vector<1x64xf32>
      %134 = arith.addf %132, %133 : vector<1x64xf32>
      %135 = math.tanh %134 : vector<1x64xf32>
      %136 = arith.mulf %130, %135 : vector<1x64xf32>
      %c6_i32_72 = arith.constant 6 : i32
      %137 = vector.broadcast %c6_i32_72 : i32 to vector<1x64xi32>
      %138 = arith.cmpi sgt, %68, %137 : vector<1x64xi32>
      %c0_73 = arith.constant 0 : index
      %c0_74 = arith.constant 0 : index
      %139 = vector.load %arg15[%c0_73, %c0_74] : memref<1x64xf32, #tpu.memory_space<vmem>>, vector<1x64xf32>
      %140 = arith.select %138, %136, %139 : vector<1x64xi1>, vector<1x64xf32>
      %c0_75 = arith.constant 0 : index
      %c0_76 = arith.constant 0 : index
      %141 = vector.load %arg15[%c0_75, %c0_76] : memref<1x64xf32, #tpu.memory_space<vmem>>, vector<1x64xf32>
      tpu.vector_store %arg15[%c0_75, %c0_76], %140 {strides = array<i32>} : memref<1x64xf32, #tpu.memory_space<vmem>>, vector<1x64xf32>,
      %c0_77 = arith.constant 0 : index
      %c0_78 = arith.constant 0 : index
      %142 = vector.load %arg16[%c0_77, %c0_78] : memref<1x64xf32, #tpu.memory_space<vmem>>, vector<1x64xf32>
      %143 = arith.select %138, %134, %142 : vector<1x64xi1>, vector<1x64xf32>
      %c0_79 = arith.constant 0 : index
      %c0_80 = arith.constant 0 : index
      %144 = vector.load %arg16[%c0_79, %c0_80] : memref<1x64xf32, #tpu.memory_space<vmem>>, vector<1x64xf32>
      tpu.vector_store %arg16[%c0_79, %c0_80], %143 {strides = array<i32>} : memref<1x64xf32, #tpu.memory_space<vmem>>, vector<1x64xf32>,
    } else {
    }
    %c7_i32_48 = arith.constant 7 : i32
    %90 = arith.cmpi sgt, %9, %c7_i32_48 : i32
    %91 = arith.extui %90 : i1 to i32
    %c0_i32_49 = arith.constant 0 : i32
    %92 = arith.cmpi ne, %91, %c0_i32_49 : i32
    scf.if %92 {
      %c0_61 = arith.constant 0 : index
      %c0_62 = arith.constant 0 : index
      %106 = vector.load %arg15[%c0_61, %c0_62] : memref<1x64xf32, #tpu.memory_space<vmem>>, vector<1x64xf32>
      %c0_63 = arith.constant 0 : index
      %c0_64 = arith.constant 0 : index
      %107 = vector.load %arg8[%c0_63, %c0_64] : memref<64x256xf32, #tpu.memory_space<vmem>>, vector<64x256xf32>
      %cst_65 = arith.constant dense<0.000000e+00> : vector<1x256xf32>
      %108 = tpu.matmul %106, %107, %cst_65 {dimension_numbers = #tpu.dot_dimension_numbers<[1], [0], [0], [1], [0, 0, 1, 1], [], []>} : vector<1x64xf32>, vector<64x256xf32>, vector<1x256xf32> -> vector<1x256xf32>
      %c7 = arith.constant 7 : index
      %c0_66 = arith.constant 0 : index
      %109 = vector.load %arg14[%c7, %c0_66] : memref<8x256xf32, #tpu.memory_space<vmem>>, vector<1x256xf32>
      %110 = arith.addf %109, %108 : vector<1x256xf32>
      %111 = vector.extract_strided_slice %110 {offsets = [0, 0], sizes = [1, 64], strides = [1, 1]} : vector<1x256xf32> to vector<1x64xf32>
      %112 = arith.negf %111 : vector<1x64xf32>
      %113 = math.exp %112 : vector<1x64xf32>
      %cst_67 = arith.constant 1.000000e+00 : f32
      %114 = vector.broadcast %cst_67 : f32 to vector<1x64xf32>
      %115 = arith.addf %114, %113 : vector<1x64xf32>
      %116 = arith.divf %114, %115 : vector<1x64xf32>
      %117 = vector.extract_strided_slice %110 {offsets = [0, 64], sizes = [1, 64], strides = [1, 1]} : vector<1x256xf32> to vector<1x64xf32>
      %118 = arith.negf %117 : vector<1x64xf32>
      %119 = math.exp %118 : vector<1x64xf32>
      %cst_68 = arith.constant 1.000000e+00 : f32
      %120 = vector.broadcast %cst_68 : f32 to vector<1x64xf32>
      %121 = arith.addf %120, %119 : vector<1x64xf32>
      %122 = arith.divf %120, %121 : vector<1x64xf32>
      %123 = vector.extract_strided_slice %110 {offsets = [0, 128], sizes = [1, 64], strides = [1, 1]} : vector<1x256xf32> to vector<1x64xf32>
      %124 = math.tanh %123 : vector<1x64xf32>
      %125 = vector.extract_strided_slice %110 {offsets = [0, 192], sizes = [1, 64], strides = [1, 1]} : vector<1x256xf32> to vector<1x64xf32>
      %126 = arith.negf %125 : vector<1x64xf32>
      %127 = math.exp %126 : vector<1x64xf32>
      %cst_69 = arith.constant 1.000000e+00 : f32
      %128 = vector.broadcast %cst_69 : f32 to vector<1x64xf32>
      %129 = arith.addf %128, %127 : vector<1x64xf32>
      %130 = arith.divf %128, %129 : vector<1x64xf32>
      %c0_70 = arith.constant 0 : index
      %c0_71 = arith.constant 0 : index
      %131 = vector.load %arg16[%c0_70, %c0_71] : memref<1x64xf32, #tpu.memory_space<vmem>>, vector<1x64xf32>
      %132 = arith.mulf %122, %131 : vector<1x64xf32>
      %133 = arith.mulf %116, %124 : vector<1x64xf32>
      %134 = arith.addf %132, %133 : vector<1x64xf32>
      %135 = math.tanh %134 : vector<1x64xf32>
      %136 = arith.mulf %130, %135 : vector<1x64xf32>
      %c7_i32_72 = arith.constant 7 : i32
      %137 = vector.broadcast %c7_i32_72 : i32 to vector<1x64xi32>
      %138 = arith.cmpi sgt, %68, %137 : vector<1x64xi32>
      %c0_73 = arith.constant 0 : index
      %c0_74 = arith.constant 0 : index
      %139 = vector.load %arg15[%c0_73, %c0_74] : memref<1x64xf32, #tpu.memory_space<vmem>>, vector<1x64xf32>
      %140 = arith.select %138, %136, %139 : vector<1x64xi1>, vector<1x64xf32>
      %c0_75 = arith.constant 0 : index
      %c0_76 = arith.constant 0 : index
      %141 = vector.load %arg15[%c0_75, %c0_76] : memref<1x64xf32, #tpu.memory_space<vmem>>, vector<1x64xf32>
      tpu.vector_store %arg15[%c0_75, %c0_76], %140 {strides = array<i32>} : memref<1x64xf32, #tpu.memory_space<vmem>>, vector<1x64xf32>,
      %c0_77 = arith.constant 0 : index
      %c0_78 = arith.constant 0 : index
      %142 = vector.load %arg16[%c0_77, %c0_78] : memref<1x64xf32, #tpu.memory_space<vmem>>, vector<1x64xf32>
      %143 = arith.select %138, %134, %142 : vector<1x64xi1>, vector<1x64xf32>
      %c0_79 = arith.constant 0 : index
      %c0_80 = arith.constant 0 : index
      %144 = vector.load %arg16[%c0_79, %c0_80] : memref<1x64xf32, #tpu.memory_space<vmem>>, vector<1x64xf32>
      tpu.vector_store %arg16[%c0_79, %c0_80], %143 {strides = array<i32>} : memref<1x64xf32, #tpu.memory_space<vmem>>, vector<1x64xf32>,
    } else {
    }
    %93 = arith.index_cast %4 : i32 to index
    %c0_50 = arith.constant 0 : index
    %94 = vector.load %arg6[%93, %c0_50] : memref<8x16xf32, #tpu.memory_space<vmem>>, vector<1x16xf32>
    %c0_51 = arith.constant 0 : index
    %c0_52 = arith.constant 0 : index
    %95 = vector.load %arg15[%c0_51, %c0_52] : memref<1x64xf32, #tpu.memory_space<vmem>>, vector<1x64xf32>
    %c0_53 = arith.constant 0 : index
    %c0_54 = arith.constant 0 : index
    %96 = vector.load %arg10[%c0_53, %c0_54] : memref<80x32xf32, #tpu.memory_space<vmem>>, vector<64x32xf32>
    %cst_55 = arith.constant dense<0.000000e+00> : vector<1x32xf32>
    %97 = tpu.matmul %95, %96, %cst_55 {dimension_numbers = #tpu.dot_dimension_numbers<[1], [0], [0], [1], [0, 0, 1, 1], [], []>} : vector<1x64xf32>, vector<64x32xf32>, vector<1x32xf32> -> vector<1x32xf32>
    %c64 = arith.constant 64 : index
    %c0_56 = arith.constant 0 : index
    %98 = vector.load %arg10[%c64, %c0_56] : memref<80x32xf32, #tpu.memory_space<vmem>>, vector<16x32xf32>
    %cst_57 = arith.constant dense<0.000000e+00> : vector<1x32xf32>
    %99 = tpu.matmul %94, %98, %cst_57 {dimension_numbers = #tpu.dot_dimension_numbers<[1], [0], [0], [1], [0, 0, 1, 1], [], []>} : vector<1x16xf32>, vector<16x32xf32>, vector<1x32xf32> -> vector<1x32xf32>
    %100 = arith.addf %97, %99 : vector<1x32xf32>
    %c0_58 = arith.constant 0 : index
    %c0_59 = arith.constant 0 : index
    %101 = vector.load %arg11[%c0_58, %c0_59] : memref<1x32xf32, #tpu.memory_space<vmem>>, vector<1x32xf32>
    %102 = arith.addf %100, %101 : vector<1x32xf32>
    %103 = math.tanh %102 : vector<1x32xf32>
    %104 = arith.index_cast %4 : i32 to index
    %c0_60 = arith.constant 0 : index
    %105 = vector.load %arg12[%104, %c0_60] : memref<8x32xf32, #tpu.memory_space<vmem>>, vector<1x32xf32>
    tpu.vector_store %arg12[%104, %c0_60], %103 {strides = array<i32>} : memref<8x32xf32, #tpu.memory_space<vmem>>, vector<1x32xf32>,
    return
  }
  func.func @transform_0(%arg0: i32, %arg1: memref<8xi32, #tpu.memory_space<smem>>, %arg2: memref<8x2xi32, #tpu.memory_space<smem>>, %arg3: memref<8x7xi32, #tpu.memory_space<smem>>, %arg4: memref<8x7xi32, #tpu.memory_space<smem>>) -> (i32, i32) {
    %c0_i32 = arith.constant 0 : i32
    %c0_i32_0 = arith.constant 0 : i32
    %c0_i32_1 = arith.constant 0 : i32
    return %c0_i32, %c0_i32_0 : i32, i32
  }
  func.func @transform_1(%arg0: i32, %arg1: memref<8xi32, #tpu.memory_space<smem>>, %arg2: memref<8x2xi32, #tpu.memory_space<smem>>, %arg3: memref<8x7xi32, #tpu.memory_space<smem>>, %arg4: memref<8x7xi32, #tpu.memory_space<smem>>) -> (i32, i32) {
    %c0_i32 = arith.constant 0 : i32
    %c0_i32_0 = arith.constant 0 : i32
    %c0_i32_1 = arith.constant 0 : i32
    return %c0_i32, %c0_i32_0 : i32, i32
  }
  func.func @transform_2(%arg0: i32, %arg1: memref<8xi32, #tpu.memory_space<smem>>, %arg2: memref<8x2xi32, #tpu.memory_space<smem>>, %arg3: memref<8x7xi32, #tpu.memory_space<smem>>, %arg4: memref<8x7xi32, #tpu.memory_space<smem>>) -> (i32, i32) {
    %c0_i32 = arith.constant 0 : i32
    %c0_i32_0 = arith.constant 0 : i32
    %c0_i32_1 = arith.constant 0 : i32
    return %c0_i32, %c0_i32_0 : i32, i32
  }
  func.func @transform_3(%arg0: i32, %arg1: memref<8xi32, #tpu.memory_space<smem>>, %arg2: memref<8x2xi32, #tpu.memory_space<smem>>, %arg3: memref<8x7xi32, #tpu.memory_space<smem>>, %arg4: memref<8x7xi32, #tpu.memory_space<smem>>) -> (i32, i32) {
    %c0_i32 = arith.constant 0 : i32
    %c0_i32_0 = arith.constant 0 : i32
    %c0_i32_1 = arith.constant 0 : i32
    return %c0_i32, %c0_i32_0 : i32, i32
  }
  func.func @transform_4(%arg0: i32, %arg1: memref<8xi32, #tpu.memory_space<smem>>, %arg2: memref<8x2xi32, #tpu.memory_space<smem>>, %arg3: memref<8x7xi32, #tpu.memory_space<smem>>, %arg4: memref<8x7xi32, #tpu.memory_space<smem>>) -> (i32, i32) {
    %c0_i32 = arith.constant 0 : i32
    %c0_i32_0 = arith.constant 0 : i32
    %c0_i32_1 = arith.constant 0 : i32
    return %c0_i32, %c0_i32_0 : i32, i32
  }
  func.func @transform_5(%arg0: i32, %arg1: memref<8xi32, #tpu.memory_space<smem>>, %arg2: memref<8x2xi32, #tpu.memory_space<smem>>, %arg3: memref<8x7xi32, #tpu.memory_space<smem>>, %arg4: memref<8x7xi32, #tpu.memory_space<smem>>) -> (i32, i32) {
    %c0_i32 = arith.constant 0 : i32
    %c0_i32_0 = arith.constant 0 : i32
    %c0_i32_1 = arith.constant 0 : i32
    return %c0_i32, %c0_i32_0 : i32, i32
  }
  func.func @transform_6(%arg0: i32, %arg1: memref<8xi32, #tpu.memory_space<smem>>, %arg2: memref<8x2xi32, #tpu.memory_space<smem>>, %arg3: memref<8x7xi32, #tpu.memory_space<smem>>, %arg4: memref<8x7xi32, #tpu.memory_space<smem>>) -> (i32, i32) {
    %c0_i32 = arith.constant 0 : i32
    %c0_i32_0 = arith.constant 0 : i32
    %c0_i32_1 = arith.constant 0 : i32
    return %c0_i32, %c0_i32_0 : i32, i32
  }
  func.func @transform_7(%arg0: i32, %arg1: memref<8xi32, #tpu.memory_space<smem>>, %arg2: memref<8x2xi32, #tpu.memory_space<smem>>, %arg3: memref<8x7xi32, #tpu.memory_space<smem>>, %arg4: memref<8x7xi32, #tpu.memory_space<smem>>) -> (i32, i32) {
    %c0_i32 = arith.constant 0 : i32
    %c0_i32_0 = arith.constant 0 : i32
    %c0_i32_1 = arith.constant 0 : i32
    return %c0_i32, %c0_i32_0 : i32, i32
  }
}

</mosaic_0001>

<bundles_post_ra>
// kernel: tpu_custom_call.1
= control target key start
LH: loop header
LB: loop body
LE: loop exit
PB: predicated region body
PF: predicated region fallthrough
CT: control target
= control target key end

     0   :  { %s2410_s23 = smov [#allocation7]   ;;  %s2411_s24 = smov [#allocation8]   ;;  %s3230_s0 = inlined_call_operand.hbm [shape: s32[8], index: 0, kind: input, shape index: {}]   ;;  %s3231_s4 = inlined_call_operand.hbm [shape: f32[8,32], index: 4, kind: input, shape index: {}]   ;;  %s3232_s5 = inlined_call_operand.hbm [shape: f32[8,16], index: 5, kind: input, shape index: {}]   ;;  %s3233_s6 = inlined_call_operand.hbm [shape: f32[64,256], index: 6, kind: input, shape index: {}]   ;;  %s3234_s7 = inlined_call_operand.vmem [shape: f32[64,256], index: 7, kind: input, shape index: {}]   ;;  %s3235_s8 = inlined_call_operand.hbm [shape: f32[1,256], index: 8, kind: input, shape index: {}]   ;;  %s3236_s9 = inlined_call_operand.vmem [shape: f32[80,32], index: 9, kind: input, shape index: {}]   ;;  %s3237_s10 = inlined_call_operand.vmem [shape: f32[1,32], index: 10, kind: input, shape index: {}]   ;;  %s3238_s11 = inlined_call_operand.hbm [shape: f32[8,32], index: 11, kind: output, shape index: {}]   ;;  %s3239_s1 = inlined_call_operand.vmem [shape: s32[8,2], index: 1, kind: input, shape index: {}]   ;;  %s3240_s2 = inlined_call_operand.hbm [shape: s32[8,7], index: 2, kind: input, shape index: {}]   ;;  %s3241_s3 = inlined_call_operand.hbm [shape: s32[8,7], index: 3, kind: input, shape index: {}]  }
   0x1   :  { %s17_s19 = sshll.u32 %s3230_s0, 4  ;;  %s22_s22 = sshll.u32 %s3239_s1, 4  ;;  %s18_s19 = int_to_ptr.hbm [resolvable:$true] %s17_s19  ;;  %s23_s22 = int_to_ptr.vmem [resolvable:$true] %s22_s22 }
   0x2   :  { %20 = dma.hbm_to_smem %s18_s19, 16, %s2410_s23, [#allocation6] }
   0x3   :  { %25 = dma.vmem_to_smem %s23_s22, 128, %s2411_s24, [#allocation6] }
   0x4   :  { %s27_s27 = sshll.u32 %s3240_s2, 4  ;;  %s32_s30 = sshll.u32 %s3241_s3, 4  ;;  %s28_s27 = int_to_ptr.hbm [resolvable:$true] %s27_s27  ;;  %s33_s30 = int_to_ptr.hbm [resolvable:$true] %s32_s30 }
   0x5   :  { %s2412_s0 = smov [#allocation9]   ;;  %s2413_s12 = smov [#allocation10]  }
   0x6   :  { %30 = dma.hbm_to_smem %s28_s27, 128, %s2412_s0, [#allocation6] }
   0x7   :  { %35 = dma.hbm_to_smem %s33_s30, 128, %s2413_s12, [#allocation6] }
   0x8   :  { %2388 = dma.done.wait [#allocation6], 400 }
   0x9   :  { %2389 = vsyncadd [#allocation6], 4294966896 }
   0xa   :  { %38 = sfence }
   0xb   :  { %39 = vsyncpa [#allocation12], 0 }
   0xc   :  { %40 = vsyncpa [#allocation15], 0 }
   0xd   :  { %41 = vsyncpa [#allocation18], 0 }
   0xe   :  { %42 = vsyncpa [#allocation13], 0  ;;  %s2510_s1 = smov 0  }
   0xf LB: > { %s245_s13 = sshll.u32 %s3232_s5, 4  ;;  %s2519_s14 = sadd.s32 4294967295, %s2408_s1   ;;  %s2408_s1 = sphi %s2510_s1, %s48_s1   ;;  %s246_s13 = int_to_ptr.hbm [resolvable:$true] %s245_s13 }
  0x10   : > { %p1937_p0 = scmp.ge.s32.totalorder %s2408_s1, 1  ;;  %p221_p1 = scmp.lt.s32.totalorder %s2408_s1, 8 }
  0x11   : > { %p1938_p2 = scmp.ne.s32.totalorder %s2519_s14, 0  ;;  %p2044_p3 = scmp.eq.s32.totalorder %s2519_s14, 0 }
  0x12   : > { %p2525_p4 = pnand %p1937_p0, %p221_p1  ;;  %s2414_s16 = smov [#allocation14]  }
  0x13   : > { %s247_s17 = sshll.u32 %s2414_s16, 4  ;;  %s233_s20 = sshll.u32 %s3231_s4, 4  ;;  %s248_s17 = int_to_ptr.vmem [resolvable:$true] %s247_s17  ;;  %s234_s20 = int_to_ptr.hbm [resolvable:$true] %s233_s20 }
  0x14   : > { %p2031_p5 = pneg %p2525_p4  ;;  %s256_s23 = sshll.u32 %s3233_s6, 4  ;;  %s257_s23 = int_to_ptr.hbm [resolvable:$true] %s256_s23 }
  0x15   : > { %s2415_s25 = smov [#allocation11]   ;;  %s2416_s27 = smov [#allocation16]  }
  0x16   : > { %p2539_p6 = pnand %p2044_p3, %p2031_p5  ;;  %s235_s26 = sshll.u32 %s2415_s25, 4  ;;  %s236_s26 = int_to_ptr.vmem [resolvable:$true] %s235_s26 }
  0x17   : > { %s258_s28 = sshll.u32 %s2416_s27, 4  ;;  %s2417_s29 = smov 256   ;;  %s259_s28 = int_to_ptr.vmem [resolvable:$true] %s258_s28 }
  0x18   : > { %2037 = dma.hbm_to_vmem [thread:$0]  (!%p2539_p6), %s246_s13, 128, %s248_s17, [#allocation15]  }
  0x19   : > { %2034 = dma.hbm_to_vmem [thread:$0]  (!%p2539_p6), %s234_s20, 128, %s236_s26, [#allocation12]  }
  0x1a   : > { %s2418_s30 = smov 16   ;;  %s274_s2 = sshll.u32 %s3235_s8, 4  ;;  %s275_s2 = int_to_ptr.hbm [resolvable:$true] %s274_s2 }
  0x1b   : > { %2040 = dma.hbm_to_vmem [thread:$0]  (!%p2539_p6), %s257_s23, 2048, %s259_s28, [#allocation15], %s2417_s29, %s2417_s29, %s2418_s30  }
  0x1c   : > { %s2419_s3 = smov [#allocation17]   ;;  %295 = sbr.rel (%p2525_p4) target bundleno = 4831 (0x12df), region = 48 }
  0x1d   : > { %s276_s16 = sshll.u32 %s2419_s3, 4  ;;  %s277_s16 = int_to_ptr.vmem [resolvable:$true] %s276_s16 }
  0x1e   : > { %2043 = dma.hbm_to_vmem [thread:$0]  (!%p2539_p6), %s275_s2, 32, %s277_s16, [#allocation18]  }
  0x21   : > { %2391 = dma.done.wait (%p2044_p3), [#allocation12], 128  }
  0x22   : > { %2393 = vsyncadd (%p2044_p3), [#allocation12], 4294967168 }
  0x23   : > { %2395 = dma.done.wait (%p2044_p3), [#allocation15], 2176  }
  0x24   : > { %2397 = vsyncadd (%p2044_p3), [#allocation15], 4294965120 }
  0x25   : > { %2399 = dma.done.wait (%p2044_p3), [#allocation18], 32  }
  0x26   : > { %2401 = vsyncadd (%p2044_p3), [#allocation18], 4294967264  ;;  %336 = sbr.rel (%p1938_p2) target bundleno = 48 (0x30), region = 68 }
  0x2b   : > { %vm337_vm0 = vcmask 261120   ;;  %vm339_vm1 = vcmask 523264   ;;  %vm341_vm2 = vcmask 516096   ;;  %v2420_v0 = vmov 0.0  }
  0x2c   : > { %338 = vst.msk [vmem:[#allocation19] sm:$0xff] %vm337_vm0, %v2420_v0 }
  0x2d   : > { %340 = vst.msk [vmem:[#allocation2] sm:$0xff] %vm339_vm1, %v2420_v0 }
  0x2e   : > { %342 = vst.msk [vmem:[#allocation4] sm:$0x1] %vm341_vm2, %v2420_v0 }
  0x2f   : > { %343 = vst.msk [vmem:[#allocation5] sm:$0x1] %vm341_vm2, %v2420_v0 }
  0x30 PF: > { %s2571_s13 = sld [smem:[#allocation7 + %s2519_s14]]  ;;  %s2574_s15 = sshll.u32 %s2519_s14, 7  ;;  %vm353_vm3 = vcmask 253952   ;;  %vm359_vm4 = vcmask 516352  }
  0x31   : > { %s2577_s17 = sld [smem:[#allocation8 + %s2574_s15]]  ;;  %s2580_s18 = sadd.s32 1, %s2574_s15 }
  0x32   : > { %s2583_s19 = sld [smem:[#allocation8 + %s2580_s18]]  ;;  %s2421_s21 = smov 32  }
  0x36   : > { %s351_s20 = scalar_lea.vmem [#allocation11], %s2571_s13 }
  0x37   : > { %v352_v1 = vld [vmem:[%s351_s20] sm:$0x1]  ;;  %p1949_p8 = scmp.le.s32.totalorder %s2577_s17, 1 }
  0x38   : > { %p349_p7 = scmp.gt.s32.totalorder %s2577_s17, %s2583_s19  ;;  %354 = vst.msk [vmem:[#allocation2] sm:$0x1] %vm353_vm3, %v352_v1  ;;  %356 = vrot.lane.b32.xlu0 %v352_v1, %s2421_s21  ;;  %s365_s23 = sld [smem:[#allocation9 + %s2574_s15]] (!%p1949_p8) }
  0x3a   : > { %s2591_s22 = scalar_select %p349_p7, %s2577_s17, %s2583_s19 }
  0x3e   : > { %s366_s24 = scalar_lea.vmem (!%p1949_p8), [#allocation19], %s365_s23 }
  0xa7   : > { %364 = sbr.rel (%p1949_p8) target bundleno = 174 (0xae), region = 72 }
  0xaa   : > { %v357_v2 = vpop.permute.xlu0 %356 }
  0xab   : > { %360 = vst.msk [vmem:[#allocation2] sm:$0x1] %vm359_vm4, %v357_v2 }
  0xac   : > { %v367_v3 = vld [vmem:[%s366_s24] sm:$0x1] }
  0xad   : > { %368 = vst.msk [vmem:[#allocation2 + $0x1] sm:$0x1] %vm353_vm3, %v367_v3 }
  0xae PF: > { %p1950_p9 = scmp.le.s32.totalorder %s2583_s19, 1 }
  0xaf   : > { %s373_s25 = sld [smem:[#allocation10 + %s2574_s15]] (!%p1950_p9)  ;;  %s2422_s27 = smov (!%p1950_p9), 32  }
  0xb0   : > { %372 = sbr.rel (%p1950_p9) target bundleno = 299 (0x12b), region = 76 }
  0xb5   : > { %s374_s26 = scalar_lea.vmem [#allocation19], %s373_s25 }
  0xb6   : > { %v375_v4 = vld [vmem:[%s374_s26] sm:$0x1] }
  0xb7   : > { %377 = vrot.lane.b32.xlu0 %v375_v4, %s2422_s27 }
 0x129   : > { %v378_v5 = vpop.permute.xlu0 %377 }
 0x12a   : > { %380 = vst.msk [vmem:[#allocation2 + $0x1] sm:$0x1] %vm359_vm4, %v378_v5 }
 0x12b PF: > { %p1951_p10 = scmp.le.s32.totalorder %s2577_s17, 2 }
 0x12c   : > { %s385_s28 = sld [smem:[#allocation9 + %s2580_s18]] (!%p1951_p10) }
 0x12d   : > { %384 = sbr.rel (%p1951_p10) target bundleno = 309 (0x135), region = 80 }
 0x132   : > { %s386_s29 = scalar_lea.vmem [#allocation19], %s385_s28 }
 0x133   : > { %v387_v6 = vld [vmem:[%s386_s29] sm:$0x1] }
 0x134   : > { %388 = vst.msk [vmem:[#allocation2 + $0x2] sm:$0x1] %vm353_vm3, %v387_v6 }
 0x135 PF: > { %p1952_p11 = scmp.le.s32.totalorder %s2583_s19, 2 }
 0x136   : > { %s393_s30 = sld [smem:[#allocation10 + %s2580_s18]] (!%p1952_p11)  ;;  %s2423_s12 = smov (!%p1952_p11), 32  }
 0x137   : > { %392 = sbr.rel (%p1952_p11) target bundleno = 434 (0x1b2), region = 84 }
 0x13c   : > { %s394_s0 = scalar_lea.vmem [#allocation19], %s393_s30 }
 0x13d   : > { %v395_v7 = vld [vmem:[%s394_s0] sm:$0x1] }
 0x13e   : > { %397 = vrot.lane.b32.xlu0 %v395_v7, %s2423_s12 }
 0x1b0   : > { %v398_v8 = vpop.permute.xlu0 %397 }
 0x1b1   : > { %400 = vst.msk [vmem:[#allocation2 + $0x2] sm:$0x1] %vm359_vm4, %v398_v8 }
 0x1b2 PF: > { %p1953_p12 = scmp.le.s32.totalorder %s2577_s17, 3 }
 0x1b3   : > { %s405_s2 = sadd.s32 (!%p1953_p12), 2, %s2574_s15 }
 0x1b4   : > { %404 = sbr.rel (%p1953_p12) target bundleno = 445 (0x1bd), region = 88  ;;  %s406_s3 = sld [smem:[#allocation9 + %s405_s2]] (!%p1953_p12) }
 0x1ba   : > { %s407_s16 = scalar_lea.vmem [#allocation19], %s406_s3 }
 0x1bb   : > { %v408_v9 = vld [vmem:[%s407_s16] sm:$0x1] }
 0x1bc   : > { %409 = vst.msk [vmem:[#allocation2 + $0x3] sm:$0x1] %vm353_vm3, %v408_v9 }
 0x1bd PF: > { %p1954_p13 = scmp.le.s32.totalorder %s2583_s19, 3 }
 0x1be   : > { %s414_s18 = sadd.s32 (!%p1954_p13), 2, %s2574_s15  ;;  %s2424_s23 = smov (!%p1954_p13), 32  }
 0x1bf   : > { %413 = sbr.rel (%p1954_p13) target bundleno = 571 (0x23b), region = 92  ;;  %s415_s20 = sld [smem:[#allocation10 + %s414_s18]] (!%p1954_p13) }
 0x1c5   : > { %s416_s21 = scalar_lea.vmem [#allocation19], %s415_s20 }
 0x1c6   : > { %v417_v10 = vld [vmem:[%s416_s21] sm:$0x1] }
 0x1c7   : > { %419 = vrot.lane.b32.xlu0 %v417_v10, %s2424_s23 }
 0x239   : > { %v420_v11 = vpop.permute.xlu0 %419 }
 0x23a   : > { %422 = vst.msk [vmem:[#allocation2 + $0x3] sm:$0x1] %vm359_vm4, %v420_v11 }
 0x23b PF: > { %p1955_p0 = scmp.le.s32.totalorder %s2577_s17, 4 }
 0x23c   : > { %s427_s24 = sadd.s32 (!%p1955_p0), 3, %s2574_s15 }
 0x23d   : > { %426 = sbr.rel (%p1955_p0) target bundleno = 582 (0x246), region = 96  ;;  %s428_s25 = sld [smem:[#allocation9 + %s427_s24]] (!%p1955_p0) }
 0x243   : > { %s429_s26 = scalar_lea.vmem [#allocation19], %s428_s25 }
 0x244   : > { %v430_v12 = vld [vmem:[%s429_s26] sm:$0x1] }
 0x245   : > { %431 = vst.msk [vmem:[#allocation2 + $0x4] sm:$0x1] %vm353_vm3, %v430_v12 }
 0x246 PF: > { %p1956_p1 = scmp.le.s32.totalorder %s2583_s19, 4 }
 0x247   : > { %s436_s27 = sadd.s32 (!%p1956_p1), 3, %s2574_s15  ;;  %s2425_s30 = smov (!%p1956_p1), 32  }
 0x248   : > { %435 = sbr.rel (%p1956_p1) target bundleno = 708 (0x2c4), region = 100  ;;  %s437_s28 = sld [smem:[#allocation10 + %s436_s27]] (!%p1956_p1) }
 0x24e   : > { %s438_s29 = scalar_lea.vmem [#allocation19], %s437_s28 }
 0x24f   : > { %v439_v13 = vld [vmem:[%s438_s29] sm:$0x1] }
 0x250   : > { %441 = vrot.lane.b32.xlu0 %v439_v13, %s2425_s30 }
 0x2c2   : > { %v442_v14 = vpop.permute.xlu0 %441 }
 0x2c3   : > { %444 = vst.msk [vmem:[#allocation2 + $0x4] sm:$0x1] %vm359_vm4, %v442_v14 }
 0x2c4 PF: > { %p1957_p2 = scmp.le.s32.totalorder %s2577_s17, 5 }
 0x2c5   : > { %s449_s0 = sadd.s32 (!%p1957_p2), 4, %s2574_s15 }
 0x2c6   : > { %448 = sbr.rel (%p1957_p2) target bundleno = 719 (0x2cf), region = 104  ;;  %s450_s12 = sld [smem:[#allocation9 + %s449_s0]] (!%p1957_p2) }
 0x2cc   : > { %s451_s2 = scalar_lea.vmem [#allocation19], %s450_s12 }
 0x2cd   : > { %v452_v15 = vld [vmem:[%s451_s2] sm:$0x1] }
 0x2ce   : > { %453 = vst.msk [vmem:[#allocation2 + $0x5] sm:$0x1] %vm353_vm3, %v452_v15 }
 0x2cf PF: > { %p1958_p3 = scmp.le.s32.totalorder %s2583_s19, 5 }
 0x2d0   : > { %s458_s3 = sadd.s32 (!%p1958_p3), 4, %s2574_s15  ;;  %s2426_s20 = smov (!%p1958_p3), 32  }
 0x2d1   : > { %457 = sbr.rel (%p1958_p3) target bundleno = 845 (0x34d), region = 108  ;;  %s459_s16 = sld [smem:[#allocation10 + %s458_s3]] (!%p1958_p3) }
 0x2d7   : > { %s460_s18 = scalar_lea.vmem [#allocation19], %s459_s16 }
 0x2d8   : > { %v461_v16 = vld [vmem:[%s460_s18] sm:$0x1] }
 0x2d9   : > { %463 = vrot.lane.b32.xlu0 %v461_v16, %s2426_s20 }
 0x34b   : > { %v464_v17 = vpop.permute.xlu0 %463 }
 0x34c   : > { %466 = vst.msk [vmem:[#allocation2 + $0x5] sm:$0x1] %vm359_vm4, %v464_v17 }
 0x34d PF: > { %p1959_p4 = scmp.le.s32.totalorder %s2577_s17, 6 }
 0x34e   : > { %s471_s21 = sadd.s32 (!%p1959_p4), 5, %s2574_s15 }
 0x34f   : > { %470 = sbr.rel (%p1959_p4) target bundleno = 856 (0x358), region = 112  ;;  %s472_s23 = sld [smem:[#allocation9 + %s471_s21]] (!%p1959_p4) }
 0x355   : > { %s473_s24 = scalar_lea.vmem [#allocation19], %s472_s23 }
 0x356   : > { %v474_v18 = vld [vmem:[%s473_s24] sm:$0x1] }
 0x357   : > { %475 = vst.msk [vmem:[#allocation2 + $0x6] sm:$0x1] %vm353_vm3, %v474_v18 }
 0x358 PF: > { %p1960_p5 = scmp.le.s32.totalorder %s2583_s19, 6 }
 0x359   : > { %s480_s25 = sadd.s32 (!%p1960_p5), 5, %s2574_s15  ;;  %s2427_s28 = smov (!%p1960_p5), 32  }
 0x35a   : > { %479 = sbr.rel (%p1960_p5) target bundleno = 982 (0x3d6), region = 116  ;;  %s481_s26 = sld [smem:[#allocation10 + %s480_s25]] (!%p1960_p5) }
 0x360   : > { %s482_s27 = scalar_lea.vmem [#allocation19], %s481_s26 }
 0x361   : > { %v483_v19 = vld [vmem:[%s482_s27] sm:$0x1] }
 0x362   : > { %485 = vrot.lane.b32.xlu0 %v483_v19, %s2427_s28 }
 0x3d4   : > { %v486_v20 = vpop.permute.xlu0 %485 }
 0x3d5   : > { %488 = vst.msk [vmem:[#allocation2 + $0x6] sm:$0x1] %vm359_vm4, %v486_v20 }
 0x3d6 PF: > { %p1961_p6 = scmp.le.s32.totalorder %s2577_s17, 7 }
 0x3d7   : > { %s493_s29 = sadd.s32 (!%p1961_p6), 6, %s2574_s15 }
 0x3d8   : > { %492 = sbr.rel (%p1961_p6) target bundleno = 993 (0x3e1), region = 120  ;;  %s494_s30 = sld [smem:[#allocation9 + %s493_s29]] (!%p1961_p6) }
 0x3de   : > { %s495_s0 = scalar_lea.vmem [#allocation19], %s494_s30 }
 0x3df   : > { %v496_v21 = vld [vmem:[%s495_s0] sm:$0x1] }
 0x3e0   : > { %497 = vst.msk [vmem:[#allocation2 + $0x7] sm:$0x1] %vm353_vm3, %v496_v21 }
 0x3e1 PF: > { %p1962_p7 = scmp.le.s32.totalorder %s2583_s19, 7 }
 0x3e2   : > { %s502_s12 = sadd.s32 (!%p1962_p7), 6, %s2574_s15  ;;  %s2428_s16 = smov (!%p1962_p7), 32  }
 0x3e3   : > { %501 = sbr.rel (%p1962_p7) target bundleno = 1119 (0x45f), region = 124  ;;  %s503_s2 = sld [smem:[#allocation10 + %s502_s12]] (!%p1962_p7) }
 0x3e9   : > { %s504_s3 = scalar_lea.vmem [#allocation19], %s503_s2 }
 0x3ea   : > { %v505_v22 = vld [vmem:[%s504_s3] sm:$0x1] }
 0x3eb   : > { %507 = vrot.lane.b32.xlu0 %v505_v22, %s2428_s16 }
 0x45d   : > { %v508_v23 = vpop.permute.xlu0 %507 }
 0x45e   : > { %510 = vst.msk [vmem:[#allocation2 + $0x7] sm:$0x1] %vm359_vm4, %v508_v23 }
 0x45f PF: > { %v526_v24 = vld [vmem:[#allocation16 + $0x70] sm:$0xff]  ;;  %v527_v25 = vld [vmem:[#allocation16 + $0x78] sm:$0xff]  ;;  %v524_v26 = vld [vmem:[#allocation16 + $0x60] sm:$0xff]  ;;  %vm534_vm5 = vcmask 523264   ;;  %v580_v41 = vlaneseq  ;;  %v583_v43 = vstv %s2577_s17  ;;  %v584_v44 = vstv %s2583_s19  ;;  %p1965_p8 = scmp.le.s32.totalorder %s2591_s22, 0 }
 0x460   : > { %546 = vmatpush.msra.mxu0 %v526_v24  ;;  %566 = vmatpush.msra.mxu1 %v527_v25  ;;  %v525_v27 = vld [vmem:[#allocation16 + $0x68] sm:$0xff]  ;;  %v522_v28 = vld [vmem:[#allocation16 + $0x50] sm:$0xff]  ;;  %v523_v29 = vld [vmem:[#allocation16 + $0x58] sm:$0xff]  ;;  %s2429_s18 = smov (!%p1965_p8), 64  }
 0x461   : > { %v520_v30 = vld [vmem:[#allocation16 + $0x40] sm:$0xff]  ;;  %v521_v31 = vld [vmem:[#allocation16 + $0x48] sm:$0xff]  ;;  %v518_v32 = vld [vmem:[#allocation16 + $0x30] sm:$0xff]  ;;  %v581_v42 = vand.u32 127, %v580_v41 }
 0x462   : > { %547 = vmatpush.msra.mxu0 %v524_v26  ;;  %567 = vmatpush.msra.mxu1 %v525_v27  ;;  %v519_v33 = vld [vmem:[#allocation16 + $0x38] sm:$0xff]  ;;  %v516_v34 = vld [vmem:[#allocation16 + $0x20] sm:$0xff]  ;;  %v517_v35 = vld [vmem:[#allocation16 + $0x28] sm:$0xff] }
 0x463   : > { %v514_v36 = vld [vmem:[#allocation16 + $0x10] sm:$0xff]  ;;  %v515_v37 = vld [vmem:[#allocation16 + $0x18] sm:$0xff]  ;;  %v512_v38 = vld [vmem:[#allocation16] sm:$0xff]  ;;  %vm582_vm6 = vcmp.lt.s32.totalorder %v581_v42, 32 }
 0x464   : > { %548 = vmatpush.msra.mxu0 %v522_v28  ;;  %568 = vmatpush.msra.mxu1 %v523_v29  ;;  %v513_v39 = vld [vmem:[#allocation16 + $0x8] sm:$0xff]  ;;  %v2640_v45 = vsel %vm582_vm6, %v583_v43, %v584_v44  ;;  %v528_v46 = vld [vmem:[#allocation17] sm:$0x3] }
 0x465   : > { %v511_v40 = vld [vmem:[#allocation2] sm:$0xff]  ;;  %v530_v47 = vperm.slane %v528_v46, 0  ;;  %v531_v48 = vperm.slane %v528_v46, 1 }
 0x466   : > { %549 = vmatpush.msra.mxu0 %v520_v30  ;;  %569 = vmatpush.msra.mxu1 %v521_v31 }
 0x468   : > { %550 = vmatpush.msra.mxu0 %v518_v32  ;;  %570 = vmatpush.msra.mxu1 %v519_v33 }
 0x46a   : > { %551 = vmatpush.msra.mxu0 %v516_v34  ;;  %571 = vmatpush.msra.mxu1 %v517_v35 }
 0x46c   : > { %552 = vmatpush.msra.mxu0 %v514_v36  ;;  %572 = vmatpush.msra.mxu1 %v515_v37 }
 0x46e   : > { %553 = vmatpush.msra.mxu0 %v512_v38  ;;  %573 = vmatpush.msra.mxu1 %v513_v39 }
 0x46f   : > { %1963 = vmatmul.msk.f32.vlgmr.msra.gmra.mxu0 %vm534_vm5, %v511_v40  ;;  %1964 = vmatmul.msk.f32.vlgmr.msra.gmra.mxu1 %vm534_vm5, %v511_v40 }
 0x4ec   : > { %v555_v49 = vpop.f32.mrf.mxu0  ;;  %v575_v50 = vpop.f32.mrf.mxu1  ;;  %589 = sbr.rel (%p1965_p8) target bundleno = 1685 (0x695), region = 128 }
 0x4ed   : > { %v556_v51 = vadd.f32 %v555_v49, %v530_v47  ;;  %v576_v52 = vadd.f32 %v575_v50, %v531_v48 }
 0x4ef   : > { %578 = vst [vmem:[#allocation3] sm:$0xff] %v556_v51 }
 0x4f0   : > { %579 = vst [vmem:[#allocation3 + $0x8] sm:$0xff] %v576_v52 }
 0x4f1   : > { %v606_v53 = vld [vmem:[%s3234_s7 + $0x78] sm:$0xff]  ;;  %v605_v54 = vld [vmem:[%s3234_s7 + $0x70] sm:$0xff]  ;;  %v604_v55 = vld [vmem:[%s3234_s7 + $0x68] sm:$0xff]  ;;  %vm654_vm7 = vcmask 1040384   ;;  %vm722_vm12 = vcmp.gt.s32.totalorder %v2640_v45, 0  ;;  %vm724_vm13 = vcmask 516096  }
 0x4f2   : > { %638 = vmatpush.msra.mxu1 %v606_v53  ;;  %618 = vmatpush.msra.mxu0 %v605_v54  ;;  %v603_v56 = vld [vmem:[%s3234_s7 + $0x60] sm:$0xff]  ;;  %v602_v57 = vld [vmem:[%s3234_s7 + $0x58] sm:$0xff]  ;;  %v601_v58 = vld [vmem:[%s3234_s7 + $0x50] sm:$0xff] }
 0x4f3   : > { %v600_v59 = vld [vmem:[%s3234_s7 + $0x48] sm:$0xff]  ;;  %v599_v60 = vld [vmem:[%s3234_s7 + $0x40] sm:$0xff]  ;;  %v704_v61 = vld [vmem:[#allocation5] sm:$0x1] }
 0x4f4   : > { %639 = vmatpush.msra.mxu1 %v604_v55  ;;  %619 = vmatpush.msra.mxu0 %v603_v56  ;;  %v598_v62 = vld [vmem:[%s3234_s7 + $0x38] sm:$0xff]  ;;  %v597_v63 = vld [vmem:[%s3234_s7 + $0x30] sm:$0xff]  ;;  %v596_v0 = vld [vmem:[%s3234_s7 + $0x28] sm:$0xff] }
 0x4f5   : > { %706 = vrot.lane.b32.xlu0 %v704_v61, %s2429_s18  ;;  %v595_v1 = vld [vmem:[%s3234_s7 + $0x20] sm:$0xff]  ;;  %v594_v2 = vld [vmem:[%s3234_s7 + $0x18] sm:$0xff]  ;;  %v593_v3 = vld [vmem:[%s3234_s7 + $0x10] sm:$0xff] }
 0x4f6   : > { %640 = vmatpush.msra.mxu1 %v602_v57  ;;  %620 = vmatpush.msra.mxu0 %v601_v58  ;;  %v592_v4 = vld [vmem:[%s3234_s7 + $0x8] sm:$0xff]  ;;  %v591_v5 = vld [vmem:[%s3234_s7] sm:$0xff]  ;;  %v2692_v6 = vld [vmem:[#allocation4] sm:$0x1] }
 0x4f7   : > { %v650_v10 = vld [vmem:[#allocation3] ss:$8 sm:$0x3]  ;;  %v726_v40 = vld [vmem:[#allocation5] sm:$0x1] }
 0x4f8   : > { %641 = vmatpush.msra.mxu1 %v600_v59  ;;  %621 = vmatpush.msra.mxu0 %v599_v60 }
 0x4fa   : > { %642 = vmatpush.msra.mxu1 %v598_v62  ;;  %622 = vmatpush.msra.mxu0 %v597_v63 }
 0x4fc   : > { %643 = vmatpush.msra.mxu1 %v596_v0  ;;  %623 = vmatpush.msra.mxu0 %v595_v1 }
 0x4fe   : > { %644 = vmatpush.msra.mxu1 %v594_v2  ;;  %624 = vmatpush.msra.mxu0 %v593_v3 }
 0x500   : > { %645 = vmatpush.msra.mxu1 %v592_v4  ;;  %625 = vmatpush.msra.mxu0 %v591_v5 }
 0x501   : > { %1967 = vmatmul.msk.f32.vlgmr.msra.gmra.mxu1 %vm534_vm5, %v2692_v6  ;;  %1966 = vmatmul.msk.f32.vlgmr.msra.gmra.mxu0 %vm534_vm5, %v2692_v6 }
 0x567   : > { %v707_v29 = vpop.permute.xlu0 %706 }
 0x57e   : > { %v647_v7 = vpop.f32.mrf.mxu1  ;;  %v627_v8 = vpop.f32.mrf.mxu0 }
 0x57f   : > { %v653_v9 = vrot.slane %v647_v7, 7 }
 0x581   : > { %v655_v11 = vsel %vm654_vm7, %v627_v8, %v653_v9 }
 0x582   : > { %v657_v12 = vadd.f32 %v655_v11, %v650_v10 }
 0x584   : > { %v1968_v13 = vmul.f32 -1.442695, %v657_v12  ;;  %681 = vrot.lane.b32.xlu1 %v657_v12, %s2429_s18  ;;  %v678_v17 = vrot.slane %v657_v12, 1 }
 0x586   : > { %2090 = vpow2.f32 %v1968_v13 }
 0x58c   : > { %v2091_v14 = vpop.eup %2090 }
 0x58d   : > { %v661_v15 = vadd.f32 1.0, %v2091_v14 }
 0x58f   : > { %2092 = vrcp.f32 %v661_v15  ;;  %v673_v20 = vand.u32 2147483648, %v661_v15  ;;  %v671_v22 = vand.u32 2147483647, %v661_v15  ;;  %vm667_vm9 = vweird.f32 %v661_v15 }
 0x590   : > { %2094 = vtanh.f32 %v678_v17 }
 0x591   : > { %v674_v24 = vor.u32 1.1754944e-38, %v673_v20  ;;  %vm672_vm11 = vcmp.eq.f32.partialorder %v671_v22, 8.507059e+37 }
 0x595   : > { %v2093_v16 = vpop.eup %2092 }
 0x596   : > { %v663_v18 = vmul.f32 %v2093_v16, %v661_v15  ;;  %vm668_vm8 = vweird.f32 %v2093_v16  ;;  %v2095_v26 = vpop.eup %2094 }
 0x597   : > { %vm669_vm10 = vmor %vm667_vm9, %vm668_vm8 }
 0x598   : > { %v664_v19 = vsub.f32 1.0, %v663_v18 }
 0x59a   : > { %v665_v21 = vmul.f32 %v2093_v16, %v664_v19 }
 0x59c   : > { %v666_v23 = vadd.f32 %v2093_v16, %v665_v21 }
 0x59e   : > { %v670_v25 = vsel %vm669_vm10, %v2093_v16, %v666_v23 }
 0x59f   : > { %v675_v27 = vsel %vm672_vm11, %v674_v24, %v670_v25 }
 0x5a0   : > { %v710_v28 = vmul.f32 %v2095_v26, %v675_v27  ;;  %v709_v30 = vmul.f32 %v707_v29, %v675_v27 }
 0x5a2   : > { %712 = vrot.lane.b32.xlu0 %v710_v28, %s2429_s18 }
 0x5f6   : > { %v682_v35 = vpop.permute.xlu1 %681 }
 0x5f7   : > { %v683_v36 = vrot.slane %v682_v35, 1 }
 0x5f9   : > { %v1969_v37 = vmul.f32 -1.442695, %v683_v36 }
 0x614   : > { %v713_v31 = vpop.permute.xlu0 %712 }
 0x615   : > { %v715_v32 = vadd.f32 %v713_v31, %v709_v30 }
 0x617   : > { %2096 = vtanh.f32 %v715_v32  ;;  %v728_v33 = vperm.slane %v715_v32, 0 }
 0x618   : > { %2098 = vpow2.f32 %v1969_v37 }
 0x619   : > { %729 = vrot.lane.b32.xlu2 %v728_v33, %s2429_s18 }
 0x61d   : > { %v2097_v34 = vpop.eup %2096 }
 0x61e   : > { %718 = vrot.lane.b32.xlu1 %v2097_v34, %s2429_s18  ;;  %v2099_v38 = vpop.eup %2098 }
 0x61f   : > { %v688_v39 = vadd.f32 1.0, %v2099_v38 }
 0x621   : > { %2100 = vrcp.f32 %v688_v39  ;;  %v700_v49 = vand.u32 2147483648, %v688_v39  ;;  %vm694_vm15 = vweird.f32 %v688_v39  ;;  %v698_v50 = vand.u32 2147483647, %v688_v39 }
 0x623   : > { %v701_v52 = vor.u32 1.1754944e-38, %v700_v49  ;;  %vm699_vm1 = vcmp.eq.f32.partialorder %v698_v50, 8.507059e+37 }
 0x627   : > { %v2101_v43 = vpop.eup %2100 }
 0x628   : > { %v690_v44 = vmul.f32 %v2101_v43, %v688_v39  ;;  %vm695_vm14 = vweird.f32 %v2101_v43 }
 0x629   : > { %vm696_vm0 = vmor %vm694_vm15, %vm695_vm14 }
 0x62a   : > { %v691_v46 = vsub.f32 1.0, %v690_v44 }
 0x62c   : > { %v692_v47 = vmul.f32 %v2101_v43, %v691_v46 }
 0x62e   : > { %v693_v48 = vadd.f32 %v2101_v43, %v692_v47 }
 0x630   : > { %v697_v51 = vsel %vm696_vm0, %v2101_v43, %v693_v48 }
 0x631   : > { %v702_v53 = vsel %vm699_vm1, %v701_v52, %v697_v51 }
 0x673   : > { %v730_v41 = vpop.permute.xlu2 %729 }
 0x674   : > { %v732_v42 = vsel %vm722_vm12, %v730_v41, %v726_v40 }
 0x675   : > { %733 = vst.msk [vmem:[#allocation5] sm:$0x1] %vm724_vm13, %v732_v42 }
 0x690   : > { %v719_v54 = vpop.permute.xlu1 %718 }
 0x691   : > { %v721_v55 = vmul.f32 %v719_v54, %v702_v53 }
 0x693   : > { %v723_v56 = vsel %vm722_vm12, %v721_v55, %v2692_v6 }
 0x694   : > { %725 = vst.msk [vmem:[#allocation4] sm:$0x1] %vm724_vm13, %v723_v56 }
 0x695 PF: > { %p1970_p9 = scmp.le.s32.totalorder %s2591_s22, 1 }
 0x696   : > { %s2430_s12 = smov (!%p1970_p9), 64  }
 0x697   : > { %737 = sbr.rel (%p1970_p9) target bundleno = 2112 (0x840), region = 132 }
 0x69c   : > { %v754_v57 = vld [vmem:[%s3234_s7 + $0x78] sm:$0xff]  ;;  %v753_v58 = vld [vmem:[%s3234_s7 + $0x70] sm:$0xff]  ;;  %v752_v59 = vld [vmem:[%s3234_s7 + $0x68] sm:$0xff]  ;;  %vm803_vm2 = vcmask 1040384   ;;  %vm871_vm9 = vcmp.gt.s32.totalorder %v2640_v45, 1  ;;  %vm873_vm10 = vcmask 516096  }
 0x69d   : > { %786 = vmatpush.msra.mxu1 %v754_v57  ;;  %766 = vmatpush.msra.mxu0 %v753_v58  ;;  %v751_v60 = vld [vmem:[%s3234_s7 + $0x60] sm:$0xff]  ;;  %v750_v61 = vld [vmem:[%s3234_s7 + $0x58] sm:$0xff]  ;;  %v749_v62 = vld [vmem:[%s3234_s7 + $0x50] sm:$0xff] }
 0x69e   : > { %v748_v63 = vld [vmem:[%s3234_s7 + $0x48] sm:$0xff]  ;;  %v747_v0 = vld [vmem:[%s3234_s7 + $0x40] sm:$0xff]  ;;  %v853_v1 = vld [vmem:[#allocation5] sm:$0x1] }
 0x69f   : > { %787 = vmatpush.msra.mxu1 %v752_v59  ;;  %767 = vmatpush.msra.mxu0 %v751_v60  ;;  %v746_v2 = vld [vmem:[%s3234_s7 + $0x38] sm:$0xff]  ;;  %v745_v3 = vld [vmem:[%s3234_s7 + $0x30] sm:$0xff]  ;;  %v744_v4 = vld [vmem:[%s3234_s7 + $0x28] sm:$0xff] }
 0x6a0   : > { %855 = vrot.lane.b32.xlu0 %v853_v1, %s2430_s12  ;;  %v743_v5 = vld [vmem:[%s3234_s7 + $0x20] sm:$0xff]  ;;  %v742_v6 = vld [vmem:[%s3234_s7 + $0x18] sm:$0xff]  ;;  %v741_v7 = vld [vmem:[%s3234_s7 + $0x10] sm:$0xff] }
 0x6a1   : > { %788 = vmatpush.msra.mxu1 %v750_v61  ;;  %768 = vmatpush.msra.mxu0 %v749_v62  ;;  %v740_v8 = vld [vmem:[%s3234_s7 + $0x8] sm:$0xff]  ;;  %v739_v9 = vld [vmem:[%s3234_s7] sm:$0xff]  ;;  %v2760_v10 = vld [vmem:[#allocation4] sm:$0x1] }
 0x6a2   : > { %v799_v14 = vld [vmem:[#allocation3 + $0x1] ss:$8 sm:$0x3]  ;;  %v875_v44 = vld [vmem:[#allocation5] sm:$0x1] }
 0x6a3   : > { %789 = vmatpush.msra.mxu1 %v748_v63  ;;  %769 = vmatpush.msra.mxu0 %v747_v0 }
 0x6a5   : > { %790 = vmatpush.msra.mxu1 %v746_v2  ;;  %770 = vmatpush.msra.mxu0 %v745_v3 }
 0x6a7   : > { %791 = vmatpush.msra.mxu1 %v744_v4  ;;  %771 = vmatpush.msra.mxu0 %v743_v5 }
 0x6a9   : > { %792 = vmatpush.msra.mxu1 %v742_v6  ;;  %772 = vmatpush.msra.mxu0 %v741_v7 }
 0x6ab   : > { %793 = vmatpush.msra.mxu1 %v740_v8  ;;  %773 = vmatpush.msra.mxu0 %v739_v9 }
 0x6ac   : > { %1972 = vmatmul.msk.f32.vlgmr.msra.gmra.mxu1 %vm534_vm5, %v2760_v10  ;;  %1971 = vmatmul.msk.f32.vlgmr.msra.gmra.mxu0 %vm534_vm5, %v2760_v10 }
 0x712   : > { %v856_v33 = vpop.permute.xlu0 %855 }
 0x729   : > { %v795_v11 = vpop.f32.mrf.mxu1  ;;  %v775_v12 = vpop.f32.mrf.mxu0 }
 0x72a   : > { %v802_v13 = vrot.slane %v795_v11, 7 }
 0x72c   : > { %v804_v15 = vsel %vm803_vm2, %v775_v12, %v802_v13 }
 0x72d   : > { %v806_v16 = vadd.f32 %v804_v15, %v799_v14 }
 0x72f   : > { %v1973_v17 = vmul.f32 -1.442695, %v806_v16  ;;  %830 = vrot.lane.b32.xlu1 %v806_v16, %s2430_s12  ;;  %v827_v21 = vrot.slane %v806_v16, 1 }
 0x731   : > { %2102 = vpow2.f32 %v1973_v17 }
 0x737   : > { %v2103_v18 = vpop.eup %2102 }
 0x738   : > { %v810_v19 = vadd.f32 1.0, %v2103_v18 }
 0x73a   : > { %2104 = vrcp.f32 %v810_v19  ;;  %v822_v24 = vand.u32 2147483648, %v810_v19  ;;  %v820_v26 = vand.u32 2147483647, %v810_v19  ;;  %vm816_vm6 = vweird.f32 %v810_v19 }
 0x73b   : > { %2106 = vtanh.f32 %v827_v21 }
 0x73c   : > { %v823_v28 = vor.u32 1.1754944e-38, %v822_v24  ;;  %vm821_vm8 = vcmp.eq.f32.partialorder %v820_v26, 8.507059e+37 }
 0x740   : > { %v2105_v20 = vpop.eup %2104 }
 0x741   : > { %v812_v22 = vmul.f32 %v2105_v20, %v810_v19  ;;  %vm817_vm4 = vweird.f32 %v2105_v20  ;;  %v2107_v30 = vpop.eup %2106 }
 0x742   : > { %vm818_vm7 = vmor %vm816_vm6, %vm817_vm4 }
 0x743   : > { %v813_v23 = vsub.f32 1.0, %v812_v22 }
 0x745   : > { %v814_v25 = vmul.f32 %v2105_v20, %v813_v23 }
 0x747   : > { %v815_v27 = vadd.f32 %v2105_v20, %v814_v25 }
 0x749   : > { %v819_v29 = vsel %vm818_vm7, %v2105_v20, %v815_v27 }
 0x74a   : > { %v824_v31 = vsel %vm821_vm8, %v823_v28, %v819_v29 }
 0x74b   : > { %v859_v32 = vmul.f32 %v2107_v30, %v824_v31  ;;  %v858_v34 = vmul.f32 %v856_v33, %v824_v31 }
 0x74d   : > { %861 = vrot.lane.b32.xlu0 %v859_v32, %s2430_s12 }
 0x7a1   : > { %v831_v39 = vpop.permute.xlu1 %830 }
 0x7a2   : > { %v832_v40 = vrot.slane %v831_v39, 1 }
 0x7a4   : > { %v1974_v41 = vmul.f32 -1.442695, %v832_v40 }
 0x7bf   : > { %v862_v35 = vpop.permute.xlu0 %861 }
 0x7c0   : > { %v864_v36 = vadd.f32 %v862_v35, %v858_v34 }
 0x7c2   : > { %2108 = vtanh.f32 %v864_v36  ;;  %v877_v37 = vperm.slane %v864_v36, 0 }
 0x7c3   : > { %2110 = vpow2.f32 %v1974_v41 }
 0x7c4   : > { %878 = vrot.lane.b32.xlu2 %v877_v37, %s2430_s12 }
 0x7c8   : > { %v2109_v38 = vpop.eup %2108 }
 0x7c9   : > { %867 = vrot.lane.b32.xlu1 %v2109_v38, %s2430_s12  ;;  %v2111_v42 = vpop.eup %2110 }
 0x7ca   : > { %v837_v43 = vadd.f32 1.0, %v2111_v42 }
 0x7cc   : > { %2112 = vrcp.f32 %v837_v43  ;;  %v849_v53 = vand.u32 2147483648, %v837_v43  ;;  %vm843_vm12 = vweird.f32 %v837_v43  ;;  %v847_v54 = vand.u32 2147483647, %v837_v43 }
 0x7ce   : > { %v850_v56 = vor.u32 1.1754944e-38, %v849_v53  ;;  %vm848_vm14 = vcmp.eq.f32.partialorder %v847_v54, 8.507059e+37 }
 0x7d2   : > { %v2113_v48 = vpop.eup %2112 }
 0x7d3   : > { %v839_v49 = vmul.f32 %v2113_v48, %v837_v43  ;;  %vm844_vm11 = vweird.f32 %v2113_v48 }
 0x7d4   : > { %vm845_vm13 = vmor %vm843_vm12, %vm844_vm11 }
 0x7d5   : > { %v840_v50 = vsub.f32 1.0, %v839_v49 }
 0x7d7   : > { %v841_v51 = vmul.f32 %v2113_v48, %v840_v50 }
 0x7d9   : > { %v842_v52 = vadd.f32 %v2113_v48, %v841_v51 }
 0x7db   : > { %v846_v55 = vsel %vm845_vm13, %v2113_v48, %v842_v52 }
 0x7dc   : > { %v851_v57 = vsel %vm848_vm14, %v850_v56, %v846_v55 }
 0x81e   : > { %v879_v46 = vpop.permute.xlu2 %878 }
 0x81f   : > { %v881_v47 = vsel %vm871_vm9, %v879_v46, %v875_v44 }
 0x820   : > { %882 = vst.msk [vmem:[#allocation5] sm:$0x1] %vm873_vm10, %v881_v47 }
 0x83b   : > { %v868_v58 = vpop.permute.xlu1 %867 }
 0x83c   : > { %v870_v59 = vmul.f32 %v868_v58, %v851_v57 }
 0x83e   : > { %v872_v60 = vsel %vm871_vm9, %v870_v59, %v2760_v10 }
 0x83f   : > { %874 = vst.msk [vmem:[#allocation4] sm:$0x1] %vm873_vm10, %v872_v60 }
 0x840 PF: > { %p1975_p10 = scmp.le.s32.totalorder %s2591_s22, 2 }
 0x841   : > { %s2431_s27 = smov (!%p1975_p10), 64  }
 0x842   : > { %886 = sbr.rel (%p1975_p10) target bundleno = 2539 (0x9eb), region = 136 }
 0x847   : > { %v903_v61 = vld [vmem:[%s3234_s7 + $0x78] sm:$0xff]  ;;  %v902_v62 = vld [vmem:[%s3234_s7 + $0x70] sm:$0xff]  ;;  %v901_v63 = vld [vmem:[%s3234_s7 + $0x68] sm:$0xff]  ;;  %vm952_vm15 = vcmask 1040384   ;;  %vm1020_vm6 = vcmp.gt.s32.totalorder %v2640_v45, 2  ;;  %vm1022_vm7 = vcmask 516096  }
 0x848   : > { %935 = vmatpush.msra.mxu1 %v903_v61  ;;  %915 = vmatpush.msra.mxu0 %v902_v62  ;;  %v900_v0 = vld [vmem:[%s3234_s7 + $0x60] sm:$0xff]  ;;  %v899_v1 = vld [vmem:[%s3234_s7 + $0x58] sm:$0xff]  ;;  %v898_v2 = vld [vmem:[%s3234_s7 + $0x50] sm:$0xff] }
 0x849   : > { %v897_v3 = vld [vmem:[%s3234_s7 + $0x48] sm:$0xff]  ;;  %v896_v4 = vld [vmem:[%s3234_s7 + $0x40] sm:$0xff]  ;;  %v1002_v5 = vld [vmem:[#allocation5] sm:$0x1] }
 0x84a   : > { %936 = vmatpush.msra.mxu1 %v901_v63  ;;  %916 = vmatpush.msra.mxu0 %v900_v0  ;;  %v895_v6 = vld [vmem:[%s3234_s7 + $0x38] sm:$0xff]  ;;  %v894_v7 = vld [vmem:[%s3234_s7 + $0x30] sm:$0xff]  ;;  %v893_v8 = vld [vmem:[%s3234_s7 + $0x28] sm:$0xff] }
 0x84b   : > { %1004 = vrot.lane.b32.xlu0 %v1002_v5, %s2431_s27  ;;  %v892_v9 = vld [vmem:[%s3234_s7 + $0x20] sm:$0xff]  ;;  %v891_v10 = vld [vmem:[%s3234_s7 + $0x18] sm:$0xff]  ;;  %v890_v11 = vld [vmem:[%s3234_s7 + $0x10] sm:$0xff] }
 0x84c   : > { %937 = vmatpush.msra.mxu1 %v899_v1  ;;  %917 = vmatpush.msra.mxu0 %v898_v2  ;;  %v889_v12 = vld [vmem:[%s3234_s7 + $0x8] sm:$0xff]  ;;  %v888_v13 = vld [vmem:[%s3234_s7] sm:$0xff]  ;;  %v2828_v14 = vld [vmem:[#allocation4] sm:$0x1] }
 0x84d   : > { %v948_v18 = vld [vmem:[#allocation3 + $0x2] ss:$8 sm:$0x3]  ;;  %v1024_v49 = vld [vmem:[#allocation5] sm:$0x1] }
 0x84e   : > { %938 = vmatpush.msra.mxu1 %v897_v3  ;;  %918 = vmatpush.msra.mxu0 %v896_v4 }
 0x850   : > { %939 = vmatpush.msra.mxu1 %v895_v6  ;;  %919 = vmatpush.msra.mxu0 %v894_v7 }
 0x852   : > { %940 = vmatpush.msra.mxu1 %v893_v8  ;;  %920 = vmatpush.msra.mxu0 %v892_v9 }
 0x854   : > { %941 = vmatpush.msra.mxu1 %v891_v10  ;;  %921 = vmatpush.msra.mxu0 %v890_v11 }
 0x856   : > { %942 = vmatpush.msra.mxu1 %v889_v12  ;;  %922 = vmatpush.msra.mxu0 %v888_v13 }
 0x857   : > { %1977 = vmatmul.msk.f32.vlgmr.msra.gmra.mxu1 %vm534_vm5, %v2828_v14  ;;  %1976 = vmatmul.msk.f32.vlgmr.msra.gmra.mxu0 %vm534_vm5, %v2828_v14 }
 0x8bd   : > { %v1005_v37 = vpop.permute.xlu0 %1004 }
 0x8d4   : > { %v944_v15 = vpop.f32.mrf.mxu1  ;;  %v924_v16 = vpop.f32.mrf.mxu0 }
 0x8d5   : > { %v951_v17 = vrot.slane %v944_v15, 7 }
 0x8d7   : > { %v953_v19 = vsel %vm952_vm15, %v924_v16, %v951_v17 }
 0x8d8   : > { %v955_v20 = vadd.f32 %v953_v19, %v948_v18 }
 0x8da   : > { %v1978_v21 = vmul.f32 -1.442695, %v955_v20  ;;  %979 = vrot.lane.b32.xlu1 %v955_v20, %s2431_s27  ;;  %v976_v25 = vrot.slane %v955_v20, 1 }
 0x8dc   : > { %2114 = vpow2.f32 %v1978_v21 }
 0x8e2   : > { %v2115_v22 = vpop.eup %2114 }
 0x8e3   : > { %v959_v23 = vadd.f32 1.0, %v2115_v22 }
 0x8e5   : > { %2116 = vrcp.f32 %v959_v23  ;;  %v971_v28 = vand.u32 2147483648, %v959_v23  ;;  %v969_v30 = vand.u32 2147483647, %v959_v23  ;;  %vm965_vm1 = vweird.f32 %v959_v23 }
 0x8e6   : > { %2118 = vtanh.f32 %v976_v25 }
 0x8e7   : > { %v972_v32 = vor.u32 1.1754944e-38, %v971_v28  ;;  %vm970_vm4 = vcmp.eq.f32.partialorder %v969_v30, 8.507059e+37 }
 0x8eb   : > { %v2117_v24 = vpop.eup %2116 }
 0x8ec   : > { %v961_v26 = vmul.f32 %v2117_v24, %v959_v23  ;;  %vm966_vm0 = vweird.f32 %v2117_v24  ;;  %v2119_v34 = vpop.eup %2118 }
 0x8ed   : > { %vm967_vm2 = vmor %vm965_vm1, %vm966_vm0 }
 0x8ee   : > { %v962_v27 = vsub.f32 1.0, %v961_v26 }
 0x8f0   : > { %v963_v29 = vmul.f32 %v2117_v24, %v962_v27 }
 0x8f2   : > { %v964_v31 = vadd.f32 %v2117_v24, %v963_v29 }
 0x8f4   : > { %v968_v33 = vsel %vm967_vm2, %v2117_v24, %v964_v31 }
 0x8f5   : > { %v973_v35 = vsel %vm970_vm4, %v972_v32, %v968_v33 }
 0x8f6   : > { %v1008_v36 = vmul.f32 %v2119_v34, %v973_v35  ;;  %v1007_v38 = vmul.f32 %v1005_v37, %v973_v35 }
 0x8f8   : > { %1010 = vrot.lane.b32.xlu0 %v1008_v36, %s2431_s27 }
 0x94c   : > { %v980_v43 = vpop.permute.xlu1 %979 }
 0x94d   : > { %v981_v44 = vrot.slane %v980_v43, 1 }
 0x94f   : > { %v1979_v46 = vmul.f32 -1.442695, %v981_v44 }
 0x96a   : > { %v1011_v39 = vpop.permute.xlu0 %1010 }
 0x96b   : > { %v1013_v40 = vadd.f32 %v1011_v39, %v1007_v38 }
 0x96d   : > { %2120 = vtanh.f32 %v1013_v40  ;;  %v1026_v41 = vperm.slane %v1013_v40, 0 }
 0x96e   : > { %2122 = vpow2.f32 %v1979_v46 }
 0x96f   : > { %1027 = vrot.lane.b32.xlu2 %v1026_v41, %s2431_s27 }
 0x973   : > { %v2121_v42 = vpop.eup %2120 }
 0x974   : > { %1016 = vrot.lane.b32.xlu1 %v2121_v42, %s2431_s27  ;;  %v2123_v47 = vpop.eup %2122 }
 0x975   : > { %v986_v48 = vadd.f32 1.0, %v2123_v47 }
 0x977   : > { %2124 = vrcp.f32 %v986_v48  ;;  %v998_v57 = vand.u32 2147483648, %v986_v48  ;;  %vm992_vm9 = vweird.f32 %v986_v48  ;;  %v996_v58 = vand.u32 2147483647, %v986_v48 }
 0x979   : > { %v999_v60 = vor.u32 1.1754944e-38, %v998_v57  ;;  %vm997_vm11 = vcmp.eq.f32.partialorder %v996_v58, 8.507059e+37 }
 0x97d   : > { %v2125_v52 = vpop.eup %2124 }
 0x97e   : > { %v988_v53 = vmul.f32 %v2125_v52, %v986_v48  ;;  %vm993_vm8 = vweird.f32 %v2125_v52 }
 0x97f   : > { %vm994_vm10 = vmor %vm992_vm9, %vm993_vm8 }
 0x980   : > { %v989_v54 = vsub.f32 1.0, %v988_v53 }
 0x982   : > { %v990_v55 = vmul.f32 %v2125_v52, %v989_v54 }
 0x984   : > { %v991_v56 = vadd.f32 %v2125_v52, %v990_v55 }
 0x986   : > { %v995_v59 = vsel %vm994_vm10, %v2125_v52, %v991_v56 }
 0x987   : > { %v1000_v61 = vsel %vm997_vm11, %v999_v60, %v995_v59 }
 0x9c9   : > { %v1028_v50 = vpop.permute.xlu2 %1027 }
 0x9ca   : > { %v1030_v51 = vsel %vm1020_vm6, %v1028_v50, %v1024_v49 }
 0x9cb   : > { %1031 = vst.msk [vmem:[#allocation5] sm:$0x1] %vm1022_vm7, %v1030_v51 }
 0x9e6   : > { %v1017_v62 = vpop.permute.xlu1 %1016 }
 0x9e7   : > { %v1019_v63 = vmul.f32 %v1017_v62, %v1000_v61 }
 0x9e9   : > { %v1021_v0 = vsel %vm1020_vm6, %v1019_v63, %v2828_v14 }
 0x9ea   : > { %1023 = vst.msk [vmem:[#allocation4] sm:$0x1] %vm1022_vm7, %v1021_v0 }
 0x9eb PF: > { %p1980_p11 = scmp.le.s32.totalorder %s2591_s22, 3 }
 0x9ec   : > { %s2432_s21 = smov (!%p1980_p11), 64  }
 0x9ed   : > { %1035 = sbr.rel (%p1980_p11) target bundleno = 2966 (0xb96), region = 140 }
 0x9f2   : > { %v1052_v1 = vld [vmem:[%s3234_s7 + $0x78] sm:$0xff]  ;;  %v1051_v2 = vld [vmem:[%s3234_s7 + $0x70] sm:$0xff]  ;;  %v1050_v3 = vld [vmem:[%s3234_s7 + $0x68] sm:$0xff]  ;;  %vm1101_vm12 = vcmask 1040384   ;;  %vm1169_vm1 = vcmp.gt.s32.totalorder %v2640_v45, 3  ;;  %vm1171_vm2 = vcmask 516096  }
 0x9f3   : > { %1084 = vmatpush.msra.mxu1 %v1052_v1  ;;  %1064 = vmatpush.msra.mxu0 %v1051_v2  ;;  %v1049_v4 = vld [vmem:[%s3234_s7 + $0x60] sm:$0xff]  ;;  %v1048_v5 = vld [vmem:[%s3234_s7 + $0x58] sm:$0xff]  ;;  %v1047_v6 = vld [vmem:[%s3234_s7 + $0x50] sm:$0xff] }
 0x9f4   : > { %v1046_v7 = vld [vmem:[%s3234_s7 + $0x48] sm:$0xff]  ;;  %v1045_v8 = vld [vmem:[%s3234_s7 + $0x40] sm:$0xff]  ;;  %v1151_v9 = vld [vmem:[#allocation5] sm:$0x1] }
 0x9f5   : > { %1085 = vmatpush.msra.mxu1 %v1050_v3  ;;  %1065 = vmatpush.msra.mxu0 %v1049_v4  ;;  %v1044_v10 = vld [vmem:[%s3234_s7 + $0x38] sm:$0xff]  ;;  %v1043_v11 = vld [vmem:[%s3234_s7 + $0x30] sm:$0xff]  ;;  %v1042_v12 = vld [vmem:[%s3234_s7 + $0x28] sm:$0xff] }
 0x9f6   : > { %1153 = vrot.lane.b32.xlu0 %v1151_v9, %s2432_s21  ;;  %v1041_v13 = vld [vmem:[%s3234_s7 + $0x20] sm:$0xff]  ;;  %v1040_v14 = vld [vmem:[%s3234_s7 + $0x18] sm:$0xff]  ;;  %v1039_v15 = vld [vmem:[%s3234_s7 + $0x10] sm:$0xff] }
 0x9f7   : > { %1086 = vmatpush.msra.mxu1 %v1048_v5  ;;  %1066 = vmatpush.msra.mxu0 %v1047_v6  ;;  %v1038_v16 = vld [vmem:[%s3234_s7 + $0x8] sm:$0xff]  ;;  %v1037_v17 = vld [vmem:[%s3234_s7] sm:$0xff]  ;;  %v2896_v18 = vld [vmem:[#allocation4] sm:$0x1] }
 0x9f8   : > { %v1097_v22 = vld [vmem:[#allocation3 + $0x3] ss:$8 sm:$0x3]  ;;  %v1173_v53 = vld [vmem:[#allocation5] sm:$0x1] }
 0x9f9   : > { %1087 = vmatpush.msra.mxu1 %v1046_v7  ;;  %1067 = vmatpush.msra.mxu0 %v1045_v8 }
 0x9fb   : > { %1088 = vmatpush.msra.mxu1 %v1044_v10  ;;  %1068 = vmatpush.msra.mxu0 %v1043_v11 }
 0x9fd   : > { %1089 = vmatpush.msra.mxu1 %v1042_v12  ;;  %1069 = vmatpush.msra.mxu0 %v1041_v13 }
 0x9ff   : > { %1090 = vmatpush.msra.mxu1 %v1040_v14  ;;  %1070 = vmatpush.msra.mxu0 %v1039_v15 }
 0xa01   : > { %1091 = vmatpush.msra.mxu1 %v1038_v16  ;;  %1071 = vmatpush.msra.mxu0 %v1037_v17 }
 0xa02   : > { %1982 = vmatmul.msk.f32.vlgmr.msra.gmra.mxu1 %vm534_vm5, %v2896_v18  ;;  %1981 = vmatmul.msk.f32.vlgmr.msra.gmra.mxu0 %vm534_vm5, %v2896_v18 }
 0xa68   : > { %v1154_v41 = vpop.permute.xlu0 %1153 }
 0xa7f   : > { %v1093_v19 = vpop.f32.mrf.mxu1  ;;  %v1073_v20 = vpop.f32.mrf.mxu0 }
 0xa80   : > { %v1100_v21 = vrot.slane %v1093_v19, 7 }
 0xa82   : > { %v1102_v23 = vsel %vm1101_vm12, %v1073_v20, %v1100_v21 }
 0xa83   : > { %v1104_v24 = vadd.f32 %v1102_v23, %v1097_v22 }
 0xa85   : > { %v1983_v25 = vmul.f32 -1.442695, %v1104_v24  ;;  %1128 = vrot.lane.b32.xlu1 %v1104_v24, %s2432_s21  ;;  %v1125_v29 = vrot.slane %v1104_v24, 1 }
 0xa87   : > { %2126 = vpow2.f32 %v1983_v25 }
 0xa8d   : > { %v2127_v26 = vpop.eup %2126 }
 0xa8e   : > { %v1108_v27 = vadd.f32 1.0, %v2127_v26 }
 0xa90   : > { %2128 = vrcp.f32 %v1108_v27  ;;  %v1120_v32 = vand.u32 2147483648, %v1108_v27  ;;  %v1118_v34 = vand.u32 2147483647, %v1108_v27  ;;  %vm1114_vm14 = vweird.f32 %v1108_v27 }
 0xa91   : > { %2130 = vtanh.f32 %v1125_v29 }
 0xa92   : > { %v1121_v36 = vor.u32 1.1754944e-38, %v1120_v32  ;;  %vm1119_vm0 = vcmp.eq.f32.partialorder %v1118_v34, 8.507059e+37 }
 0xa96   : > { %v2129_v28 = vpop.eup %2128 }
 0xa97   : > { %v1110_v30 = vmul.f32 %v2129_v28, %v1108_v27  ;;  %vm1115_vm13 = vweird.f32 %v2129_v28  ;;  %v2131_v38 = vpop.eup %2130 }
 0xa98   : > { %vm1116_vm15 = vmor %vm1114_vm14, %vm1115_vm13 }
 0xa99   : > { %v1111_v31 = vsub.f32 1.0, %v1110_v30 }
 0xa9b   : > { %v1112_v33 = vmul.f32 %v2129_v28, %v1111_v31 }
 0xa9d   : > { %v1113_v35 = vadd.f32 %v2129_v28, %v1112_v33 }
 0xa9f   : > { %v1117_v37 = vsel %vm1116_vm15, %v2129_v28, %v1113_v35 }
 0xaa0   : > { %v1122_v39 = vsel %vm1119_vm0, %v1121_v36, %v1117_v37 }
 0xaa1   : > { %v1157_v40 = vmul.f32 %v2131_v38, %v1122_v39  ;;  %v1156_v42 = vmul.f32 %v1154_v41, %v1122_v39 }
 0xaa3   : > { %1159 = vrot.lane.b32.xlu0 %v1157_v40, %s2432_s21 }
 0xaf7   : > { %v1129_v48 = vpop.permute.xlu1 %1128 }
 0xaf8   : > { %v1130_v49 = vrot.slane %v1129_v48, 1 }
 0xafa   : > { %v1984_v50 = vmul.f32 -1.442695, %v1130_v49 }
 0xb15   : > { %v1160_v43 = vpop.permute.xlu0 %1159 }
 0xb16   : > { %v1162_v44 = vadd.f32 %v1160_v43, %v1156_v42 }
 0xb18   : > { %2132 = vtanh.f32 %v1162_v44  ;;  %v1175_v46 = vperm.slane %v1162_v44, 0 }
 0xb19   : > { %2134 = vpow2.f32 %v1984_v50 }
 0xb1a   : > { %1176 = vrot.lane.b32.xlu2 %v1175_v46, %s2432_s21 }
 0xb1e   : > { %v2133_v47 = vpop.eup %2132 }
 0xb1f   : > { %1165 = vrot.lane.b32.xlu1 %v2133_v47, %s2432_s21  ;;  %v2135_v51 = vpop.eup %2134 }
 0xb20   : > { %v1135_v52 = vadd.f32 1.0, %v2135_v51 }
 0xb22   : > { %2136 = vrcp.f32 %v1135_v52  ;;  %v1147_v61 = vand.u32 2147483648, %v1135_v52  ;;  %vm1141_vm6 = vweird.f32 %v1135_v52  ;;  %v1145_v62 = vand.u32 2147483647, %v1135_v52 }
 0xb24   : > { %v1148_v0 = vor.u32 1.1754944e-38, %v1147_v61  ;;  %vm1146_vm8 = vcmp.eq.f32.partialorder %v1145_v62, 8.507059e+37 }
 0xb28   : > { %v2137_v56 = vpop.eup %2136 }
 0xb29   : > { %v1137_v57 = vmul.f32 %v2137_v56, %v1135_v52  ;;  %vm1142_vm4 = vweird.f32 %v2137_v56 }
 0xb2a   : > { %vm1143_vm7 = vmor %vm1141_vm6, %vm1142_vm4 }
 0xb2b   : > { %v1138_v58 = vsub.f32 1.0, %v1137_v57 }
 0xb2d   : > { %v1139_v59 = vmul.f32 %v2137_v56, %v1138_v58 }
 0xb2f   : > { %v1140_v60 = vadd.f32 %v2137_v56, %v1139_v59 }
 0xb31   : > { %v1144_v63 = vsel %vm1143_vm7, %v2137_v56, %v1140_v60 }
 0xb32   : > { %v1149_v1 = vsel %vm1146_vm8, %v1148_v0, %v1144_v63 }
 0xb74   : > { %v1177_v54 = vpop.permute.xlu2 %1176 }
 0xb75   : > { %v1179_v55 = vsel %vm1169_vm1, %v1177_v54, %v1173_v53 }
 0xb76   : > { %1180 = vst.msk [vmem:[#allocation5] sm:$0x1] %vm1171_vm2, %v1179_v55 }
 0xb91   : > { %v1166_v2 = vpop.permute.xlu1 %1165 }
 0xb92   : > { %v1168_v3 = vmul.f32 %v1166_v2, %v1149_v1 }
 0xb94   : > { %v1170_v4 = vsel %vm1169_vm1, %v1168_v3, %v2896_v18 }
 0xb95   : > { %1172 = vst.msk [vmem:[#allocation4] sm:$0x1] %vm1171_vm2, %v1170_v4 }
 0xb96 PF: > { %p1985_p12 = scmp.le.s32.totalorder %s2591_s22, 4 }
 0xb97   : > { %s2433_s15 = smov (!%p1985_p12), 64  }
 0xb98   : > { %1184 = sbr.rel (%p1985_p12) target bundleno = 3393 (0xd41), region = 144 }
 0xb9d   : > { %v1201_v5 = vld [vmem:[%s3234_s7 + $0x78] sm:$0xff]  ;;  %v1200_v6 = vld [vmem:[%s3234_s7 + $0x70] sm:$0xff]  ;;  %v1199_v7 = vld [vmem:[%s3234_s7 + $0x68] sm:$0xff]  ;;  %vm1250_vm9 = vcmask 1040384   ;;  %vm1318_vm14 = vcmp.gt.s32.totalorder %v2640_v45, 4  ;;  %vm1320_vm15 = vcmask 516096  }
 0xb9e   : > { %1233 = vmatpush.msra.mxu1 %v1201_v5  ;;  %1213 = vmatpush.msra.mxu0 %v1200_v6  ;;  %v1198_v8 = vld [vmem:[%s3234_s7 + $0x60] sm:$0xff]  ;;  %v1197_v9 = vld [vmem:[%s3234_s7 + $0x58] sm:$0xff]  ;;  %v1196_v10 = vld [vmem:[%s3234_s7 + $0x50] sm:$0xff] }
 0xb9f   : > { %v1195_v11 = vld [vmem:[%s3234_s7 + $0x48] sm:$0xff]  ;;  %v1194_v12 = vld [vmem:[%s3234_s7 + $0x40] sm:$0xff]  ;;  %v1300_v13 = vld [vmem:[#allocation5] sm:$0x1] }
 0xba0   : > { %1234 = vmatpush.msra.mxu1 %v1199_v7  ;;  %1214 = vmatpush.msra.mxu0 %v1198_v8  ;;  %v1193_v14 = vld [vmem:[%s3234_s7 + $0x38] sm:$0xff]  ;;  %v1192_v15 = vld [vmem:[%s3234_s7 + $0x30] sm:$0xff]  ;;  %v1191_v16 = vld [vmem:[%s3234_s7 + $0x28] sm:$0xff] }
 0xba1   : > { %1302 = vrot.lane.b32.xlu0 %v1300_v13, %s2433_s15  ;;  %v1190_v17 = vld [vmem:[%s3234_s7 + $0x20] sm:$0xff]  ;;  %v1189_v18 = vld [vmem:[%s3234_s7 + $0x18] sm:$0xff]  ;;  %v1188_v19 = vld [vmem:[%s3234_s7 + $0x10] sm:$0xff] }
 0xba2   : > { %1235 = vmatpush.msra.mxu1 %v1197_v9  ;;  %1215 = vmatpush.msra.mxu0 %v1196_v10  ;;  %v1187_v20 = vld [vmem:[%s3234_s7 + $0x8] sm:$0xff]  ;;  %v1186_v21 = vld [vmem:[%s3234_s7] sm:$0xff]  ;;  %v2964_v22 = vld [vmem:[#allocation4] sm:$0x1] }
 0xba3   : > { %v1246_v26 = vld [vmem:[#allocation3 + $0x4] ss:$8 sm:$0x3]  ;;  %v1322_v57 = vld [vmem:[#allocation5] sm:$0x1] }
 0xba4   : > { %1236 = vmatpush.msra.mxu1 %v1195_v11  ;;  %1216 = vmatpush.msra.mxu0 %v1194_v12 }
 0xba6   : > { %1237 = vmatpush.msra.mxu1 %v1193_v14  ;;  %1217 = vmatpush.msra.mxu0 %v1192_v15 }
 0xba8   : > { %1238 = vmatpush.msra.mxu1 %v1191_v16  ;;  %1218 = vmatpush.msra.mxu0 %v1190_v17 }
 0xbaa   : > { %1239 = vmatpush.msra.mxu1 %v1189_v18  ;;  %1219 = vmatpush.msra.mxu0 %v1188_v19 }
 0xbac   : > { %1240 = vmatpush.msra.mxu1 %v1187_v20  ;;  %1220 = vmatpush.msra.mxu0 %v1186_v21 }
 0xbad   : > { %1987 = vmatmul.msk.f32.vlgmr.msra.gmra.mxu1 %vm534_vm5, %v2964_v22  ;;  %1986 = vmatmul.msk.f32.vlgmr.msra.gmra.mxu0 %vm534_vm5, %v2964_v22 }
 0xc13   : > { %v1303_v46 = vpop.permute.xlu0 %1302 }
 0xc2a   : > { %v1242_v23 = vpop.f32.mrf.mxu1  ;;  %v1222_v24 = vpop.f32.mrf.mxu0 }
 0xc2b   : > { %v1249_v25 = vrot.slane %v1242_v23, 7 }
 0xc2d   : > { %v1251_v27 = vsel %vm1250_vm9, %v1222_v24, %v1249_v25 }
 0xc2e   : > { %v1253_v28 = vadd.f32 %v1251_v27, %v1246_v26 }
 0xc30   : > { %v1988_v29 = vmul.f32 -1.442695, %v1253_v28  ;;  %1277 = vrot.lane.b32.xlu1 %v1253_v28, %s2433_s15  ;;  %v1274_v33 = vrot.slane %v1253_v28, 1 }
 0xc32   : > { %2138 = vpow2.f32 %v1988_v29 }
 0xc38   : > { %v2139_v30 = vpop.eup %2138 }
 0xc39   : > { %v1257_v31 = vadd.f32 1.0, %v2139_v30 }
 0xc3b   : > { %2140 = vrcp.f32 %v1257_v31  ;;  %v1269_v36 = vand.u32 2147483648, %v1257_v31  ;;  %v1267_v38 = vand.u32 2147483647, %v1257_v31  ;;  %vm1263_vm11 = vweird.f32 %v1257_v31 }
 0xc3c   : > { %2142 = vtanh.f32 %v1274_v33 }
 0xc3d   : > { %v1270_v40 = vor.u32 1.1754944e-38, %v1269_v36  ;;  %vm1268_vm13 = vcmp.eq.f32.partialorder %v1267_v38, 8.507059e+37 }
 0xc41   : > { %v2141_v32 = vpop.eup %2140 }
 0xc42   : > { %v1259_v34 = vmul.f32 %v2141_v32, %v1257_v31  ;;  %vm1264_vm10 = vweird.f32 %v2141_v32  ;;  %v2143_v42 = vpop.eup %2142 }
 0xc43   : > { %vm1265_vm12 = vmor %vm1263_vm11, %vm1264_vm10 }
 0xc44   : > { %v1260_v35 = vsub.f32 1.0, %v1259_v34 }
 0xc46   : > { %v1261_v37 = vmul.f32 %v2141_v32, %v1260_v35 }
 0xc48   : > { %v1262_v39 = vadd.f32 %v2141_v32, %v1261_v37 }
 0xc4a   : > { %v1266_v41 = vsel %vm1265_vm12, %v2141_v32, %v1262_v39 }
 0xc4b   : > { %v1271_v43 = vsel %vm1268_vm13, %v1270_v40, %v1266_v41 }
 0xc4c   : > { %v1306_v44 = vmul.f32 %v2143_v42, %v1271_v43  ;;  %v1305_v47 = vmul.f32 %v1303_v46, %v1271_v43 }
 0xc4e   : > { %1308 = vrot.lane.b32.xlu0 %v1306_v44, %s2433_s15 }
 0xca2   : > { %v1278_v52 = vpop.permute.xlu1 %1277 }
 0xca3   : > { %v1279_v53 = vrot.slane %v1278_v52, 1 }
 0xca5   : > { %v1989_v54 = vmul.f32 -1.442695, %v1279_v53 }
 0xcc0   : > { %v1309_v48 = vpop.permute.xlu0 %1308 }
 0xcc1   : > { %v1311_v49 = vadd.f32 %v1309_v48, %v1305_v47 }
 0xcc3   : > { %2144 = vtanh.f32 %v1311_v49  ;;  %v1324_v50 = vperm.slane %v1311_v49, 0 }
 0xcc4   : > { %2146 = vpow2.f32 %v1989_v54 }
 0xcc5   : > { %1325 = vrot.lane.b32.xlu2 %v1324_v50, %s2433_s15 }
 0xcc9   : > { %v2145_v51 = vpop.eup %2144 }
 0xcca   : > { %1314 = vrot.lane.b32.xlu1 %v2145_v51, %s2433_s15  ;;  %v2147_v55 = vpop.eup %2146 }
 0xccb   : > { %v1284_v56 = vadd.f32 1.0, %v2147_v55 }
 0xccd   : > { %2148 = vrcp.f32 %v1284_v56  ;;  %v1296_v1 = vand.u32 2147483648, %v1284_v56  ;;  %vm1290_vm1 = vweird.f32 %v1284_v56  ;;  %v1294_v2 = vand.u32 2147483647, %v1284_v56 }
 0xccf   : > { %v1297_v4 = vor.u32 1.1754944e-38, %v1296_v1  ;;  %vm1295_vm4 = vcmp.eq.f32.partialorder %v1294_v2, 8.507059e+37 }
 0xcd3   : > { %v2149_v60 = vpop.eup %2148 }
 0xcd4   : > { %v1286_v61 = vmul.f32 %v2149_v60, %v1284_v56  ;;  %vm1291_vm0 = vweird.f32 %v2149_v60 }
 0xcd5   : > { %vm1292_vm2 = vmor %vm1290_vm1, %vm1291_vm0 }
 0xcd6   : > { %v1287_v62 = vsub.f32 1.0, %v1286_v61 }
 0xcd8   : > { %v1288_v63 = vmul.f32 %v2149_v60, %v1287_v62 }
 0xcda   : > { %v1289_v0 = vadd.f32 %v2149_v60, %v1288_v63 }
 0xcdc   : > { %v1293_v3 = vsel %vm1292_vm2, %v2149_v60, %v1289_v0 }
 0xcdd   : > { %v1298_v5 = vsel %vm1295_vm4, %v1297_v4, %v1293_v3 }
 0xd1f   : > { %v1326_v58 = vpop.permute.xlu2 %1325 }
 0xd20   : > { %v1328_v59 = vsel %vm1318_vm14, %v1326_v58, %v1322_v57 }
 0xd21   : > { %1329 = vst.msk [vmem:[#allocation5] sm:$0x1] %vm1320_vm15, %v1328_v59 }
 0xd3c   : > { %v1315_v6 = vpop.permute.xlu1 %1314 }
 0xd3d   : > { %v1317_v7 = vmul.f32 %v1315_v6, %v1298_v5 }
 0xd3f   : > { %v1319_v8 = vsel %vm1318_vm14, %v1317_v7, %v2964_v22 }
 0xd40   : > { %1321 = vst.msk [vmem:[#allocation4] sm:$0x1] %vm1320_vm15, %v1319_v8 }
 0xd41 PF: > { %p1990_p13 = scmp.le.s32.totalorder %s2591_s22, 5 }
 0xd42   : > { %s2434_s0 = smov (!%p1990_p13), 64  }
 0xd43   : > { %1333 = sbr.rel (%p1990_p13) target bundleno = 3820 (0xeec), region = 148 }
 0xd48   : > { %v1350_v9 = vld [vmem:[%s3234_s7 + $0x78] sm:$0xff]  ;;  %v1349_v10 = vld [vmem:[%s3234_s7 + $0x70] sm:$0xff]  ;;  %v1348_v11 = vld [vmem:[%s3234_s7 + $0x68] sm:$0xff]  ;;  %vm1399_vm6 = vcmask 1040384   ;;  %vm1467_vm11 = vcmp.gt.s32.totalorder %v2640_v45, 5  ;;  %vm1469_vm12 = vcmask 516096  }
 0xd49   : > { %1382 = vmatpush.msra.mxu1 %v1350_v9  ;;  %1362 = vmatpush.msra.mxu0 %v1349_v10  ;;  %v1347_v12 = vld [vmem:[%s3234_s7 + $0x60] sm:$0xff]  ;;  %v1346_v13 = vld [vmem:[%s3234_s7 + $0x58] sm:$0xff]  ;;  %v1345_v14 = vld [vmem:[%s3234_s7 + $0x50] sm:$0xff] }
 0xd4a   : > { %v1344_v15 = vld [vmem:[%s3234_s7 + $0x48] sm:$0xff]  ;;  %v1343_v16 = vld [vmem:[%s3234_s7 + $0x40] sm:$0xff]  ;;  %v1449_v17 = vld [vmem:[#allocation5] sm:$0x1] }
 0xd4b   : > { %1383 = vmatpush.msra.mxu1 %v1348_v11  ;;  %1363 = vmatpush.msra.mxu0 %v1347_v12  ;;  %v1342_v18 = vld [vmem:[%s3234_s7 + $0x38] sm:$0xff]  ;;  %v1341_v19 = vld [vmem:[%s3234_s7 + $0x30] sm:$0xff]  ;;  %v1340_v20 = vld [vmem:[%s3234_s7 + $0x28] sm:$0xff] }
 0xd4c   : > { %1451 = vrot.lane.b32.xlu0 %v1449_v17, %s2434_s0  ;;  %v1339_v21 = vld [vmem:[%s3234_s7 + $0x20] sm:$0xff]  ;;  %v1338_v22 = vld [vmem:[%s3234_s7 + $0x18] sm:$0xff]  ;;  %v1337_v23 = vld [vmem:[%s3234_s7 + $0x10] sm:$0xff] }
 0xd4d   : > { %1384 = vmatpush.msra.mxu1 %v1346_v13  ;;  %1364 = vmatpush.msra.mxu0 %v1345_v14  ;;  %v1336_v24 = vld [vmem:[%s3234_s7 + $0x8] sm:$0xff]  ;;  %v1335_v25 = vld [vmem:[%s3234_s7] sm:$0xff]  ;;  %v3032_v26 = vld [vmem:[#allocation4] sm:$0x1] }
 0xd4e   : > { %v1395_v30 = vld [vmem:[#allocation3 + $0x5] ss:$8 sm:$0x3]  ;;  %v1471_v61 = vld [vmem:[#allocation5] sm:$0x1] }
 0xd4f   : > { %1385 = vmatpush.msra.mxu1 %v1344_v15  ;;  %1365 = vmatpush.msra.mxu0 %v1343_v16 }
 0xd51   : > { %1386 = vmatpush.msra.mxu1 %v1342_v18  ;;  %1366 = vmatpush.msra.mxu0 %v1341_v19 }
 0xd53   : > { %1387 = vmatpush.msra.mxu1 %v1340_v20  ;;  %1367 = vmatpush.msra.mxu0 %v1339_v21 }
 0xd55   : > { %1388 = vmatpush.msra.mxu1 %v1338_v22  ;;  %1368 = vmatpush.msra.mxu0 %v1337_v23 }
 0xd57   : > { %1389 = vmatpush.msra.mxu1 %v1336_v24  ;;  %1369 = vmatpush.msra.mxu0 %v1335_v25 }
 0xd58   : > { %1992 = vmatmul.msk.f32.vlgmr.msra.gmra.mxu1 %vm534_vm5, %v3032_v26  ;;  %1991 = vmatmul.msk.f32.vlgmr.msra.gmra.mxu0 %vm534_vm5, %v3032_v26 }
 0xdbe   : > { %v1452_v50 = vpop.permute.xlu0 %1451 }
 0xdd5   : > { %v1391_v27 = vpop.f32.mrf.mxu1  ;;  %v1371_v28 = vpop.f32.mrf.mxu0 }
 0xdd6   : > { %v1398_v29 = vrot.slane %v1391_v27, 7 }
 0xdd8   : > { %v1400_v31 = vsel %vm1399_vm6, %v1371_v28, %v1398_v29 }
 0xdd9   : > { %v1402_v32 = vadd.f32 %v1400_v31, %v1395_v30 }
 0xddb   : > { %v1993_v33 = vmul.f32 -1.442695, %v1402_v32  ;;  %1426 = vrot.lane.b32.xlu1 %v1402_v32, %s2434_s0  ;;  %v1423_v37 = vrot.slane %v1402_v32, 1 }
 0xddd   : > { %2150 = vpow2.f32 %v1993_v33 }
 0xde3   : > { %v2151_v34 = vpop.eup %2150 }
 0xde4   : > { %v1406_v35 = vadd.f32 1.0, %v2151_v34 }
 0xde6   : > { %2152 = vrcp.f32 %v1406_v35  ;;  %v1418_v40 = vand.u32 2147483648, %v1406_v35  ;;  %v1416_v42 = vand.u32 2147483647, %v1406_v35  ;;  %vm1412_vm8 = vweird.f32 %v1406_v35 }
 0xde7   : > { %2154 = vtanh.f32 %v1423_v37 }
 0xde8   : > { %v1419_v44 = vor.u32 1.1754944e-38, %v1418_v40  ;;  %vm1417_vm10 = vcmp.eq.f32.partialorder %v1416_v42, 8.507059e+37 }
 0xdec   : > { %v2153_v36 = vpop.eup %2152 }
 0xded   : > { %v1408_v38 = vmul.f32 %v2153_v36, %v1406_v35  ;;  %vm1413_vm7 = vweird.f32 %v2153_v36  ;;  %v2155_v47 = vpop.eup %2154 }
 0xdee   : > { %vm1414_vm9 = vmor %vm1412_vm8, %vm1413_vm7 }
 0xdef   : > { %v1409_v39 = vsub.f32 1.0, %v1408_v38 }
 0xdf1   : > { %v1410_v41 = vmul.f32 %v2153_v36, %v1409_v39 }
 0xdf3   : > { %v1411_v43 = vadd.f32 %v2153_v36, %v1410_v41 }
 0xdf5   : > { %v1415_v46 = vsel %vm1414_vm9, %v2153_v36, %v1411_v43 }
 0xdf6   : > { %v1420_v48 = vsel %vm1417_vm10, %v1419_v44, %v1415_v46 }
 0xdf7   : > { %v1455_v49 = vmul.f32 %v2155_v47, %v1420_v48  ;;  %v1454_v51 = vmul.f32 %v1452_v50, %v1420_v48 }
 0xdf9   : > { %1457 = vrot.lane.b32.xlu0 %v1455_v49, %s2434_s0 }
 0xe4d   : > { %v1427_v56 = vpop.permute.xlu1 %1426 }
 0xe4e   : > { %v1428_v57 = vrot.slane %v1427_v56, 1 }
 0xe50   : > { %v1994_v58 = vmul.f32 -1.442695, %v1428_v57 }
 0xe6b   : > { %v1458_v52 = vpop.permute.xlu0 %1457 }
 0xe6c   : > { %v1460_v53 = vadd.f32 %v1458_v52, %v1454_v51 }
 0xe6e   : > { %2156 = vtanh.f32 %v1460_v53  ;;  %v1473_v54 = vperm.slane %v1460_v53, 0 }
 0xe6f   : > { %2158 = vpow2.f32 %v1994_v58 }
 0xe70   : > { %1474 = vrot.lane.b32.xlu2 %v1473_v54, %s2434_s0 }
 0xe74   : > { %v2157_v55 = vpop.eup %2156 }
 0xe75   : > { %1463 = vrot.lane.b32.xlu1 %v2157_v55, %s2434_s0  ;;  %v2159_v59 = vpop.eup %2158 }
 0xe76   : > { %v1433_v60 = vadd.f32 1.0, %v2159_v59 }
 0xe78   : > { %2160 = vrcp.f32 %v1433_v60  ;;  %v1445_v5 = vand.u32 2147483648, %v1433_v60  ;;  %vm1439_vm14 = vweird.f32 %v1433_v60  ;;  %v1443_v6 = vand.u32 2147483647, %v1433_v60 }
 0xe7a   : > { %v1446_v8 = vor.u32 1.1754944e-38, %v1445_v5  ;;  %vm1444_vm0 = vcmp.eq.f32.partialorder %v1443_v6, 8.507059e+37 }
 0xe7e   : > { %v2161_v0 = vpop.eup %2160 }
 0xe7f   : > { %v1435_v1 = vmul.f32 %v2161_v0, %v1433_v60  ;;  %vm1440_vm13 = vweird.f32 %v2161_v0 }
 0xe80   : > { %vm1441_vm15 = vmor %vm1439_vm14, %vm1440_vm13 }
 0xe81   : > { %v1436_v2 = vsub.f32 1.0, %v1435_v1 }
 0xe83   : > { %v1437_v3 = vmul.f32 %v2161_v0, %v1436_v2 }
 0xe85   : > { %v1438_v4 = vadd.f32 %v2161_v0, %v1437_v3 }
 0xe87   : > { %v1442_v7 = vsel %vm1441_vm15, %v2161_v0, %v1438_v4 }
 0xe88   : > { %v1447_v9 = vsel %vm1444_vm0, %v1446_v8, %v1442_v7 }
 0xeca   : > { %v1475_v62 = vpop.permute.xlu2 %1474 }
 0xecb   : > { %v1477_v63 = vsel %vm1467_vm11, %v1475_v62, %v1471_v61 }
 0xecc   : > { %1478 = vst.msk [vmem:[#allocation5] sm:$0x1] %vm1469_vm12, %v1477_v63 }
 0xee7   : > { %v1464_v10 = vpop.permute.xlu1 %1463 }
 0xee8   : > { %v1466_v11 = vmul.f32 %v1464_v10, %v1447_v9 }
 0xeea   : > { %v1468_v12 = vsel %vm1467_vm11, %v1466_v11, %v3032_v26 }
 0xeeb   : > { %1470 = vst.msk [vmem:[#allocation4] sm:$0x1] %vm1469_vm12, %v1468_v12 }
 0xeec PF: > { %p1995_p0 = scmp.le.s32.totalorder %s2591_s22, 6 }
 0xeed   : > { %s2435_s26 = smov (!%p1995_p0), 64  }
 0xeee   : > { %1482 = sbr.rel (%p1995_p0) target bundleno = 4247 (0x1097), region = 152 }
 0xef3   : > { %v1499_v13 = vld [vmem:[%s3234_s7 + $0x78] sm:$0xff]  ;;  %v1498_v14 = vld [vmem:[%s3234_s7 + $0x70] sm:$0xff]  ;;  %v1497_v15 = vld [vmem:[%s3234_s7 + $0x68] sm:$0xff]  ;;  %vm1548_vm1 = vcmask 1040384   ;;  %vm1616_vm8 = vcmp.gt.s32.totalorder %v2640_v45, 6  ;;  %vm1618_vm9 = vcmask 516096  }
 0xef4   : > { %1531 = vmatpush.msra.mxu1 %v1499_v13  ;;  %1511 = vmatpush.msra.mxu0 %v1498_v14  ;;  %v1496_v16 = vld [vmem:[%s3234_s7 + $0x60] sm:$0xff]  ;;  %v1495_v17 = vld [vmem:[%s3234_s7 + $0x58] sm:$0xff]  ;;  %v1494_v18 = vld [vmem:[%s3234_s7 + $0x50] sm:$0xff] }
 0xef5   : > { %v1493_v19 = vld [vmem:[%s3234_s7 + $0x48] sm:$0xff]  ;;  %v1492_v20 = vld [vmem:[%s3234_s7 + $0x40] sm:$0xff]  ;;  %v1598_v21 = vld [vmem:[#allocation5] sm:$0x1] }
 0xef6   : > { %1532 = vmatpush.msra.mxu1 %v1497_v15  ;;  %1512 = vmatpush.msra.mxu0 %v1496_v16  ;;  %v1491_v22 = vld [vmem:[%s3234_s7 + $0x38] sm:$0xff]  ;;  %v1490_v23 = vld [vmem:[%s3234_s7 + $0x30] sm:$0xff]  ;;  %v1489_v24 = vld [vmem:[%s3234_s7 + $0x28] sm:$0xff] }
 0xef7   : > { %1600 = vrot.lane.b32.xlu0 %v1598_v21, %s2435_s26  ;;  %v1488_v25 = vld [vmem:[%s3234_s7 + $0x20] sm:$0xff]  ;;  %v1487_v26 = vld [vmem:[%s3234_s7 + $0x18] sm:$0xff]  ;;  %v1486_v27 = vld [vmem:[%s3234_s7 + $0x10] sm:$0xff] }
 0xef8   : > { %1533 = vmatpush.msra.mxu1 %v1495_v17  ;;  %1513 = vmatpush.msra.mxu0 %v1494_v18  ;;  %v1485_v28 = vld [vmem:[%s3234_s7 + $0x8] sm:$0xff]  ;;  %v1484_v29 = vld [vmem:[%s3234_s7] sm:$0xff]  ;;  %v3100_v30 = vld [vmem:[#allocation4] sm:$0x1] }
 0xef9   : > { %v1544_v34 = vld [vmem:[#allocation3 + $0x6] ss:$8 sm:$0x3]  ;;  %v1620_v1 = vld [vmem:[#allocation5] sm:$0x1] }
 0xefa   : > { %1534 = vmatpush.msra.mxu1 %v1493_v19  ;;  %1514 = vmatpush.msra.mxu0 %v1492_v20 }
 0xefc   : > { %1535 = vmatpush.msra.mxu1 %v1491_v22  ;;  %1515 = vmatpush.msra.mxu0 %v1490_v23 }
 0xefe   : > { %1536 = vmatpush.msra.mxu1 %v1489_v24  ;;  %1516 = vmatpush.msra.mxu0 %v1488_v25 }
 0xf00   : > { %1537 = vmatpush.msra.mxu1 %v1487_v26  ;;  %1517 = vmatpush.msra.mxu0 %v1486_v27 }
 0xf02   : > { %1538 = vmatpush.msra.mxu1 %v1485_v28  ;;  %1518 = vmatpush.msra.mxu0 %v1484_v29 }
 0xf03   : > { %1997 = vmatmul.msk.f32.vlgmr.msra.gmra.mxu1 %vm534_vm5, %v3100_v30  ;;  %1996 = vmatmul.msk.f32.vlgmr.msra.gmra.mxu0 %vm534_vm5, %v3100_v30 }
 0xf69   : > { %v1601_v54 = vpop.permute.xlu0 %1600 }
 0xf80   : > { %v1540_v31 = vpop.f32.mrf.mxu1  ;;  %v1520_v32 = vpop.f32.mrf.mxu0 }
 0xf81   : > { %v1547_v33 = vrot.slane %v1540_v31, 7 }
 0xf83   : > { %v1549_v35 = vsel %vm1548_vm1, %v1520_v32, %v1547_v33 }
 0xf84   : > { %v1551_v36 = vadd.f32 %v1549_v35, %v1544_v34 }
 0xf86   : > { %v1998_v37 = vmul.f32 -1.442695, %v1551_v36  ;;  %1575 = vrot.lane.b32.xlu1 %v1551_v36, %s2435_s26  ;;  %v1572_v41 = vrot.slane %v1551_v36, 1 }
 0xf88   : > { %2162 = vpow2.f32 %v1998_v37 }
 0xf8e   : > { %v2163_v38 = vpop.eup %2162 }
 0xf8f   : > { %v1555_v39 = vadd.f32 1.0, %v2163_v38 }
 0xf91   : > { %2164 = vrcp.f32 %v1555_v39  ;;  %v1567_v44 = vand.u32 2147483648, %v1555_v39  ;;  %v1565_v47 = vand.u32 2147483647, %v1555_v39  ;;  %vm1561_vm4 = vweird.f32 %v1555_v39 }
 0xf92   : > { %2166 = vtanh.f32 %v1572_v41 }
 0xf93   : > { %v1568_v49 = vor.u32 1.1754944e-38, %v1567_v44  ;;  %vm1566_vm7 = vcmp.eq.f32.partialorder %v1565_v47, 8.507059e+37 }
 0xf97   : > { %v2165_v40 = vpop.eup %2164 }
 0xf98   : > { %v1557_v42 = vmul.f32 %v2165_v40, %v1555_v39  ;;  %vm1562_vm2 = vweird.f32 %v2165_v40  ;;  %v2167_v51 = vpop.eup %2166 }
 0xf99   : > { %vm1563_vm6 = vmor %vm1561_vm4, %vm1562_vm2 }
 0xf9a   : > { %v1558_v43 = vsub.f32 1.0, %v1557_v42 }
 0xf9c   : > { %v1559_v46 = vmul.f32 %v2165_v40, %v1558_v43 }
 0xf9e   : > { %v1560_v48 = vadd.f32 %v2165_v40, %v1559_v46 }
 0xfa0   : > { %v1564_v50 = vsel %vm1563_vm6, %v2165_v40, %v1560_v48 }
 0xfa1   : > { %v1569_v52 = vsel %vm1566_vm7, %v1568_v49, %v1564_v50 }
 0xfa2   : > { %v1604_v53 = vmul.f32 %v2167_v51, %v1569_v52  ;;  %v1603_v55 = vmul.f32 %v1601_v54, %v1569_v52 }
 0xfa4   : > { %1606 = vrot.lane.b32.xlu0 %v1604_v53, %s2435_s26 }
 0xff8   : > { %v1576_v60 = vpop.permute.xlu1 %1575 }
 0xff9   : > { %v1577_v61 = vrot.slane %v1576_v60, 1 }
 0xffb   : > { %v1999_v62 = vmul.f32 -1.442695, %v1577_v61 }
0x1016   : > { %v1607_v56 = vpop.permute.xlu0 %1606 }
0x1017   : > { %v1609_v57 = vadd.f32 %v1607_v56, %v1603_v55 }
0x1019   : > { %2168 = vtanh.f32 %v1609_v57  ;;  %v1622_v58 = vperm.slane %v1609_v57, 0 }
0x101a   : > { %2170 = vpow2.f32 %v1999_v62 }
0x101b   : > { %1623 = vrot.lane.b32.xlu2 %v1622_v58, %s2435_s26 }
0x101f   : > { %v2169_v59 = vpop.eup %2168 }
0x1020   : > { %1612 = vrot.lane.b32.xlu1 %v2169_v59, %s2435_s26  ;;  %v2171_v63 = vpop.eup %2170 }
0x1021   : > { %v1582_v0 = vadd.f32 1.0, %v2171_v63 }
0x1023   : > { %2172 = vrcp.f32 %v1582_v0  ;;  %v1594_v9 = vand.u32 2147483648, %v1582_v0  ;;  %vm1588_vm11 = vweird.f32 %v1582_v0  ;;  %v1592_v10 = vand.u32 2147483647, %v1582_v0 }
0x1025   : > { %v1595_v12 = vor.u32 1.1754944e-38, %v1594_v9  ;;  %vm1593_vm13 = vcmp.eq.f32.partialorder %v1592_v10, 8.507059e+37 }
0x1029   : > { %v2173_v4 = vpop.eup %2172 }
0x102a   : > { %v1584_v5 = vmul.f32 %v2173_v4, %v1582_v0  ;;  %vm1589_vm10 = vweird.f32 %v2173_v4 }
0x102b   : > { %vm1590_vm12 = vmor %vm1588_vm11, %vm1589_vm10 }
0x102c   : > { %v1585_v6 = vsub.f32 1.0, %v1584_v5 }
0x102e   : > { %v1586_v7 = vmul.f32 %v2173_v4, %v1585_v6 }
0x1030   : > { %v1587_v8 = vadd.f32 %v2173_v4, %v1586_v7 }
0x1032   : > { %v1591_v11 = vsel %vm1590_vm12, %v2173_v4, %v1587_v8 }
0x1033   : > { %v1596_v13 = vsel %vm1593_vm13, %v1595_v12, %v1591_v11 }
0x1075   : > { %v1624_v2 = vpop.permute.xlu2 %1623 }
0x1076   : > { %v1626_v3 = vsel %vm1616_vm8, %v1624_v2, %v1620_v1 }
0x1077   : > { %1627 = vst.msk [vmem:[#allocation5] sm:$0x1] %vm1618_vm9, %v1626_v3 }
0x1092   : > { %v1613_v14 = vpop.permute.xlu1 %1612 }
0x1093   : > { %v1615_v15 = vmul.f32 %v1613_v14, %v1596_v13 }
0x1095   : > { %v1617_v16 = vsel %vm1616_vm8, %v1615_v15, %v3100_v30 }
0x1096   : > { %1619 = vst.msk [vmem:[#allocation4] sm:$0x1] %vm1618_vm9, %v1617_v16 }
0x1097 PF: > { %p2000_p1 = scmp.le.s32.totalorder %s2591_s22, 7 }
0x1098   : > { %s2436_s19 = smov (!%p2000_p1), 64  }
0x1099   : > { %1631 = sbr.rel (%p2000_p1) target bundleno = 4674 (0x1242), region = 156 }
0x109e   : > { %v1648_v17 = vld [vmem:[%s3234_s7 + $0x78] sm:$0xff]  ;;  %v1647_v18 = vld [vmem:[%s3234_s7 + $0x70] sm:$0xff]  ;;  %v1646_v19 = vld [vmem:[%s3234_s7 + $0x68] sm:$0xff]  ;;  %vm1697_vm14 = vcmask 1040384   ;;  %vm1765_vm4 = vcmp.gt.s32.totalorder %v2640_v45, 7  ;;  %vm1767_vm6 = vcmask 516096  }
0x109f   : > { %1680 = vmatpush.msra.mxu1 %v1648_v17  ;;  %1660 = vmatpush.msra.mxu0 %v1647_v18  ;;  %v1645_v20 = vld [vmem:[%s3234_s7 + $0x60] sm:$0xff]  ;;  %v1644_v21 = vld [vmem:[%s3234_s7 + $0x58] sm:$0xff]  ;;  %v1643_v22 = vld [vmem:[%s3234_s7 + $0x50] sm:$0xff] }
0x10a0   : > { %v1642_v23 = vld [vmem:[%s3234_s7 + $0x48] sm:$0xff]  ;;  %v1641_v24 = vld [vmem:[%s3234_s7 + $0x40] sm:$0xff]  ;;  %v1747_v25 = vld [vmem:[#allocation5] sm:$0x1] }
0x10a1   : > { %1681 = vmatpush.msra.mxu1 %v1646_v19  ;;  %1661 = vmatpush.msra.mxu0 %v1645_v20  ;;  %v1640_v26 = vld [vmem:[%s3234_s7 + $0x38] sm:$0xff]  ;;  %v1639_v27 = vld [vmem:[%s3234_s7 + $0x30] sm:$0xff]  ;;  %v1638_v28 = vld [vmem:[%s3234_s7 + $0x28] sm:$0xff] }
0x10a2   : > { %1749 = vrot.lane.b32.xlu0 %v1747_v25, %s2436_s19  ;;  %v1637_v29 = vld [vmem:[%s3234_s7 + $0x20] sm:$0xff]  ;;  %v1636_v30 = vld [vmem:[%s3234_s7 + $0x18] sm:$0xff]  ;;  %v1635_v31 = vld [vmem:[%s3234_s7 + $0x10] sm:$0xff] }
0x10a3   : > { %1682 = vmatpush.msra.mxu1 %v1644_v21  ;;  %1662 = vmatpush.msra.mxu0 %v1643_v22  ;;  %v1634_v32 = vld [vmem:[%s3234_s7 + $0x8] sm:$0xff]  ;;  %v1633_v33 = vld [vmem:[%s3234_s7] sm:$0xff]  ;;  %v3168_v34 = vld [vmem:[#allocation4] sm:$0x1] }
0x10a4   : > { %v1693_v38 = vld [vmem:[#allocation3 + $0x7] ss:$8 sm:$0x3]  ;;  %v1769_v5 = vld [vmem:[#allocation5] sm:$0x1] }
0x10a5   : > { %1683 = vmatpush.msra.mxu1 %v1642_v23  ;;  %1663 = vmatpush.msra.mxu0 %v1641_v24 }
0x10a7   : > { %1684 = vmatpush.msra.mxu1 %v1640_v26  ;;  %1664 = vmatpush.msra.mxu0 %v1639_v27 }
0x10a9   : > { %1685 = vmatpush.msra.mxu1 %v1638_v28  ;;  %1665 = vmatpush.msra.mxu0 %v1637_v29 }
0x10ab   : > { %1686 = vmatpush.msra.mxu1 %v1636_v30  ;;  %1666 = vmatpush.msra.mxu0 %v1635_v31 }
0x10ad   : > { %1687 = vmatpush.msra.mxu1 %v1634_v32  ;;  %1667 = vmatpush.msra.mxu0 %v1633_v33 }
0x10ae   : > { %2002 = vmatmul.msk.f32.vlgmr.msra.gmra.mxu1 %vm534_vm5, %v3168_v34  ;;  %2001 = vmatmul.msk.f32.vlgmr.msra.gmra.mxu0 %vm534_vm5, %v3168_v34 }
0x1114   : > { %v1750_v58 = vpop.permute.xlu0 %1749 }
0x112b   : > { %v1689_v35 = vpop.f32.mrf.mxu1  ;;  %v1669_v36 = vpop.f32.mrf.mxu0 }
0x112c   : > { %v1696_v37 = vrot.slane %v1689_v35, 7 }
0x112e   : > { %v1698_v39 = vsel %vm1697_vm14, %v1669_v36, %v1696_v37 }
0x112f   : > { %v1700_v40 = vadd.f32 %v1698_v39, %v1693_v38 }
0x1131   : > { %v2003_v41 = vmul.f32 -1.442695, %v1700_v40  ;;  %1724 = vrot.lane.b32.xlu1 %v1700_v40, %s2436_s19  ;;  %v1721_v46 = vrot.slane %v1700_v40, 1 }
0x1133   : > { %2174 = vpow2.f32 %v2003_v41 }
0x1139   : > { %v2175_v42 = vpop.eup %2174 }
0x113a   : > { %v1704_v43 = vadd.f32 1.0, %v2175_v42 }
0x113c   : > { %2176 = vrcp.f32 %v1704_v43  ;;  %v1716_v49 = vand.u32 2147483648, %v1704_v43  ;;  %v1714_v51 = vand.u32 2147483647, %v1704_v43  ;;  %vm1710_vm0 = vweird.f32 %v1704_v43 }
0x113d   : > { %2178 = vtanh.f32 %v1721_v46 }
0x113e   : > { %v1717_v53 = vor.u32 1.1754944e-38, %v1716_v49  ;;  %vm1715_vm2 = vcmp.eq.f32.partialorder %v1714_v51, 8.507059e+37 }
0x1142   : > { %v2177_v44 = vpop.eup %2176 }
0x1143   : > { %v1706_v47 = vmul.f32 %v2177_v44, %v1704_v43  ;;  %vm1711_vm15 = vweird.f32 %v2177_v44  ;;  %v2179_v55 = vpop.eup %2178 }
0x1144   : > { %vm1712_vm1 = vmor %vm1710_vm0, %vm1711_vm15 }
0x1145   : > { %v1707_v48 = vsub.f32 1.0, %v1706_v47 }
0x1147   : > { %v1708_v50 = vmul.f32 %v2177_v44, %v1707_v48 }
0x1149   : > { %v1709_v52 = vadd.f32 %v2177_v44, %v1708_v50 }
0x114b   : > { %v1713_v54 = vsel %vm1712_vm1, %v2177_v44, %v1709_v52 }
0x114c   : > { %v1718_v56 = vsel %vm1715_vm2, %v1717_v53, %v1713_v54 }
0x114d   : > { %v1753_v57 = vmul.f32 %v2179_v55, %v1718_v56  ;;  %v1752_v59 = vmul.f32 %v1750_v58, %v1718_v56 }
0x114f   : > { %1755 = vrot.lane.b32.xlu0 %v1753_v57, %s2436_s19 }
0x11a3   : > { %v1725_v0 = vpop.permute.xlu1 %1724 }
0x11a4   : > { %v1726_v1 = vrot.slane %v1725_v0, 1 }
0x11a6   : > { %v2004_v2 = vmul.f32 -1.442695, %v1726_v1 }
0x11c1   : > { %v1756_v60 = vpop.permute.xlu0 %1755 }
0x11c2   : > { %v1758_v61 = vadd.f32 %v1756_v60, %v1752_v59 }
0x11c4   : > { %2180 = vtanh.f32 %v1758_v61  ;;  %v1771_v62 = vperm.slane %v1758_v61, 0 }
0x11c5   : > { %2182 = vpow2.f32 %v2004_v2 }
0x11c6   : > { %1772 = vrot.lane.b32.xlu2 %v1771_v62, %s2436_s19 }
0x11ca   : > { %v2181_v63 = vpop.eup %2180 }
0x11cb   : > { %1761 = vrot.lane.b32.xlu1 %v2181_v63, %s2436_s19  ;;  %v2183_v3 = vpop.eup %2182 }
0x11cc   : > { %v1731_v4 = vadd.f32 1.0, %v2183_v3 }
0x11ce   : > { %2184 = vrcp.f32 %v1731_v4  ;;  %v1743_v13 = vand.u32 2147483648, %v1731_v4  ;;  %vm1737_vm8 = vweird.f32 %v1731_v4  ;;  %v1741_v14 = vand.u32 2147483647, %v1731_v4 }
0x11d0   : > { %v1744_v16 = vor.u32 1.1754944e-38, %v1743_v13  ;;  %vm1742_vm10 = vcmp.eq.f32.partialorder %v1741_v14, 8.507059e+37 }
0x11d4   : > { %v2185_v8 = vpop.eup %2184 }
0x11d5   : > { %v1733_v9 = vmul.f32 %v2185_v8, %v1731_v4  ;;  %vm1738_vm7 = vweird.f32 %v2185_v8 }
0x11d6   : > { %vm1739_vm9 = vmor %vm1737_vm8, %vm1738_vm7 }
0x11d7   : > { %v1734_v10 = vsub.f32 1.0, %v1733_v9 }
0x11d9   : > { %v1735_v11 = vmul.f32 %v2185_v8, %v1734_v10 }
0x11db   : > { %v1736_v12 = vadd.f32 %v2185_v8, %v1735_v11 }
0x11dd   : > { %v1740_v15 = vsel %vm1739_vm9, %v2185_v8, %v1736_v12 }
0x11de   : > { %v1745_v17 = vsel %vm1742_vm10, %v1744_v16, %v1740_v15 }
0x1220   : > { %v1773_v6 = vpop.permute.xlu2 %1772 }
0x1221   : > { %v1775_v7 = vsel %vm1765_vm4, %v1773_v6, %v1769_v5 }
0x1222   : > { %1776 = vst.msk [vmem:[#allocation5] sm:$0x1] %vm1767_vm6, %v1775_v7 }
0x123d   : > { %v1762_v18 = vpop.permute.xlu1 %1761 }
0x123e   : > { %v1764_v19 = vmul.f32 %v1762_v18, %v1745_v17 }
0x1240   : > { %v1766_v20 = vsel %vm1765_vm4, %v1764_v19, %v3168_v34 }
0x1241   : > { %1768 = vst.msk [vmem:[#allocation4] sm:$0x1] %vm1767_vm6, %v1766_v20 }
0x1242 PF: > { %v1787_v21 = vld [vmem:[%s3236_s9 + $0x38] sm:$0xff]  ;;  %v1786_v22 = vld [vmem:[%s3236_s9 + $0x30] sm:$0xff]  ;;  %v1785_v23 = vld [vmem:[%s3236_s9 + $0x28] sm:$0xff]  ;;  %s1777_s23 = scalar_lea.vmem [#allocation14], %s2571_s13  ;;  %vm1790_vm11 = vcmask 130048   ;;  %s2437_s16 = smov [#allocation19]  }
0x1243   : > { %1825 = vmatpush.msra.mxu1 %v1787_v21  ;;  %v1789_v45 = vld [vmem:[%s3236_s9 + $0x48] sm:$0xff]  ;;  %v1788_v24 = vld [vmem:[%s3236_s9 + $0x40] sm:$0xff]  ;;  %v1783_v27 = vld [vmem:[%s3236_s9 + $0x18] sm:$0xff]  ;;  %s1848_s15 = sshll.u32 %s2437_s16, 4  ;;  %s1850_s19 = sshll.u32 %s3238_s11, 4  ;;  %s1849_s15 = int_to_ptr.vmem [resolvable:$true] %s1848_s15  ;;  %s1851_s19 = int_to_ptr.hbm [resolvable:$true] %s1850_s19 }
0x1244   : > { %1808 = vmatpush.msra.mxu0 %v1789_v45  ;;  %v1778_v25 = vld [vmem:[%s1777_s23] sm:$0x1]  ;;  %v1782_v28 = vld [vmem:[%s3236_s9 + $0x10] sm:$0xff]  ;;  %v1781_v29 = vld [vmem:[%s3236_s9 + $0x8] sm:$0xff]  ;;  %p2052_p2 = scmp.eq.s32.totalorder %s2519_s14, 6  ;;  %s1840_s20 = scalar_lea.vmem [#allocation19], %s2571_s13 }
0x1245   : > { %1826 = vmatpush.msra.mxu1 %v1786_v22  ;;  %v1784_v26 = vld [vmem:[%s3236_s9 + $0x20] sm:$0xff] }
0x1246   : > { %1809 = vmatpush.msra.mxu0 %v1788_v24  ;;  %v1780_v30 = vld [vmem:[%s3236_s9] sm:$0xff] }
0x1247   : > { %1827 = vmatpush.msra.mxu1 %v1785_v23  ;;  %2005 = vmatmul.msk.f32.vlgmr.msra.gmra.mxu0 %vm1790_vm11, %v1778_v25  ;;  %v1837_v34 = vld [vmem:[%s3237_s10] sm:$0x1] }
0x1248   : > { %v1779_v31 = vld [vmem:[#allocation4] sm:$0x1] }
0x1249   : > { %1828 = vmatpush.msra.mxu1 %v1784_v26 }
0x124b   : > { %1829 = vmatpush.msra.mxu1 %v1783_v27 }
0x124d   : > { %1830 = vmatpush.msra.mxu1 %v1782_v28 }
0x124f   : > { %1831 = vmatpush.msra.mxu1 %v1781_v29 }
0x1251   : > { %1832 = vmatpush.msra.mxu1 %v1780_v30 }
0x1252   : > { %2006 = vmatmul.msk.f32.vlgmr.msra.gmra.mxu1 %vm534_vm5, %v1779_v31 }
0x12c4   : > { %v1811_v32 = vpop.f32.mrf.mxu0 }
0x12cf   : > { %v1834_v33 = vpop.f32.mrf.mxu1 }
0x12d0   : > { %v1835_v35 = vadd.f32 %v1834_v33, %v1811_v32 }
0x12d2   : > { %v1838_v36 = vadd.f32 %v1837_v34, %v1835_v35 }
0x12d4   : > { %2186 = vtanh.f32 %v1838_v36 }
0x12da   : > { %v2187_v37 = vpop.eup %2186 }
0x12db   : > { %1841 = vst.msk [vmem:[%s1840_s20] sm:$0x1] %vm353_vm3, %v2187_v37 }
0x12dc   : > { %2028 = dma.vmem_to_hbm [thread:$0]  (%p2052_p2), %s1849_s15, 128, %s1851_s19, [#allocation13]  }
0x12dd   : > { %2403 = dma.done.wait (%p2052_p2), [#allocation13], 128  }
0x12de   : > { %2405 = vsyncadd (%p2052_p2), [#allocation13], 4294967168 }
0x12df PF: > { %s48_s1 = sadd.s32 1, %s2408_s1  }
0x12e0   : > { %p45_p3 = scmp.ge.s32.totalorder %s48_s1, 9  }
0x12e2   :  { %47 = sbr.rel (!%p45_p3) target bundleno = 15 (0xf), region = 205 }
0x12e7   :  { %1864 = vsyncpa [#allocation12], 1 }
0x12e8   :  { %1866 = vsyncpa [#allocation12 + $0x1], 1 }
0x12e9   :  { %1867 = vsyncpa [#allocation15], 1 }
0x12ea   :  { %1868 = vsyncpa [#allocation18], 1 }
0x12eb   :  { %1869 = vsyncpa [#allocation13], 1 }
0x12ec   :  { %1871 = vsyncpa [#allocation13 + $0x1], 1 }

</bundles_post_ra>
